<compile_context>
chip_gen: v5e
topology: v5e:2x2
jax: 0.10.0
libtpu: 0.0.40
codegen_flags: <defaults>
</compile_context>

<pallas_src>
import functools

import jax
import jax.numpy as jnp
import numpy as np
from jax.experimental import pallas as pl
from jax.experimental.pallas import tpu as pltpu

_EPS = 1e-5
_LANE = 128


def _round_up(v, m):
    return (v + m - 1) // m * m


def _vmem_capacity_bytes():
    try:
        return int(pltpu.get_tpu_info().vmem_capacity_bytes)
    except Exception:
        return 64 << 20          # conservative (v7x-sized) fallback


_VMEM_CAP = _vmem_capacity_bytes()
# Leave headroom for Mosaic internal scratch: ~96 MiB on 128 MiB parts
# (v5e/v6e), ~48 MiB on 64 MiB parts (v7x).
_VMEM_LIMIT_CAP = max(32 << 20, (_VMEM_CAP * 3) // 4)
# Per-grid-step tile budget (single buffer; double-buffering accounted for in
# the per-call vmem limit below).
_TILE_BUDGET = max(2 << 20, _VMEM_CAP // 10)


def _compiler_params(semantics, block_bytes, scratch_bytes=0):
    # Real footprint: double-buffered blocks + scratch + margin.
    need = 2 * block_bytes + scratch_bytes + (4 << 20)
    vmem = int(min(max(need, 32 << 20), _VMEM_LIMIT_CAP))
    return pltpu.CompilerParams(dimension_semantics=semantics,
                                vmem_limit_bytes=vmem)


def _largest_divisor(n, max_val, multiple_of=1):
    """Largest divisor of n that is a multiple of `multiple_of` and <= max_val."""
    best = multiple_of
    d = multiple_of
    while d <= n:
        if n % d == 0 and d <= max_val:
            best = d
        d += multiple_of
    return best


def _pick_rows(h, bytes_per_row, multiple_of=1, budget=_TILE_BUDGET):
    limit = max(multiple_of, budget // max(bytes_per_row, 1))
    return _largest_divisor(h, limit, multiple_of)


# ---------------------------------------------------------------------------
# K0: per-channel sum / sum-of-squares of x (for bn1).
# ---------------------------------------------------------------------------
def _stats_kernel(x_ref, ssum_ref, ssq_ref, *, rows, cp):
    r = pl.program_id(1)

    @pl.when(r == 0)
    def _():
        ssum_ref[...] = jnp.zeros_like(ssum_ref)
        ssq_ref[...] = jnp.zeros_like(ssq_ref)

    x = x_ref[0].astype(jnp.float32).reshape(rows, cp)
    ssum_ref[...] += jnp.sum(x, axis=0, keepdims=True)[None]
    ssq_ref[...] += jnp.sum(x * x, axis=0, keepdims=True)[None]


# ---------------------------------------------------------------------------
# K1: bn1+relu -> conv1 (1x1); bn2 partial stats; optional projection shortcut.
# mode: 0 = identity shortcut, 1 = fused projection (stride==1),
#       2 = separate projection (stride>1).
# ---------------------------------------------------------------------------
def _conv1_kernel(*refs, mode, stride, th, w, cinp, pp, c4p, cdt):
    if mode == 0:
        x_ref, a1_ref, b1_ref, w1_ref, y1_ref, ssum_ref, ssq_ref = refs
    elif mode == 1:
        x_ref, a1_ref, b1_ref, wf_ref, y1_ref, ssum_ref, ssq_ref, sc_ref = refs
    else:
        (x_ref, a1_ref, b1_ref, w1_ref, ws_ref,
         y1_ref, ssum_ref, ssq_ref, sc_ref) = refs

    r = pl.program_id(1)
    x = x_ref[0].astype(jnp.float32)                          # (th, w, cinp)
    h1 = jnp.maximum(x * a1_ref[...] + b1_ref[...], 0.0)      # bn1 + relu
    h1_2d = h1.reshape(th * w, cinp).astype(cdt)

    if mode == 1:
        # Single MXU pass over h1 with the fused (cinp, pp + c4p) weight: first
        # pp output columns are conv1, the remaining c4p are the projection.
        yf = jnp.dot(h1_2d, wf_ref[...], preferred_element_type=jnp.float32)
        y = yf[:, :pp]
        sc_ref[...] = yf[:, pp:].reshape(1, th, w, c4p).astype(sc_ref.dtype)
    else:
        y = jnp.dot(h1_2d, w1_ref[...], preferred_element_type=jnp.float32)

    y1_ref[...] = y.reshape(1, th, w, pp).astype(y1_ref.dtype)

    @pl.when(r == 0)
    def _():
        ssum_ref[...] = jnp.zeros_like(ssum_ref)
        ssq_ref[...] = jnp.zeros_like(ssq_ref)

    ssum_ref[...] += jnp.sum(y, axis=0, keepdims=True)[None]
    ssq_ref[...] += jnp.sum(y * y, axis=0, keepdims=True)[None]

    if mode == 2:
        # Pre-activation shortcut with spatial stride: row pick is an outer-dim
        # slice (cheap); the column pick needs one relayout.
        # TODO(synk): replace the column pick with sublane-strided ref loads
        # (pl.ds(start, size, stride=stride)) once verified on all generations.
        hs = h1.reshape(th // stride, stride, w, cinp)[:, 0]
        hs = hs.reshape(th // stride, w // stride, stride, cinp)[:, :, 0]
        tho, wo = th // stride, w // stride
        sc = jnp.dot(hs.reshape(tho * wo, cinp).astype(cdt), ws_ref[...],
                     preferred_element_type=jnp.float32)
        sc_ref[...] = sc.reshape(1, tho, wo, c4p).astype(sc_ref.dtype)


# ---------------------------------------------------------------------------
# K2: bn2+relu -> conv2 (3x3, pad=1, stride); bn3 partial stats.
# ---------------------------------------------------------------------------
def _conv2_kernel(y1_ref, a2_ref, b2_ref, w2_ref, y2_ref, ssum_ref, ssq_ref,
                  pad_ref, acc_ref, *, stride, h, w, ho, wo, pp, cdt):
    x = y1_ref[0].astype(jnp.float32)                         # (h, w, pp)
    x = jnp.maximum(x * a2_ref[...] + b2_ref[...], 0.0)       # bn2 + relu

    # Padded image in compute dtype: interior written once, 1-pixel border
    # zeroed (small vs. the matmuls; border must be valid on every grid step so
    # the "parallel" grid axis stays megacore-safe).
    pad_ref[1:h + 1, 1:w + 1, :] = x.astype(cdt)
    zrow = jnp.zeros((1, w + 2, pp), cdt)
    pad_ref[0:1, :, :] = zrow
    pad_ref[h + 1:h + 2, :, :] = zrow
    zcol = jnp.zeros((h, 1, pp), cdt)
    pad_ref[1:h + 1, 0:1, :] = zcol
    pad_ref[1:h + 1, w + 1:w + 2, :] = zcol

    # 3x3 conv = 3 matmuls (one per dy) with a dx-concatenated K = 3*pp
    # contraction; accumulation lives in a VMEM f32 scratch ref.
    for dy in range(3):
        if stride == 1:
            rows = pad_ref[dy:dy + ho, :, :]                   # (ho, w+2, pp)
        else:
            rows = pad_ref[dy:dy + stride * ho, :, :]
            rows = rows.reshape(ho, stride, w + 2, pp)[:, 0]   # outer-dim pick
        taps = []
        for dx in range(3):
            if stride == 1:
                taps.append(rows[:, dx:dx + wo, :])
            else:
                # TODO(synk): sublane-strided ref loads would avoid this
                # reshape/pick relayout for the strided case.
                blk = rows[:, dx:dx + stride * wo, :]
                taps.append(blk.reshape(ho, wo, stride, pp)[:, :, 0])
        op = jnp.concatenate(taps, axis=-1).reshape(ho * wo, 3 * pp)
        contrib = jnp.dot(op, w2_ref[dy], preferred_element_type=jnp.float32)
        if dy == 0:
            acc_ref[...] = contrib
        else:
            acc_ref[...] += contrib

    acc = acc_ref[...]
    y2_ref[...] = acc.reshape(1, ho, wo, pp).astype(y2_ref.dtype)
    ssum_ref[...] = jnp.sum(acc, axis=0, keepdims=True)[None]
    ssq_ref[...] = jnp.sum(acc * acc, axis=0, keepdims=True)[None]


# ---------------------------------------------------------------------------
# K3: bn3+relu -> conv3 (1x1) + shortcut add.
# ---------------------------------------------------------------------------
def _conv3_kernel(y2_ref, a3_ref, b3_ref, w3_ref, sc_ref, o_ref,
                  *, tho, wo, pp, c4p, cdt):
    x = y2_ref[0].astype(jnp.float32)                         # (tho, wo, pp)
    x = jnp.maximum(x * a3_ref[...] + b3_ref[...], 0.0)       # bn3 + relu
    y = jnp.dot(x.reshape(tho * wo, pp).astype(cdt), w3_ref[...],
                preferred_element_type=jnp.float32)           # (tho*wo, c4p)
    o_ref[...] = (y.reshape(1, tho, wo, c4p)
                  + sc_ref[...].astype(jnp.float32)).astype(o_ref.dtype)


# ---------------------------------------------------------------------------
# Wrapper.
# ---------------------------------------------------------------------------
def _bn_coeffs(ssum, ssq, gamma_p, beta_p, count):
    # TODO(synk): single-pass var = E[x^2] - mean^2 can cancel at production
    # N*H*W; switch to a per-tile-centered / Welford combine in that regime.
    s = jnp.sum(ssum, axis=0)                      # (1, C)
    q = jnp.sum(ssq, axis=0)                       # (1, C)
    mean = s / count
    var = jnp.maximum(q / count - mean * mean, 0.0)
    scale = gamma_p.reshape(1, -1) / jnp.sqrt(var + _EPS)
    shift = beta_p.reshape(1, -1) - mean * scale
    return scale, shift


@functools.partial(jax.jit, static_argnames=("stride", "compute_dtype"))
def preact_bottleneck(x_nchw, params, *, stride=1, compute_dtype=jnp.bfloat16):
    """PyTorch-equivalent PreActBottleneck forward (training-mode BatchNorm)."""
    n, cin, hh, ww = x_nchw.shape
    planes = params["w1"].shape[0]
    c4 = 4 * planes
    increasing = (stride != 1) or (cin != c4)
    assert hh % stride == 0 and ww % stride == 0
    ho, wo = hh // stride, ww // stride

    cdt = jnp.dtype(compute_dtype)
    isz = cdt.itemsize
    cinp = _round_up(cin, _LANE)
    pp = _round_up(planes, _LANE)
    c4p = _round_up(c4, _LANE)
    f32 = jnp.float32

    # ---- NCHW -> NHWC, channel axes zero-padded to the 128-lane width ----
    # TODO(synk): when blocks are chained, keep activations in padded NHWC
    # between blocks and do this conversion only at network entry/exit.
    x = jnp.transpose(x_nchw, (0, 2, 3, 1)).astype(f32)
    x_p = jnp.pad(x, ((0, 0), (0, 0), (0, 0), (0, cinp - cin)))

    def pad_vec(v, c):
        return jnp.pad(v.astype(f32), (0, c - v.shape[0]))

    def pad_1x1(wgt, ci, co):          # OIHW 1x1 conv -> (ci, co), padded, cdt
        m = jnp.transpose(wgt[:, :, 0, 0], (1, 0)).astype(f32)
        return jnp.pad(m, ((0, ci - m.shape[0]), (0, co - m.shape[1]))).astype(cdt)

    g1, be1 = pad_vec(params["g1"], cinp), pad_vec(params["b1"], cinp)
    g2, be2 = pad_vec(params["g2"], pp), pad_vec(params["b2"], pp)
    g3, be3 = pad_vec(params["g3"], pp), pad_vec(params["b3"], pp)
    w1 = pad_1x1(params["w1"], cinp, pp)                        # (cinp, pp)
    w3 = pad_1x1(params["w3"], pp, c4p)                         # (pp, c4p)
    w2 = jnp.transpose(params["w2"], (2, 3, 1, 0)).astype(f32)  # (3,3,ci,co)
    w2 = jnp.pad(w2, ((0, 0), (0, 0), (0, pp - planes), (0, pp - planes)))
    w2 = w2.reshape(3, 3 * pp, pp).astype(cdt)                  # dx-concat K dim
    ws = pad_1x1(params["ws"], cinp, c4p) if increasing else None
    fuse_ws = increasing and stride == 1
    wf = jnp.concatenate([w1, ws], axis=1) if fuse_ws else None  # (cinp, pp+c4p)

    # ---- row tiling: largest divisor of H fitting the per-step VMEM budget ----
    th0 = _pick_rows(hh, ww * cinp * 4)                               # K0
    k1_row = ww * (cinp * 4 + pp * isz) + (ww // stride) * c4p * isz
    th = _pick_rows(hh, k1_row, multiple_of=stride)                   # K1
    tho = _pick_rows(ho, wo * (pp * isz + c4p * isz + c4p * 4))       # K3
    n_th0, n_th, n_tho = hh // th0, hh // th, ho // tho

    st_shape = lambda c: jax.ShapeDtypeStruct((n, 1, c), f32)
    st_spec2 = lambda c: pl.BlockSpec((1, 1, c), lambda i, r: (i, 0, 0))
    vec_spec2 = lambda c: pl.BlockSpec((1, c), lambda i, r: (0, 0))

    # ================= K0: bn1 statistics ====================================
    blk0 = th0 * ww * cinp * 4 + 2 * cinp * 4
    s1, q1 = pl.pallas_call(
        functools.partial(_stats_kernel, rows=th0 * ww, cp=cinp),
        grid=(n, n_th0),
        in_specs=[pl.BlockSpec((1, th0, ww, cinp), lambda i, r: (i, r, 0, 0))],
        out_specs=(st_spec2(cinp), st_spec2(cinp)),
        out_shape=(st_shape(cinp), st_shape(cinp)),
        compiler_params=_compiler_params(("parallel", "arbitrary"), blk0),
        cost_estimate=pl.CostEstimate(flops=int(3 * n * hh * ww * cinp),
                                      transcendentals=0,
                                      bytes_accessed=int(n * hh * ww * cinp * 4)),
    )(x_p)
    a1, sh1 = _bn_coeffs(s1, q1, g1, be1, float(n * hh * ww))

    # ================= K1: bn1 apply + conv1 + bn2 stats (+ shortcut) ========
    x_spec = pl.BlockSpec((1, th, ww, cinp), lambda i, r: (i, r, 0, 0))
    in_specs = [x_spec, vec_spec2(cinp), vec_spec2(cinp)]
    inputs = [x_p, a1, sh1]
    if not increasing:
        mode = 0
        in_specs.append(pl.BlockSpec((cinp, pp), lambda i, r: (0, 0)))
        inputs.append(w1)
    elif fuse_ws:
        mode = 1
        in_specs.append(pl.BlockSpec((cinp, pp + c4p), lambda i, r: (0, 0)))
        inputs.append(wf)
    else:
        mode = 2
        in_specs.append(pl.BlockSpec((cinp, pp), lambda i, r: (0, 0)))
        in_specs.append(pl.BlockSpec((cinp, c4p), lambda i, r: (0, 0)))
        inputs.extend([w1, ws])

    out_shape = [jax.ShapeDtypeStruct((n, hh, ww, pp), cdt),
                 st_shape(pp), st_shape(pp)]
    out_specs = [pl.BlockSpec((1, th, ww, pp), lambda i, r: (i, r, 0, 0)),
                 st_spec2(pp), st_spec2(pp)]
    if increasing:
        out_shape.append(jax.ShapeDtypeStruct((n, ho, wo, c4p), cdt))
        out_specs.append(pl.BlockSpec((1, th // stride, wo, c4p),
                                      lambda i, r: (i, r, 0, 0)))

    k1_blk = th * ww * (cinp * 4 + pp * isz) + cinp * pp * isz + 2 * pp * 4
    k1_flops = 2 * n * hh * ww * cinp * pp
    if increasing:
        k1_blk += (th // stride) * wo * c4p * isz + cinp * c4p * isz
        k1_flops += 2 * n * ho * wo * cinp * c4p
    k1 = pl.pallas_call(
        functools.partial(_conv1_kernel, mode=mode, stride=stride,
                          th=th, w=ww, cinp=cinp, pp=pp, c4p=c4p, cdt=cdt),
        grid=(n, n_th),
        in_specs=in_specs,
        out_specs=tuple(out_specs),
        out_shape=tuple(out_shape),
        compiler_params=_compiler_params(("parallel", "arbitrary"), k1_blk),
        cost_estimate=pl.CostEstimate(
            flops=int(k1_flops), transcendentals=0,
            bytes_accessed=int(n * hh * ww * (cinp * 4 + pp * isz)
                               + (n * ho * wo * c4p * isz if increasing else 0))),
    )(*inputs)
    if increasing:
        y1, s2, q2, sc = k1
    else:
        y1, s2, q2 = k1
        sc = x_p               # identity shortcut (cin == 4*planes, stride == 1)
    a2, sh2 = _bn_coeffs(s2, q2, g2, be2, float(n * hh * ww))

    # ================= K2: bn2 apply + 3x3 conv (stride) + bn3 stats =========
    k2_blk = (hh * ww * pp * isz + 9 * pp * pp * isz
              + ho * wo * pp * isz + 2 * pp * 4)
    k2_scr = (hh + 2) * (ww + 2) * pp * isz + ho * wo * pp * 4
    y2, s3, q3 = pl.pallas_call(
        functools.partial(_conv2_kernel, stride=stride, h=hh, w=ww, ho=ho, wo=wo,
                          pp=pp, cdt=cdt),
        grid=(n,),
        in_specs=[pl.BlockSpec((1, hh, ww, pp), lambda i: (i, 0, 0, 0)),
                  pl.BlockSpec((1, pp), lambda i: (0, 0)),
                  pl.BlockSpec((1, pp), lambda i: (0, 0)),
                  pl.BlockSpec((3, 3 * pp, pp), lambda i: (0, 0, 0))],
        out_specs=(pl.BlockSpec((1, ho, wo, pp), lambda i: (i, 0, 0, 0)),
                   pl.BlockSpec((1, 1, pp), lambda i: (i, 0, 0)),
                   pl.BlockSpec((1, 1, pp), lambda i: (i, 0, 0))),
        out_shape=(jax.ShapeDtypeStruct((n, ho, wo, pp), cdt),
                   st_shape(pp), st_shape(pp)),
        scratch_shapes=[pltpu.VMEM((hh + 2, ww + 2, pp), cdt),
                        pltpu.VMEM((ho * wo, pp), f32)],
        compiler_params=_compiler_params(("parallel",), k2_blk, k2_scr),
        cost_estimate=pl.CostEstimate(
            flops=int(18 * n * ho * wo * pp * pp), transcendentals=0,
            bytes_accessed=int((n * (hh * ww + ho * wo) * pp
                                + 9 * pp * pp) * isz)),
    )(y1, a2, sh2, w2)
    a3, sh3 = _bn_coeffs(s3, q3, g3, be3, float(n * ho * wo))

    # ================= K3: bn3 apply + conv3 + shortcut add ==================
    k3_blk = (tho * wo * (pp * isz + c4p * isz + c4p * 4) + pp * c4p * isz)
    out_p = pl.pallas_call(
        functools.partial(_conv3_kernel, tho=tho, wo=wo, pp=pp, c4p=c4p, cdt=cdt),
        grid=(n, n_tho),
        in_specs=[pl.BlockSpec((1, tho, wo, pp), lambda i, r: (i, r, 0, 0)),
                  vec_spec2(pp), vec_spec2(pp),
                  pl.BlockSpec((pp, c4p), lambda i, r: (0, 0)),
                  pl.BlockSpec((1, tho, wo, c4p), lambda i, r: (i, r, 0, 0))],
        out_specs=pl.BlockSpec((1, tho, wo, c4p), lambda i, r: (i, r, 0, 0)),
        out_shape=jax.ShapeDtypeStruct((n, ho, wo, c4p), f32),
        compiler_params=_compiler_params(("parallel", "parallel"), k3_blk),
        cost_estimate=pl.CostEstimate(
            flops=int(2 * n * ho * wo * pp * c4p), transcendentals=0,
            bytes_accessed=int(n * ho * wo * ((pp + c4p) * isz + c4p * 4))),
    )(y2, a3, sh3, w3, sc)

    return jnp.transpose(out_p[:, :, :, :c4], (0, 3, 1, 2))   # NHWC -> NCHW


# ---------------------------------------------------------------------------
# Test helpers.
# ---------------------------------------------------------------------------
def init_params(key, inplanes, planes, stride=1):
    ks = jax.random.split(key, 8)

    def conv_w(k, o, i, kh, kw):
        bound = 1.0 / np.sqrt(i * kh * kw)
        return jax.random.uniform(k, (o, i, kh, kw), jnp.float32, -bound, bound)

    p = dict(
        g1=jax.random.uniform(ks[0], (inplanes,), jnp.float32, 0.5, 1.5),
        b1=jax.random.uniform(ks[1], (inplanes,), jnp.float32, -0.5, 0.5),
        w1=conv_w(ks[2], planes, inplanes, 1, 1),
        g2=jax.random.uniform(ks[3], (planes,), jnp.float32, 0.5, 1.5),
        b2=jax.random.uniform(ks[4], (planes,), jnp.float32, -0.5, 0.5),
        w2=conv_w(ks[5], planes, planes, 3, 3),
        g3=jax.random.uniform(ks[6], (planes,), jnp.float32, 0.5, 1.5),
        b3=jax.random.uniform(ks[7], (planes,), jnp.float32, -0.5, 0.5),
        w3=conv_w(jax.random.fold_in(key, 100), planes * 4, planes, 1, 1),
    )
    if stride != 1 or inplanes != planes * 4:
        p["ws"] = conv_w(jax.random.fold_in(key, 101), planes * 4, inplanes, 1, 1)
    return p


def reference(x_nchw, params, *, stride=1):
    """Pure-JAX (XLA) reference mirroring the PyTorch forward, for validation."""
    inplanes = x_nchw.shape[1]
    planes = params["w1"].shape[0]
    increasing = (stride != 1) or (inplanes != planes * 4)

    def bn(h, g, b):
        m = jnp.mean(h, axis=(0, 2, 3), keepdims=True)
        v = jnp.mean(jnp.square(h - m), axis=(0, 2, 3), keepdims=True)
        return (h - m) / jnp.sqrt(v + _EPS) * g.reshape(1, -1, 1, 1) + b.reshape(1, -1, 1, 1)

    def conv(h, wgt, s=1, p=0):
        return jax.lax.conv_general_dilated(
            h, wgt, (s, s), [(p, p), (p, p)],
            dimension_numbers=("NCHW", "OIHW", "NCHW"))

    x = x_nchw.astype(jnp.float32)
    h = jax.nn.relu(bn(x, params["g1"], params["b1"]))
    inp = h if increasing else x
    h = conv(h, params["w1"])
    h = jax.nn.relu(bn(h, params["g2"], params["b2"]))
    h = conv(h, params["w2"], s=stride, p=1)
    h = jax.nn.relu(bn(h, params["g3"], params["b3"]))
    h = conv(h, params["w3"])
    if increasing:
        h = h + conv(inp, params["ws"], s=stride)
    else:
        h = h + inp
    return h


if __name__ == "__main__":
    key = jax.random.PRNGKey(0)

    def run_case(idx, inplanes, planes, stride, compute_dtype):
        kx, kp = jax.random.split(jax.random.fold_in(key, idx))
        x = jax.random.normal(kx, (2, inplanes, 16, 16), jnp.float32)   # NCHW
        params = init_params(kp, inplanes, planes, stride)
        out = jax.block_until_ready(
            preact_bottleneck(x, params, stride=stride,
                              compute_dtype=compute_dtype))
        ref = np.asarray(reference(x, params, stride=stride))
        assert out.shape == ref.shape
        return np.asarray(out), ref

    # float32 compute: strict check against the XLA reference.
    cases = [(16, 8, 1),    # projection shortcut (fused w1+ws), stride 1
             (32, 8, 1),    # identity shortcut
             (16, 8, 2)]    # projection shortcut, stride 2
    for idx, (cin, p, s) in enumerate(cases):
        out, ref = run_case(idx, cin, p, s, jnp.float32)
        np.testing.assert_allclose(out, ref, rtol=1e-4, atol=1e-4)

    # bf16 matmul operands (f32 accumulation): looser, norm-based check.
    out, ref = run_case(10, 16, 8, 1, jnp.bfloat16)
    rel = float(np.linalg.norm(out - ref) / max(np.linalg.norm(ref), 1e-6))
    assert rel < 2e-2, f"bf16 relative error too large: {rel}"

    print("KERNEL_OK")
</pallas_src>

<mosaic_0001>
module attributes {stable_mosaic.version = 11 : i64} {
  func.func @_stats_kernel(%arg0: i32, %arg1: i32, %arg2: memref<1x16x16x128xf32, #tpu.memory_space<vmem>>, %arg3: memref<1x1x128xf32, #tpu.memory_space<vmem>>, %arg4: memref<1x1x128xf32, #tpu.memory_space<vmem>>) attributes {dimension_semantics = [#tpu.dimension_semantics<parallel>, #tpu.dimension_semantics<arbitrary>], iteration_bounds = array<i64: 2, 1>, scalar_prefetch = 0 : i64, scratch_operands = 0 : i64, tpu.core_type = #tpu.core_type<tc>, window_params = [{transform_indices = @transform_0, window_bounds = array<i64: 1, 16, 16, 128>}, {transform_indices = @transform_1, window_bounds = array<i64: 1, 1, 128>}, {transform_indices = @transform_2, window_bounds = array<i64: 1, 1, 128>}]} {
    %c0_i32 = arith.constant 0 : i32
    %0 = arith.cmpi eq, %arg1, %c0_i32 : i32
    %1 = arith.extui %0 : i1 to i32
    %c0_i32_0 = arith.constant 0 : i32
    %2 = arith.cmpi ne, %1, %c0_i32_0 : i32
    scf.if %2 {
      %cst_17 = arith.constant 0.000000e+00 : f32
      %19 = vector.broadcast %cst_17 : f32 to vector<1x1x128xf32>
      %c0_18 = arith.constant 0 : index
      %c0_19 = arith.constant 0 : index
      %c0_20 = arith.constant 0 : index
      %20 = vector.load %arg3[%c0_18, %c0_19, %c0_20] : memref<1x1x128xf32, #tpu.memory_space<vmem>>, vector<1x1x128xf32>
      tpu.vector_store %arg3[%c0_18, %c0_19, %c0_20], %19 {strides = array<i32>} : memref<1x1x128xf32, #tpu.memory_space<vmem>>, vector<1x1x128xf32>,
      %cst_21 = arith.constant 0.000000e+00 : f32
      %21 = vector.broadcast %cst_21 : f32 to vector<1x1x128xf32>
      %c0_22 = arith.constant 0 : index
      %c0_23 = arith.constant 0 : index
      %c0_24 = arith.constant 0 : index
      %22 = vector.load %arg4[%c0_22, %c0_23, %c0_24] : memref<1x1x128xf32, #tpu.memory_space<vmem>>, vector<1x1x128xf32>
      tpu.vector_store %arg4[%c0_22, %c0_23, %c0_24], %21 {strides = array<i32>} : memref<1x1x128xf32, #tpu.memory_space<vmem>>, vector<1x1x128xf32>,
    } else {
    }
    %c0 = arith.constant 0 : index
    %c0_1 = arith.constant 0 : index
    %c0_2 = arith.constant 0 : index
    %c0_3 = arith.constant 0 : index
    %3 = vector.load %arg2[%c0, %c0_1, %c0_2, %c0_3] : memref<1x16x16x128xf32, #tpu.memory_space<vmem>>, vector<1x16x16x128xf32>
    %4 = vector.shape_cast %3 : vector<1x16x16x128xf32> to vector<16x16x128xf32>
    %5 = vector.shape_cast %4 : vector<16x16x128xf32> to vector<256x128xf32>
    %c0_4 = arith.constant 0 : index
    %c0_5 = arith.constant 0 : index
    %c0_6 = arith.constant 0 : index
    %6 = vector.load %arg3[%c0_4, %c0_5, %c0_6] : memref<1x1x128xf32, #tpu.memory_space<vmem>>, vector<1x1x128xf32>
    %cst = arith.constant dense<0.000000e+00> : vector<128xf32>
    %7 = vector.multi_reduction <add>, %5, %cst [0] : vector<256x128xf32> to vector<128xf32>
    %8 = vector.shape_cast %7 : vector<128xf32> to vector<1x128xf32>
    %9 = vector.shape_cast %8 : vector<1x128xf32> to vector<1x1x128xf32>
    %10 = arith.addf %6, %9 : vector<1x1x128xf32>
    %c0_7 = arith.constant 0 : index
    %c0_8 = arith.constant 0 : index
    %c0_9 = arith.constant 0 : index
    %11 = vector.load %arg3[%c0_7, %c0_8, %c0_9] : memref<1x1x128xf32, #tpu.memory_space<vmem>>, vector<1x1x128xf32>
    tpu.vector_store %arg3[%c0_7, %c0_8, %c0_9], %10 {strides = array<i32>} : memref<1x1x128xf32, #tpu.memory_space<vmem>>, vector<1x1x128xf32>,
    %c0_10 = arith.constant 0 : index
    %c0_11 = arith.constant 0 : index
    %c0_12 = arith.constant 0 : index
    %12 = vector.load %arg4[%c0_10, %c0_11, %c0_12] : memref<1x1x128xf32, #tpu.memory_space<vmem>>, vector<1x1x128xf32>
    %13 = arith.mulf %5, %5 : vector<256x128xf32>
    %cst_13 = arith.constant dense<0.000000e+00> : vector<128xf32>
    %14 = vector.multi_reduction <add>, %13, %cst_13 [0] : vector<256x128xf32> to vector<128xf32>
    %15 = vector.shape_cast %14 : vector<128xf32> to vector<1x128xf32>
    %16 = vector.shape_cast %15 : vector<1x128xf32> to vector<1x1x128xf32>
    %17 = arith.addf %12, %16 : vector<1x1x128xf32>
    %c0_14 = arith.constant 0 : index
    %c0_15 = arith.constant 0 : index
    %c0_16 = arith.constant 0 : index
    %18 = vector.load %arg4[%c0_14, %c0_15, %c0_16] : memref<1x1x128xf32, #tpu.memory_space<vmem>>, vector<1x1x128xf32>
    tpu.vector_store %arg4[%c0_14, %c0_15, %c0_16], %17 {strides = array<i32>} : memref<1x1x128xf32, #tpu.memory_space<vmem>>, vector<1x1x128xf32>,
    return
  }
  func.func @transform_0(%arg0: i32, %arg1: i32) -> (i32, i32, i32, i32) {
    %c0_i32 = arith.constant 0 : i32
    %c0_i32_0 = arith.constant 0 : i32
    %c0_i32_1 = arith.constant 0 : i32
    return %arg0, %arg1, %c0_i32, %c0_i32_0 : i32, i32, i32, i32
  }
  func.func @transform_1(%arg0: i32, %arg1: i32) -> (i32, i32, i32) {
    %c0_i32 = arith.constant 0 : i32
    %c0_i32_0 = arith.constant 0 : i32
    %c0_i32_1 = arith.constant 0 : i32
    return %arg0, %c0_i32, %c0_i32_0 : i32, i32, i32
  }
  func.func @transform_2(%arg0: i32, %arg1: i32) -> (i32, i32, i32) {
    %c0_i32 = arith.constant 0 : i32
    %c0_i32_0 = arith.constant 0 : i32
    %c0_i32_1 = arith.constant 0 : i32
    return %arg0, %c0_i32, %c0_i32_0 : i32, i32, i32
  }
}

module attributes {stable_mosaic.version = 11 : i64} {
  func.func @_conv1_kernel(%arg0: i32, %arg1: i32, %arg2: memref<1x16x16x128xf32, #tpu.memory_space<vmem>>, %arg3: memref<1x128xf32, #tpu.memory_space<vmem>>, %arg4: memref<1x128xf32, #tpu.memory_space<vmem>>, %arg5: memref<128x256xf32, #tpu.memory_space<vmem>>, %arg6: memref<1x16x16x128xf32, #tpu.memory_space<vmem>>, %arg7: memref<1x1x128xf32, #tpu.memory_space<vmem>>, %arg8: memref<1x1x128xf32, #tpu.memory_space<vmem>>, %arg9: memref<1x16x16x128xf32, #tpu.memory_space<vmem>>) attributes {dimension_semantics = [#tpu.dimension_semantics<parallel>, #tpu.dimension_semantics<arbitrary>], iteration_bounds = array<i64: 2, 1>, scalar_prefetch = 0 : i64, scratch_operands = 0 : i64, tpu.core_type = #tpu.core_type<tc>, window_params = [{transform_indices = @transform_0, window_bounds = array<i64: 1, 16, 16, 128>}, {pipeline_mode = #tpu.pipeline_mode<synchronous>, transform_indices = @transform_1, window_bounds = array<i64: 1, 128>}, {pipeline_mode = #tpu.pipeline_mode<synchronous>, transform_indices = @transform_2, window_bounds = array<i64: 1, 128>}, {pipeline_mode = #tpu.pipeline_mode<synchronous>, transform_indices = @transform_3, window_bounds = array<i64: 128, 256>}, {transform_indices = @transform_4, window_bounds = array<i64: 1, 16, 16, 128>}, {transform_indices = @transform_5, window_bounds = array<i64: 1, 1, 128>}, {transform_indices = @transform_6, window_bounds = array<i64: 1, 1, 128>}, {transform_indices = @transform_7, window_bounds = array<i64: 1, 16, 16, 128>}]} {
    %c0 = arith.constant 0 : index
    %c0_0 = arith.constant 0 : index
    %c0_1 = arith.constant 0 : index
    %c0_2 = arith.constant 0 : index
    %0 = vector.load %arg2[%c0, %c0_0, %c0_1, %c0_2] : memref<1x16x16x128xf32, #tpu.memory_space<vmem>>, vector<1x16x16x128xf32>
    %1 = vector.shape_cast %0 : vector<1x16x16x128xf32> to vector<16x16x128xf32>
    %c0_3 = arith.constant 0 : index
    %c0_4 = arith.constant 0 : index
    %2 = vector.load %arg3[%c0_3, %c0_4] : memref<1x128xf32, #tpu.memory_space<vmem>>, vector<1x128xf32>
    %3 = vector.shape_cast %2 : vector<1x128xf32> to vector<1x1x128xf32>
    %4 = vector.broadcast %3 : vector<1x1x128xf32> to vector<16x16x128xf32>
    %5 = arith.mulf %1, %4 : vector<16x16x128xf32>
    %c0_5 = arith.constant 0 : index
    %c0_6 = arith.constant 0 : index
    %6 = vector.load %arg4[%c0_5, %c0_6] : memref<1x128xf32, #tpu.memory_space<vmem>>, vector<1x128xf32>
    %7 = vector.shape_cast %6 : vector<1x128xf32> to vector<1x1x128xf32>
    %8 = vector.broadcast %7 : vector<1x1x128xf32> to vector<16x16x128xf32>
    %9 = arith.addf %5, %8 : vector<16x16x128xf32>
    %cst = arith.constant 0.000000e+00 : f32
    %10 = vector.broadcast %cst : f32 to vector<16x16x128xf32>
    %11 = arith.maximumf %9, %10 : vector<16x16x128xf32>
    %12 = vector.shape_cast %11 : vector<16x16x128xf32> to vector<256x128xf32>
    %c0_7 = arith.constant 0 : index
    %c0_8 = arith.constant 0 : index
    %13 = vector.load %arg5[%c0_7, %c0_8] : memref<128x256xf32, #tpu.memory_space<vmem>>, vector<128x256xf32>
    %cst_9 = arith.constant dense<0.000000e+00> : vector<256x256xf32>
    %14 = tpu.matmul %12, %13, %cst_9 {dimension_numbers = #tpu.dot_dimension_numbers<[1], [0], [0], [1], [0, 0, 1, 1], [], []>} : vector<256x128xf32>, vector<128x256xf32>, vector<256x256xf32> -> vector<256x256xf32>
    %15 = vector.extract_strided_slice %14 {offsets = [0, 0], sizes = [256, 128], strides = [1, 1]} : vector<256x256xf32> to vector<256x128xf32>
    %16 = vector.extract_strided_slice %14 {offsets = [0, 128], sizes = [256, 128], strides = [1, 1]} : vector<256x256xf32> to vector<256x128xf32>
    %17 = vector.shape_cast %16 : vector<256x128xf32> to vector<1x16x16x128xf32>
    %c0_10 = arith.constant 0 : index
    %c0_11 = arith.constant 0 : index
    %c0_12 = arith.constant 0 : index
    %c0_13 = arith.constant 0 : index
    %18 = vector.load %arg9[%c0_10, %c0_11, %c0_12, %c0_13] : memref<1x16x16x128xf32, #tpu.memory_space<vmem>>, vector<1x16x16x128xf32>
    tpu.vector_store %arg9[%c0_10, %c0_11, %c0_12, %c0_13], %17 {strides = array<i32>} : memref<1x16x16x128xf32, #tpu.memory_space<vmem>>, vector<1x16x16x128xf32>,
    %19 = vector.shape_cast %15 : vector<256x128xf32> to vector<1x16x16x128xf32>
    %c0_14 = arith.constant 0 : index
    %c0_15 = arith.constant 0 : index
    %c0_16 = arith.constant 0 : index
    %c0_17 = arith.constant 0 : index
    %20 = vector.load %arg6[%c0_14, %c0_15, %c0_16, %c0_17] : memref<1x16x16x128xf32, #tpu.memory_space<vmem>>, vector<1x16x16x128xf32>
    tpu.vector_store %arg6[%c0_14, %c0_15, %c0_16, %c0_17], %19 {strides = array<i32>} : memref<1x16x16x128xf32, #tpu.memory_space<vmem>>, vector<1x16x16x128xf32>,
    %c0_i32 = arith.constant 0 : i32
    %21 = arith.cmpi eq, %arg1, %c0_i32 : i32
    %22 = arith.extui %21 : i1 to i32
    %c0_i32_18 = arith.constant 0 : i32
    %23 = arith.cmpi ne, %22, %c0_i32_18 : i32
    scf.if %23 {
      %cst_33 = arith.constant 0.000000e+00 : f32
      %37 = vector.broadcast %cst_33 : f32 to vector<1x1x128xf32>
      %c0_34 = arith.constant 0 : index
      %c0_35 = arith.constant 0 : index
      %c0_36 = arith.constant 0 : index
      %38 = vector.load %arg7[%c0_34, %c0_35, %c0_36] : memref<1x1x128xf32, #tpu.memory_space<vmem>>, vector<1x1x128xf32>
      tpu.vector_store %arg7[%c0_34, %c0_35, %c0_36], %37 {strides = array<i32>} : memref<1x1x128xf32, #tpu.memory_space<vmem>>, vector<1x1x128xf32>,
      %cst_37 = arith.constant 0.000000e+00 : f32
      %39 = vector.broadcast %cst_37 : f32 to vector<1x1x128xf32>
      %c0_38 = arith.constant 0 : index
      %c0_39 = arith.constant 0 : index
      %c0_40 = arith.constant 0 : index
      %40 = vector.load %arg8[%c0_38, %c0_39, %c0_40] : memref<1x1x128xf32, #tpu.memory_space<vmem>>, vector<1x1x128xf32>
      tpu.vector_store %arg8[%c0_38, %c0_39, %c0_40], %39 {strides = array<i32>} : memref<1x1x128xf32, #tpu.memory_space<vmem>>, vector<1x1x128xf32>,
    } else {
    }
    %c0_19 = arith.constant 0 : index
    %c0_20 = arith.constant 0 : index
    %c0_21 = arith.constant 0 : index
    %24 = vector.load %arg7[%c0_19, %c0_20, %c0_21] : memref<1x1x128xf32, #tpu.memory_space<vmem>>, vector<1x1x128xf32>
    %cst_22 = arith.constant dense<0.000000e+00> : vector<128xf32>
    %25 = vector.multi_reduction <add>, %15, %cst_22 [0] : vector<256x128xf32> to vector<128xf32>
    %26 = vector.shape_cast %25 : vector<128xf32> to vector<1x128xf32>
    %27 = vector.shape_cast %26 : vector<1x128xf32> to vector<1x1x128xf32>
    %28 = arith.addf %24, %27 : vector<1x1x128xf32>
    %c0_23 = arith.constant 0 : index
    %c0_24 = arith.constant 0 : index
    %c0_25 = arith.constant 0 : index
    %29 = vector.load %arg7[%c0_23, %c0_24, %c0_25] : memref<1x1x128xf32, #tpu.memory_space<vmem>>, vector<1x1x128xf32>
    tpu.vector_store %arg7[%c0_23, %c0_24, %c0_25], %28 {strides = array<i32>} : memref<1x1x128xf32, #tpu.memory_space<vmem>>, vector<1x1x128xf32>,
    %c0_26 = arith.constant 0 : index
    %c0_27 = arith.constant 0 : index
    %c0_28 = arith.constant 0 : index
    %30 = vector.load %arg8[%c0_26, %c0_27, %c0_28] : memref<1x1x128xf32, #tpu.memory_space<vmem>>, vector<1x1x128xf32>
    %31 = arith.mulf %15, %15 : vector<256x128xf32>
    %cst_29 = arith.constant dense<0.000000e+00> : vector<128xf32>
    %32 = vector.multi_reduction <add>, %31, %cst_29 [0] : vector<256x128xf32> to vector<128xf32>
    %33 = vector.shape_cast %32 : vector<128xf32> to vector<1x128xf32>
    %34 = vector.shape_cast %33 : vector<1x128xf32> to vector<1x1x128xf32>
    %35 = arith.addf %30, %34 : vector<1x1x128xf32>
    %c0_30 = arith.constant 0 : index
    %c0_31 = arith.constant 0 : index
    %c0_32 = arith.constant 0 : index
    %36 = vector.load %arg8[%c0_30, %c0_31, %c0_32] : memref<1x1x128xf32, #tpu.memory_space<vmem>>, vector<1x1x128xf32>
    tpu.vector_store %arg8[%c0_30, %c0_31, %c0_32], %35 {strides = array<i32>} : memref<1x1x128xf32, #tpu.memory_space<vmem>>, vector<1x1x128xf32>,
    return
  }
  func.func @transform_0(%arg0: i32, %arg1: i32) -> (i32, i32, i32, i32) {
    %c0_i32 = arith.constant 0 : i32
    %c0_i32_0 = arith.constant 0 : i32
    %c0_i32_1 = arith.constant 0 : i32
    return %arg0, %arg1, %c0_i32, %c0_i32_0 : i32, i32, i32, i32
  }
  func.func @transform_1(%arg0: i32, %arg1: i32) -> (i32, i32) {
    %c0_i32 = arith.constant 0 : i32
    %c0_i32_0 = arith.constant 0 : i32
    %c0_i32_1 = arith.constant 0 : i32
    return %c0_i32, %c0_i32_0 : i32, i32
  }
  func.func @transform_2(%arg0: i32, %arg1: i32) -> (i32, i32) {
    %c0_i32 = arith.constant 0 : i32
    %c0_i32_0 = arith.constant 0 : i32
    %c0_i32_1 = arith.constant 0 : i32
    return %c0_i32, %c0_i32_0 : i32, i32
  }
  func.func @transform_3(%arg0: i32, %arg1: i32) -> (i32, i32) {
    %c0_i32 = arith.constant 0 : i32
    %c0_i32_0 = arith.constant 0 : i32
    %c0_i32_1 = arith.constant 0 : i32
    return %c0_i32, %c0_i32_0 : i32, i32
  }
  func.func @transform_4(%arg0: i32, %arg1: i32) -> (i32, i32, i32, i32) {
    %c0_i32 = arith.constant 0 : i32
    %c0_i32_0 = arith.constant 0 : i32
    %c0_i32_1 = arith.constant 0 : i32
    return %arg0, %arg1, %c0_i32, %c0_i32_0 : i32, i32, i32, i32
  }
  func.func @transform_5(%arg0: i32, %arg1: i32) -> (i32, i32, i32) {
    %c0_i32 = arith.constant 0 : i32
    %c0_i32_0 = arith.constant 0 : i32
    %c0_i32_1 = arith.constant 0 : i32
    return %arg0, %c0_i32, %c0_i32_0 : i32, i32, i32
  }
  func.func @transform_6(%arg0: i32, %arg1: i32) -> (i32, i32, i32) {
    %c0_i32 = arith.constant 0 : i32
    %c0_i32_0 = arith.constant 0 : i32
    %c0_i32_1 = arith.constant 0 : i32
    return %arg0, %c0_i32, %c0_i32_0 : i32, i32, i32
  }
  func.func @transform_7(%arg0: i32, %arg1: i32) -> (i32, i32, i32, i32) {
    %c0_i32 = arith.constant 0 : i32
    %c0_i32_0 = arith.constant 0 : i32
    %c0_i32_1 = arith.constant 0 : i32
    return %arg0, %arg1, %c0_i32, %c0_i32_0 : i32, i32, i32, i32
  }
}

module attributes {stable_mosaic.version = 11 : i64} {
  func.func @_conv3_kernel(%arg0: i32, %arg1: i32, %arg2: memref<1x16x16x128xf32, #tpu.memory_space<vmem>>, %arg3: memref<1x128xf32, #tpu.memory_space<vmem>>, %arg4: memref<1x128xf32, #tpu.memory_space<vmem>>, %arg5: memref<128x128xf32, #tpu.memory_space<vmem>>, %arg6: memref<1x16x16x128xf32, #tpu.memory_space<vmem>>, %arg7: memref<1x16x16x128xf32, #tpu.memory_space<vmem>>) attributes {dimension_semantics = [#tpu.dimension_semantics<parallel>, #tpu.dimension_semantics<parallel>], iteration_bounds = array<i64: 2, 1>, scalar_prefetch = 0 : i64, scratch_operands = 0 : i64, tpu.core_type = #tpu.core_type<tc>, window_params = [{transform_indices = @transform_0, window_bounds = array<i64: 1, 16, 16, 128>}, {pipeline_mode = #tpu.pipeline_mode<synchronous>, transform_indices = @transform_1, window_bounds = array<i64: 1, 128>}, {pipeline_mode = #tpu.pipeline_mode<synchronous>, transform_indices = @transform_2, window_bounds = array<i64: 1, 128>}, {pipeline_mode = #tpu.pipeline_mode<synchronous>, transform_indices = @transform_3, window_bounds = array<i64: 128, 128>}, {transform_indices = @transform_4, window_bounds = array<i64: 1, 16, 16, 128>}, {transform_indices = @transform_5, window_bounds = array<i64: 1, 16, 16, 128>}]} {
    %c0 = arith.constant 0 : index
    %c0_0 = arith.constant 0 : index
    %c0_1 = arith.constant 0 : index
    %c0_2 = arith.constant 0 : index
    %0 = vector.load %arg2[%c0, %c0_0, %c0_1, %c0_2] : memref<1x16x16x128xf32, #tpu.memory_space<vmem>>, vector<1x16x16x128xf32>
    %1 = vector.shape_cast %0 : vector<1x16x16x128xf32> to vector<16x16x128xf32>
    %c0_3 = arith.constant 0 : index
    %c0_4 = arith.constant 0 : index
    %2 = vector.load %arg3[%c0_3, %c0_4] : memref<1x128xf32, #tpu.memory_space<vmem>>, vector<1x128xf32>
    %3 = vector.shape_cast %2 : vector<1x128xf32> to vector<1x1x128xf32>
    %4 = vector.broadcast %3 : vector<1x1x128xf32> to vector<16x16x128xf32>
    %5 = arith.mulf %1, %4 : vector<16x16x128xf32>
    %c0_5 = arith.constant 0 : index
    %c0_6 = arith.constant 0 : index
    %6 = vector.load %arg4[%c0_5, %c0_6] : memref<1x128xf32, #tpu.memory_space<vmem>>, vector<1x128xf32>
    %7 = vector.shape_cast %6 : vector<1x128xf32> to vector<1x1x128xf32>
    %8 = vector.broadcast %7 : vector<1x1x128xf32> to vector<16x16x128xf32>
    %9 = arith.addf %5, %8 : vector<16x16x128xf32>
    %cst = arith.constant 0.000000e+00 : f32
    %10 = vector.broadcast %cst : f32 to vector<16x16x128xf32>
    %11 = arith.maximumf %9, %10 : vector<16x16x128xf32>
    %12 = vector.shape_cast %11 : vector<16x16x128xf32> to vector<256x128xf32>
    %c0_7 = arith.constant 0 : index
    %c0_8 = arith.constant 0 : index
    %13 = vector.load %arg5[%c0_7, %c0_8] : memref<128x128xf32, #tpu.memory_space<vmem>>, vector<128x128xf32>
    %cst_9 = arith.constant dense<0.000000e+00> : vector<256x128xf32>
    %14 = tpu.matmul %12, %13, %cst_9 {dimension_numbers = #tpu.dot_dimension_numbers<[1], [0], [0], [1], [0, 0, 1, 1], [], []>} : vector<256x128xf32>, vector<128x128xf32>, vector<256x128xf32> -> vector<256x128xf32>
    %15 = vector.shape_cast %14 : vector<256x128xf32> to vector<1x16x16x128xf32>
    %c0_10 = arith.constant 0 : index
    %c0_11 = arith.constant 0 : index
    %c0_12 = arith.constant 0 : index
    %c0_13 = arith.constant 0 : index
    %16 = vector.load %arg6[%c0_10, %c0_11, %c0_12, %c0_13] : memref<1x16x16x128xf32, #tpu.memory_space<vmem>>, vector<1x16x16x128xf32>
    %17 = arith.addf %15, %16 : vector<1x16x16x128xf32>
    %c0_14 = arith.constant 0 : index
    %c0_15 = arith.constant 0 : index
    %c0_16 = arith.constant 0 : index
    %c0_17 = arith.constant 0 : index
    %18 = vector.load %arg7[%c0_14, %c0_15, %c0_16, %c0_17] : memref<1x16x16x128xf32, #tpu.memory_space<vmem>>, vector<1x16x16x128xf32>
    tpu.vector_store %arg7[%c0_14, %c0_15, %c0_16, %c0_17], %17 {strides = array<i32>} : memref<1x16x16x128xf32, #tpu.memory_space<vmem>>, vector<1x16x16x128xf32>,
    return
  }
  func.func @transform_0(%arg0: i32, %arg1: i32) -> (i32, i32, i32, i32) {
    %c0_i32 = arith.constant 0 : i32
    %c0_i32_0 = arith.constant 0 : i32
    %c0_i32_1 = arith.constant 0 : i32
    return %arg0, %arg1, %c0_i32, %c0_i32_0 : i32, i32, i32, i32
  }
  func.func @transform_1(%arg0: i32, %arg1: i32) -> (i32, i32) {
    %c0_i32 = arith.constant 0 : i32
    %c0_i32_0 = arith.constant 0 : i32
    %c0_i32_1 = arith.constant 0 : i32
    return %c0_i32, %c0_i32_0 : i32, i32
  }
  func.func @transform_2(%arg0: i32, %arg1: i32) -> (i32, i32) {
    %c0_i32 = arith.constant 0 : i32
    %c0_i32_0 = arith.constant 0 : i32
    %c0_i32_1 = arith.constant 0 : i32
    return %c0_i32, %c0_i32_0 : i32, i32
  }
  func.func @transform_3(%arg0: i32, %arg1: i32) -> (i32, i32) {
    %c0_i32 = arith.constant 0 : i32
    %c0_i32_0 = arith.constant 0 : i32
    %c0_i32_1 = arith.constant 0 : i32
    return %c0_i32, %c0_i32_0 : i32, i32
  }
  func.func @transform_4(%arg0: i32, %arg1: i32) -> (i32, i32, i32, i32) {
    %c0_i32 = arith.constant 0 : i32
    %c0_i32_0 = arith.constant 0 : i32
    %c0_i32_1 = arith.constant 0 : i32
    return %arg0, %arg1, %c0_i32, %c0_i32_0 : i32, i32, i32, i32
  }
  func.func @transform_5(%arg0: i32, %arg1: i32) -> (i32, i32, i32, i32) {
    %c0_i32 = arith.constant 0 : i32
    %c0_i32_0 = arith.constant 0 : i32
    %c0_i32_1 = arith.constant 0 : i32
    return %arg0, %arg1, %c0_i32, %c0_i32_0 : i32, i32, i32, i32
  }
}

module attributes {stable_mosaic.version = 11 : i64} {
  func.func @_conv2_kernel(%arg0: i32, %arg1: memref<1x16x16x128xf32, #tpu.memory_space<vmem>>, %arg2: memref<1x128xf32, #tpu.memory_space<vmem>>, %arg3: memref<1x128xf32, #tpu.memory_space<vmem>>, %arg4: memref<3x384x128xf32, #tpu.memory_space<vmem>>, %arg5: memref<1x16x16x128xf32, #tpu.memory_space<vmem>>, %arg6: memref<1x1x128xf32, #tpu.memory_space<vmem>>, %arg7: memref<1x1x128xf32, #tpu.memory_space<vmem>>, %arg8: memref<18x18x128xf32, #tpu.memory_space<vmem>>, %arg9: memref<256x128xf32, #tpu.memory_space<vmem>>) attributes {dimension_semantics = [#tpu.dimension_semantics<parallel>], iteration_bounds = array<i64: 2>, scalar_prefetch = 0 : i64, scratch_operands = 2 : i64, tpu.core_type = #tpu.core_type<tc>, window_params = [{transform_indices = @transform_0, window_bounds = array<i64: 1, 16, 16, 128>}, {pipeline_mode = #tpu.pipeline_mode<synchronous>, transform_indices = @transform_1, window_bounds = array<i64: 1, 128>}, {pipeline_mode = #tpu.pipeline_mode<synchronous>, transform_indices = @transform_2, window_bounds = array<i64: 1, 128>}, {pipeline_mode = #tpu.pipeline_mode<synchronous>, transform_indices = @transform_3, window_bounds = array<i64: 3, 384, 128>}, {transform_indices = @transform_4, window_bounds = array<i64: 1, 16, 16, 128>}, {transform_indices = @transform_5, window_bounds = array<i64: 1, 1, 128>}, {transform_indices = @transform_6, window_bounds = array<i64: 1, 1, 128>}]} {
    %c0 = arith.constant 0 : index
    %c0_0 = arith.constant 0 : index
    %c0_1 = arith.constant 0 : index
    %c0_2 = arith.constant 0 : index
    %0 = vector.load %arg1[%c0, %c0_0, %c0_1, %c0_2] : memref<1x16x16x128xf32, #tpu.memory_space<vmem>>, vector<1x16x16x128xf32>
    %1 = vector.shape_cast %0 : vector<1x16x16x128xf32> to vector<16x16x128xf32>
    %c0_3 = arith.constant 0 : index
    %c0_4 = arith.constant 0 : index
    %2 = vector.load %arg2[%c0_3, %c0_4] : memref<1x128xf32, #tpu.memory_space<vmem>>, vector<1x128xf32>
    %3 = vector.shape_cast %2 : vector<1x128xf32> to vector<1x1x128xf32>
    %4 = vector.broadcast %3 : vector<1x1x128xf32> to vector<16x16x128xf32>
    %5 = arith.mulf %1, %4 : vector<16x16x128xf32>
    %c0_5 = arith.constant 0 : index
    %c0_6 = arith.constant 0 : index
    %6 = vector.load %arg3[%c0_5, %c0_6] : memref<1x128xf32, #tpu.memory_space<vmem>>, vector<1x128xf32>
    %7 = vector.shape_cast %6 : vector<1x128xf32> to vector<1x1x128xf32>
    %8 = vector.broadcast %7 : vector<1x1x128xf32> to vector<16x16x128xf32>
    %9 = arith.addf %5, %8 : vector<16x16x128xf32>
    %cst = arith.constant 0.000000e+00 : f32
    %10 = vector.broadcast %cst : f32 to vector<16x16x128xf32>
    %11 = arith.maximumf %9, %10 : vector<16x16x128xf32>
    %c1 = arith.constant 1 : index
    %c1_7 = arith.constant 1 : index
    %c0_8 = arith.constant 0 : index
    %12 = vector.load %arg8[%c1, %c1_7, %c0_8] : memref<18x18x128xf32, #tpu.memory_space<vmem>>, vector<16x16x128xf32>
    tpu.vector_store %arg8[%c1, %c1_7, %c0_8], %11 {strides = array<i32>} : memref<18x18x128xf32, #tpu.memory_space<vmem>>, vector<16x16x128xf32>,
    %cst_9 = arith.constant 0.000000e+00 : f32
    %13 = vector.broadcast %cst_9 : f32 to vector<1x18x128xf32>
    %c0_10 = arith.constant 0 : index
    %c0_11 = arith.constant 0 : index
    %c0_12 = arith.constant 0 : index
    %14 = vector.load %arg8[%c0_10, %c0_11, %c0_12] : memref<18x18x128xf32, #tpu.memory_space<vmem>>, vector<1x18x128xf32>
    tpu.vector_store %arg8[%c0_10, %c0_11, %c0_12], %13 {strides = array<i32>} : memref<18x18x128xf32, #tpu.memory_space<vmem>>, vector<1x18x128xf32>,
    %c17 = arith.constant 17 : index
    %c0_13 = arith.constant 0 : index
    %c0_14 = arith.constant 0 : index
    %15 = vector.load %arg8[%c17, %c0_13, %c0_14] : memref<18x18x128xf32, #tpu.memory_space<vmem>>, vector<1x18x128xf32>
    tpu.vector_store %arg8[%c17, %c0_13, %c0_14], %13 {strides = array<i32>} : memref<18x18x128xf32, #tpu.memory_space<vmem>>, vector<1x18x128xf32>,
    %cst_15 = arith.constant 0.000000e+00 : f32
    %16 = vector.broadcast %cst_15 : f32 to vector<16x1x128xf32>
    %c1_16 = arith.constant 1 : index
    %c0_17 = arith.constant 0 : index
    %c0_18 = arith.constant 0 : index
    %17 = vector.load %arg8[%c1_16, %c0_17, %c0_18] : memref<18x18x128xf32, #tpu.memory_space<vmem>>, vector<16x1x128xf32>
    tpu.vector_store %arg8[%c1_16, %c0_17, %c0_18], %16 {strides = array<i32>} : memref<18x18x128xf32, #tpu.memory_space<vmem>>, vector<16x1x128xf32>,
    %c1_19 = arith.constant 1 : index
    %c17_20 = arith.constant 17 : index
    %c0_21 = arith.constant 0 : index
    %18 = vector.load %arg8[%c1_19, %c17_20, %c0_21] : memref<18x18x128xf32, #tpu.memory_space<vmem>>, vector<16x1x128xf32>
    tpu.vector_store %arg8[%c1_19, %c17_20, %c0_21], %16 {strides = array<i32>} : memref<18x18x128xf32, #tpu.memory_space<vmem>>, vector<16x1x128xf32>,
    %c0_22 = arith.constant 0 : index
    %c0_23 = arith.constant 0 : index
    %c0_24 = arith.constant 0 : index
    %19 = vector.load %arg8[%c0_22, %c0_23, %c0_24] : memref<18x18x128xf32, #tpu.memory_space<vmem>>, vector<16x18x128xf32>
    %20 = vector.extract_strided_slice %19 {offsets = [0, 0, 0], sizes = [16, 16, 128], strides = [1, 1, 1]} : vector<16x18x128xf32> to vector<16x16x128xf32>
    %21 = vector.extract_strided_slice %19 {offsets = [0, 1, 0], sizes = [16, 16, 128], strides = [1, 1, 1]} : vector<16x18x128xf32> to vector<16x16x128xf32>
    %22 = vector.extract_strided_slice %19 {offsets = [0, 2, 0], sizes = [16, 16, 128], strides = [1, 1, 1]} : vector<16x18x128xf32> to vector<16x16x128xf32>
    %23 = tpu.concatenate %20, %21, %22 in 2 : vector<16x16x128xf32>, vector<16x16x128xf32>, vector<16x16x128xf32> -> vector<16x16x384xf32>
    %24 = vector.shape_cast %23 : vector<16x16x384xf32> to vector<256x384xf32>
    %c0_25 = arith.constant 0 : index
    %c0_26 = arith.constant 0 : index
    %c0_27 = arith.constant 0 : index
    %25 = vector.load %arg4[%c0_25, %c0_26, %c0_27] : memref<3x384x128xf32, #tpu.memory_space<vmem>>, vector<1x384x128xf32>
    %26 = vector.shape_cast %25 : vector<1x384x128xf32> to vector<384x128xf32>
    %cst_28 = arith.constant dense<0.000000e+00> : vector<256x128xf32>
    %27 = tpu.matmul %24, %26, %cst_28 {dimension_numbers = #tpu.dot_dimension_numbers<[1], [0], [0], [1], [0, 0, 1, 1], [], []>} : vector<256x384xf32>, vector<384x128xf32>, vector<256x128xf32> -> vector<256x128xf32>
    %c0_29 = arith.constant 0 : index
    %c0_30 = arith.constant 0 : index
    %28 = vector.load %arg9[%c0_29, %c0_30] : memref<256x128xf32, #tpu.memory_space<vmem>>, vector<256x128xf32>
    tpu.vector_store %arg9[%c0_29, %c0_30], %27 {strides = array<i32>} : memref<256x128xf32, #tpu.memory_space<vmem>>, vector<256x128xf32>,
    %c1_31 = arith.constant 1 : index
    %c0_32 = arith.constant 0 : index
    %c0_33 = arith.constant 0 : index
    %29 = vector.load %arg8[%c1_31, %c0_32, %c0_33] : memref<18x18x128xf32, #tpu.memory_space<vmem>>, vector<16x18x128xf32>
    %30 = vector.extract_strided_slice %29 {offsets = [0, 0, 0], sizes = [16, 16, 128], strides = [1, 1, 1]} : vector<16x18x128xf32> to vector<16x16x128xf32>
    %31 = vector.extract_strided_slice %29 {offsets = [0, 1, 0], sizes = [16, 16, 128], strides = [1, 1, 1]} : vector<16x18x128xf32> to vector<16x16x128xf32>
    %32 = vector.extract_strided_slice %29 {offsets = [0, 2, 0], sizes = [16, 16, 128], strides = [1, 1, 1]} : vector<16x18x128xf32> to vector<16x16x128xf32>
    %33 = tpu.concatenate %30, %31, %32 in 2 : vector<16x16x128xf32>, vector<16x16x128xf32>, vector<16x16x128xf32> -> vector<16x16x384xf32>
    %34 = vector.shape_cast %33 : vector<16x16x384xf32> to vector<256x384xf32>
    %c1_34 = arith.constant 1 : index
    %c0_35 = arith.constant 0 : index
    %c0_36 = arith.constant 0 : index
    %35 = vector.load %arg4[%c1_34, %c0_35, %c0_36] : memref<3x384x128xf32, #tpu.memory_space<vmem>>, vector<1x384x128xf32>
    %36 = vector.shape_cast %35 : vector<1x384x128xf32> to vector<384x128xf32>
    %cst_37 = arith.constant dense<0.000000e+00> : vector<256x128xf32>
    %37 = tpu.matmul %34, %36, %cst_37 {dimension_numbers = #tpu.dot_dimension_numbers<[1], [0], [0], [1], [0, 0, 1, 1], [], []>} : vector<256x384xf32>, vector<384x128xf32>, vector<256x128xf32> -> vector<256x128xf32>
    %c0_38 = arith.constant 0 : index
    %c0_39 = arith.constant 0 : index
    %38 = vector.load %arg9[%c0_38, %c0_39] : memref<256x128xf32, #tpu.memory_space<vmem>>, vector<256x128xf32>
    %39 = arith.addf %38, %37 : vector<256x128xf32>
    %c0_40 = arith.constant 0 : index
    %c0_41 = arith.constant 0 : index
    %40 = vector.load %arg9[%c0_40, %c0_41] : memref<256x128xf32, #tpu.memory_space<vmem>>, vector<256x128xf32>
    tpu.vector_store %arg9[%c0_40, %c0_41], %39 {strides = array<i32>} : memref<256x128xf32, #tpu.memory_space<vmem>>, vector<256x128xf32>,
    %c2 = arith.constant 2 : index
    %c0_42 = arith.constant 0 : index
    %c0_43 = arith.constant 0 : index
    %41 = vector.load %arg8[%c2, %c0_42, %c0_43] : memref<18x18x128xf32, #tpu.memory_space<vmem>>, vector<16x18x128xf32>
    %42 = vector.extract_strided_slice %41 {offsets = [0, 0, 0], sizes = [16, 16, 128], strides = [1, 1, 1]} : vector<16x18x128xf32> to vector<16x16x128xf32>
    %43 = vector.extract_strided_slice %41 {offsets = [0, 1, 0], sizes = [16, 16, 128], strides = [1, 1, 1]} : vector<16x18x128xf32> to vector<16x16x128xf32>
    %44 = vector.extract_strided_slice %41 {offsets = [0, 2, 0], sizes = [16, 16, 128], strides = [1, 1, 1]} : vector<16x18x128xf32> to vector<16x16x128xf32>
    %45 = tpu.concatenate %42, %43, %44 in 2 : vector<16x16x128xf32>, vector<16x16x128xf32>, vector<16x16x128xf32> -> vector<16x16x384xf32>
    %46 = vector.shape_cast %45 : vector<16x16x384xf32> to vector<256x384xf32>
    %c2_44 = arith.constant 2 : index
    %c0_45 = arith.constant 0 : index
    %c0_46 = arith.constant 0 : index
    %47 = vector.load %arg4[%c2_44, %c0_45, %c0_46] : memref<3x384x128xf32, #tpu.memory_space<vmem>>, vector<1x384x128xf32>
    %48 = vector.shape_cast %47 : vector<1x384x128xf32> to vector<384x128xf32>
    %cst_47 = arith.constant dense<0.000000e+00> : vector<256x128xf32>
    %49 = tpu.matmul %46, %48, %cst_47 {dimension_numbers = #tpu.dot_dimension_numbers<[1], [0], [0], [1], [0, 0, 1, 1], [], []>} : vector<256x384xf32>, vector<384x128xf32>, vector<256x128xf32> -> vector<256x128xf32>
    %c0_48 = arith.constant 0 : index
    %c0_49 = arith.constant 0 : index
    %50 = vector.load %arg9[%c0_48, %c0_49] : memref<256x128xf32, #tpu.memory_space<vmem>>, vector<256x128xf32>
    %51 = arith.addf %50, %49 : vector<256x128xf32>
    %c0_50 = arith.constant 0 : index
    %c0_51 = arith.constant 0 : index
    %52 = vector.load %arg9[%c0_50, %c0_51] : memref<256x128xf32, #tpu.memory_space<vmem>>, vector<256x128xf32>
    tpu.vector_store %arg9[%c0_50, %c0_51], %51 {strides = array<i32>} : memref<256x128xf32, #tpu.memory_space<vmem>>, vector<256x128xf32>,
    %c0_52 = arith.constant 0 : index
    %c0_53 = arith.constant 0 : index
    %53 = vector.load %arg9[%c0_52, %c0_53] : memref<256x128xf32, #tpu.memory_space<vmem>>, vector<256x128xf32>
    %54 = vector.shape_cast %53 : vector<256x128xf32> to vector<1x16x16x128xf32>
    %c0_54 = arith.constant 0 : index
    %c0_55 = arith.constant 0 : index
    %c0_56 = arith.constant 0 : index
    %c0_57 = arith.constant 0 : index
    %55 = vector.load %arg5[%c0_54, %c0_55, %c0_56, %c0_57] : memref<1x16x16x128xf32, #tpu.memory_space<vmem>>, vector<1x16x16x128xf32>
    tpu.vector_store %arg5[%c0_54, %c0_55, %c0_56, %c0_57], %54 {strides = array<i32>} : memref<1x16x16x128xf32, #tpu.memory_space<vmem>>, vector<1x16x16x128xf32>,
    %cst_58 = arith.constant dense<0.000000e+00> : vector<128xf32>
    %56 = vector.multi_reduction <add>, %53, %cst_58 [0] : vector<256x128xf32> to vector<128xf32>
    %57 = vector.shape_cast %56 : vector<128xf32> to vector<1x128xf32>
    %58 = vector.shape_cast %57 : vector<1x128xf32> to vector<1x1x128xf32>
    %c0_59 = arith.constant 0 : index
    %c0_60 = arith.constant 0 : index
    %c0_61 = arith.constant 0 : index
    %59 = vector.load %arg6[%c0_59, %c0_60, %c0_61] : memref<1x1x128xf32, #tpu.memory_space<vmem>>, vector<1x1x128xf32>
    tpu.vector_store %arg6[%c0_59, %c0_60, %c0_61], %58 {strides = array<i32>} : memref<1x1x128xf32, #tpu.memory_space<vmem>>, vector<1x1x128xf32>,
    %60 = arith.mulf %53, %53 : vector<256x128xf32>
    %cst_62 = arith.constant dense<0.000000e+00> : vector<128xf32>
    %61 = vector.multi_reduction <add>, %60, %cst_62 [0] : vector<256x128xf32> to vector<128xf32>
    %62 = vector.shape_cast %61 : vector<128xf32> to vector<1x128xf32>
    %63 = vector.shape_cast %62 : vector<1x128xf32> to vector<1x1x128xf32>
    %c0_63 = arith.constant 0 : index
    %c0_64 = arith.constant 0 : index
    %c0_65 = arith.constant 0 : index
    %64 = vector.load %arg7[%c0_63, %c0_64, %c0_65] : memref<1x1x128xf32, #tpu.memory_space<vmem>>, vector<1x1x128xf32>
    tpu.vector_store %arg7[%c0_63, %c0_64, %c0_65], %63 {strides = array<i32>} : memref<1x1x128xf32, #tpu.memory_space<vmem>>, vector<1x1x128xf32>,
    return
  }
  func.func @transform_0(%arg0: i32) -> (i32, i32, i32, i32) {
    %c0_i32 = arith.constant 0 : i32
    %c0_i32_0 = arith.constant 0 : i32
    %c0_i32_1 = arith.constant 0 : i32
    %c0_i32_2 = arith.constant 0 : i32
    return %arg0, %c0_i32, %c0_i32_0, %c0_i32_1 : i32, i32, i32, i32
  }
  func.func @transform_1(%arg0: i32) -> (i32, i32) {
    %c0_i32 = arith.constant 0 : i32
    %c0_i32_0 = arith.constant 0 : i32
    %c0_i32_1 = arith.constant 0 : i32
    return %c0_i32, %c0_i32_0 : i32, i32
  }
  func.func @transform_2(%arg0: i32) -> (i32, i32) {
    %c0_i32 = arith.constant 0 : i32
    %c0_i32_0 = arith.constant 0 : i32
    %c0_i32_1 = arith.constant 0 : i32
    return %c0_i32, %c0_i32_0 : i32, i32
  }
  func.func @transform_3(%arg0: i32) -> (i32, i32, i32) {
    %c0_i32 = arith.constant 0 : i32
    %c0_i32_0 = arith.constant 0 : i32
    %c0_i32_1 = arith.constant 0 : i32
    %c0_i32_2 = arith.constant 0 : i32
    return %c0_i32, %c0_i32_0, %c0_i32_1 : i32, i32, i32
  }
  func.func @transform_4(%arg0: i32) -> (i32, i32, i32, i32) {
    %c0_i32 = arith.constant 0 : i32
    %c0_i32_0 = arith.constant 0 : i32
    %c0_i32_1 = arith.constant 0 : i32
    %c0_i32_2 = arith.constant 0 : i32
    return %arg0, %c0_i32, %c0_i32_0, %c0_i32_1 : i32, i32, i32, i32
  }
  func.func @transform_5(%arg0: i32) -> (i32, i32, i32) {
    %c0_i32 = arith.constant 0 : i32
    %c0_i32_0 = arith.constant 0 : i32
    %c0_i32_1 = arith.constant 0 : i32
    return %arg0, %c0_i32, %c0_i32_0 : i32, i32, i32
  }
  func.func @transform_6(%arg0: i32) -> (i32, i32, i32) {
    %c0_i32 = arith.constant 0 : i32
    %c0_i32_0 = arith.constant 0 : i32
    %c0_i32_1 = arith.constant 0 : i32
    return %arg0, %c0_i32, %c0_i32_0 : i32, i32, i32
  }
}

</mosaic_0001>

<bundles_post_ra>
// kernel: preact_bottleneck.4
= control target key start
LH: loop header
LB: loop body
LE: loop exit
PB: predicated region body
PF: predicated region fallthrough
CT: control target
= control target key end

     0   :  { %s494_s9 = smov 0   ;;  %s496_s10 = smov 0   ;;  %s574_s0 = inlined_call_operand.vmem [shape: f32[2,16,16,128], index: 0, kind: input, shape index: {}]   ;;  %s575_s1 = inlined_call_operand.vmem [shape: f32[2,1,128], index: 1, kind: output, shape index: {0}]   ;;  %s576_s2 = inlined_call_operand.vmem [shape: f32[2,1,128], index: 2, kind: output, shape index: {1}]  }
   0x1   :  { %s498_s11 = smov 0  }
   0x2 LB: > { %s25_s12 = sadd.s32 1, %s472_s10  ;;  %p423_p0 = scmp.ge.s32.totalorder %s476_s11, 1  ;;  %s476_s11 = sphi %s498_s11, %s13_s11   ;;  %s472_s10 = sphi %s496_s10, %s578_s10   ;;  %s468_s9 = sphi %s494_s9, %s577_s9  }
   0x3   : > { %p27_p1 = scmp.ge.s32.totalorder %s25_s12, 2  ;;  %p135_p2 = scmp.lt.s32.totalorder %s476_s11, 3 }
   0x5   : > { %s580_s12 = smov (%p27_p1, %s25_s12), 0  ;;  %p136_p3 = pnand %p423_p0, %p135_p2 }
   0x6   : > { %p164_p4 = scmp.lt.s32.totalorder (!%p136_p3), %s468_s9, 1 }
   0x7   : > { %139 = sbr.rel (%p136_p3) target bundleno = 95 (0x5f), region = 24 }
   0xc   : > { %s582_s9 = smov (!%p164_p4, %s468_s9), 1  ;;  %v478_v0 = vmov 0.0  }
   0xd   : > { %s428_s13 = sshll.u32 %s582_s9, 8  ;;  %s515_s16 = scalar_lea.vmem %s575_s1, %s582_s9 }
   0xe   : > { %s520_s19 = scalar_lea.vmem %s574_s0, %s428_s13  ;;  %184 = vst [vmem:[%s515_s16] sm:$0x1] %v478_v0  ;;  %s526_s22 = scalar_lea.vmem %s576_s2, %s582_s9 }
   0xf   : > { %185 = vst [vmem:[%s526_s22] sm:$0x1] %v478_v0  ;;  %v186_v1 = vld [vmem:[%s520_s19] sm:$0xff]  ;;  %v187_v2 = vld [vmem:[%s520_s19 + $0x8] sm:$0xff]  ;;  %v188_v3 = vld [vmem:[%s520_s19 + $0x10] sm:$0xff] }
  0x10   : > { %v189_v4 = vld [vmem:[%s520_s19 + $0x18] sm:$0xff]  ;;  %v219_v5 = vadd.f32 %v187_v2, %v186_v1  ;;  %v259_v6 = vmul.f32 %v186_v1, %v186_v1  ;;  %v260_v7 = vmul.f32 %v187_v2, %v187_v2  ;;  %v261_v8 = vmul.f32 %v188_v3, %v188_v3  ;;  %v190_v9 = vld [vmem:[%s520_s19 + $0x20] sm:$0xff]  ;;  %v191_v13 = vld [vmem:[%s520_s19 + $0x28] sm:$0xff] }
  0x11   : > { %v262_v11 = vmul.f32 %v189_v4, %v189_v4  ;;  %v263_v15 = vmul.f32 %v190_v9, %v190_v9  ;;  %v192_v17 = vld [vmem:[%s520_s19 + $0x30] sm:$0xff]  ;;  %v264_v19 = vmul.f32 %v191_v13, %v191_v13  ;;  %v193_v21 = vld [vmem:[%s520_s19 + $0x38] sm:$0xff]  ;;  %v194_v25 = vld [vmem:[%s520_s19 + $0x40] sm:$0xff] }
  0x12   : > { %v220_v10 = vadd.f32 %v219_v5, %v188_v3  ;;  %v291_v12 = vadd.f32 %v260_v7, %v259_v6  ;;  %v265_v23 = vmul.f32 %v192_v17, %v192_v17  ;;  %v266_v27 = vmul.f32 %v193_v21, %v193_v21  ;;  %v195_v29 = vld [vmem:[%s520_s19 + $0x48] sm:$0xff]  ;;  %v196_v33 = vld [vmem:[%s520_s19 + $0x50] sm:$0xff]  ;;  %v197_v37 = vld [vmem:[%s520_s19 + $0x58] sm:$0xff] }
  0x13   : > { %v267_v31 = vmul.f32 %v194_v25, %v194_v25  ;;  %v268_v35 = vmul.f32 %v195_v29, %v195_v29  ;;  %v269_v39 = vmul.f32 %v196_v33, %v196_v33  ;;  %v198_v41 = vld [vmem:[%s520_s19 + $0x60] sm:$0xff]  ;;  %v270_v43 = vmul.f32 %v197_v37, %v197_v37  ;;  %v199_v45 = vld [vmem:[%s520_s19 + $0x68] sm:$0xff]  ;;  %v200_v49 = vld [vmem:[%s520_s19 + $0x70] sm:$0xff] }
  0x14   : > { %v221_v14 = vadd.f32 %v220_v10, %v189_v4  ;;  %v292_v16 = vadd.f32 %v291_v12, %v261_v8  ;;  %v271_v47 = vmul.f32 %v198_v41, %v198_v41  ;;  %v272_v51 = vmul.f32 %v199_v45, %v199_v45  ;;  %v201_v53 = vld [vmem:[%s520_s19 + $0x78] sm:$0xff]  ;;  %v202_v57 = vld [vmem:[%s520_s19 + $0x80] sm:$0xff]  ;;  %v203_v61 = vld [vmem:[%s520_s19 + $0x88] sm:$0xff] }
  0x15   : > { %v273_v55 = vmul.f32 %v200_v49, %v200_v49  ;;  %v274_v59 = vmul.f32 %v201_v53, %v201_v53  ;;  %v275_v63 = vmul.f32 %v202_v57, %v202_v57  ;;  %v204_v1 = vld [vmem:[%s520_s19 + $0x90] sm:$0xff]  ;;  %v276_v3 = vmul.f32 %v203_v61, %v203_v61  ;;  %v205_v5 = vld [vmem:[%s520_s19 + $0x98] sm:$0xff] }
  0x16   : > { %v222_v18 = vadd.f32 %v221_v14, %v190_v9  ;;  %v293_v20 = vadd.f32 %v292_v16, %v262_v11  ;;  %v277_v7 = vmul.f32 %v204_v1, %v204_v1  ;;  %v206_v9 = vld [vmem:[%s520_s19 + $0xa0] sm:$0xff]  ;;  %v278_v11 = vmul.f32 %v205_v5, %v205_v5 }
  0x18   : > { %v223_v22 = vadd.f32 %v222_v18, %v191_v13  ;;  %v294_v24 = vadd.f32 %v293_v20, %v263_v15  ;;  %v207_v13 = vld [vmem:[%s520_s19 + $0xa8] sm:$0xff]  ;;  %v279_v15 = vmul.f32 %v206_v9, %v206_v9 }
  0x1a   : > { %v224_v26 = vadd.f32 %v223_v22, %v192_v17  ;;  %v295_v28 = vadd.f32 %v294_v24, %v264_v19  ;;  %v208_v17 = vld [vmem:[%s520_s19 + $0xb0] sm:$0xff]  ;;  %v280_v19 = vmul.f32 %v207_v13, %v207_v13 }
  0x1c   : > { %v225_v30 = vadd.f32 %v224_v26, %v193_v21  ;;  %v296_v32 = vadd.f32 %v295_v28, %v265_v23  ;;  %v209_v21 = vld [vmem:[%s520_s19 + $0xb8] sm:$0xff]  ;;  %v281_v23 = vmul.f32 %v208_v17, %v208_v17 }
  0x1e   : > { %v226_v34 = vadd.f32 %v225_v30, %v194_v25  ;;  %v297_v36 = vadd.f32 %v296_v32, %v266_v27  ;;  %v210_v25 = vld [vmem:[%s520_s19 + $0xc0] sm:$0xff]  ;;  %v282_v27 = vmul.f32 %v209_v21, %v209_v21 }
  0x20   : > { %v227_v38 = vadd.f32 %v226_v34, %v195_v29  ;;  %v298_v40 = vadd.f32 %v297_v36, %v267_v31  ;;  %v211_v29 = vld [vmem:[%s520_s19 + $0xc8] sm:$0xff]  ;;  %v283_v31 = vmul.f32 %v210_v25, %v210_v25 }
  0x22   : > { %v228_v42 = vadd.f32 %v227_v38, %v196_v33  ;;  %v299_v44 = vadd.f32 %v298_v40, %v268_v35  ;;  %v212_v33 = vld [vmem:[%s520_s19 + $0xd0] sm:$0xff]  ;;  %v284_v35 = vmul.f32 %v211_v29, %v211_v29 }
  0x24   : > { %v229_v46 = vadd.f32 %v228_v42, %v197_v37  ;;  %v300_v48 = vadd.f32 %v299_v44, %v269_v39  ;;  %v213_v37 = vld [vmem:[%s520_s19 + $0xd8] sm:$0xff]  ;;  %v285_v39 = vmul.f32 %v212_v33, %v212_v33 }
  0x26   : > { %v230_v50 = vadd.f32 %v229_v46, %v198_v41  ;;  %v301_v52 = vadd.f32 %v300_v48, %v270_v43  ;;  %v214_v41 = vld [vmem:[%s520_s19 + $0xe0] sm:$0xff]  ;;  %v286_v43 = vmul.f32 %v213_v37, %v213_v37 }
  0x28   : > { %v231_v54 = vadd.f32 %v230_v50, %v199_v45  ;;  %v302_v56 = vadd.f32 %v301_v52, %v271_v47  ;;  %v215_v45 = vld [vmem:[%s520_s19 + $0xe8] sm:$0xff]  ;;  %v287_v47 = vmul.f32 %v214_v41, %v214_v41 }
  0x2a   : > { %v232_v58 = vadd.f32 %v231_v54, %v200_v49  ;;  %v303_v60 = vadd.f32 %v302_v56, %v272_v51  ;;  %v216_v49 = vld [vmem:[%s520_s19 + $0xf0] sm:$0xff]  ;;  %v288_v51 = vmul.f32 %v215_v45, %v215_v45 }
  0x2c   : > { %v233_v62 = vadd.f32 %v232_v58, %v201_v53  ;;  %v304_v0 = vadd.f32 %v303_v60, %v273_v55  ;;  %v217_v53 = vld [vmem:[%s520_s19 + $0xf8] sm:$0xff]  ;;  %v289_v55 = vmul.f32 %v216_v49, %v216_v49 }
  0x2d   : > { %v290_v58 = vmul.f32 %v217_v53, %v217_v53 }
  0x2e   : > { %v234_v2 = vadd.f32 %v233_v62, %v202_v57  ;;  %v305_v4 = vadd.f32 %v304_v0, %v274_v59 }
  0x30   : > { %v235_v6 = vadd.f32 %v234_v2, %v203_v61  ;;  %v306_v8 = vadd.f32 %v305_v4, %v275_v63 }
  0x32   : > { %v236_v10 = vadd.f32 %v235_v6, %v204_v1  ;;  %v307_v12 = vadd.f32 %v306_v8, %v276_v3 }
  0x34   : > { %v237_v14 = vadd.f32 %v236_v10, %v205_v5  ;;  %v308_v16 = vadd.f32 %v307_v12, %v277_v7  ;;  %v218_v7 = vld [vmem:[%s515_s16] sm:$0x1] }
  0x35   : > { %v258_v12 = vld [vmem:[%s526_s22] sm:$0x1] }
  0x36   : > { %v238_v18 = vadd.f32 %v237_v14, %v206_v9  ;;  %v309_v20 = vadd.f32 %v308_v16, %v278_v11 }
  0x38   : > { %v239_v22 = vadd.f32 %v238_v18, %v207_v13  ;;  %v310_v24 = vadd.f32 %v309_v20, %v279_v15 }
  0x3a   : > { %v240_v26 = vadd.f32 %v239_v22, %v208_v17  ;;  %v311_v28 = vadd.f32 %v310_v24, %v280_v19 }
  0x3c   : > { %v241_v30 = vadd.f32 %v240_v26, %v209_v21  ;;  %v312_v32 = vadd.f32 %v311_v28, %v281_v23 }
  0x3e   : > { %v242_v34 = vadd.f32 %v241_v30, %v210_v25  ;;  %v313_v36 = vadd.f32 %v312_v32, %v282_v27 }
  0x40   : > { %v243_v38 = vadd.f32 %v242_v34, %v211_v29  ;;  %v314_v40 = vadd.f32 %v313_v36, %v283_v31 }
  0x42   : > { %v244_v42 = vadd.f32 %v243_v38, %v212_v33  ;;  %v315_v44 = vadd.f32 %v314_v40, %v284_v35 }
  0x44   : > { %v245_v46 = vadd.f32 %v244_v42, %v213_v37  ;;  %v316_v48 = vadd.f32 %v315_v44, %v285_v39 }
  0x46   : > { %v246_v50 = vadd.f32 %v245_v46, %v214_v41  ;;  %v317_v52 = vadd.f32 %v316_v48, %v286_v43 }
  0x48   : > { %v247_v54 = vadd.f32 %v246_v50, %v215_v45  ;;  %v318_v56 = vadd.f32 %v317_v52, %v287_v47 }
  0x4a   : > { %v248_v57 = vadd.f32 %v247_v54, %v216_v49  ;;  %v319_v59 = vadd.f32 %v318_v56, %v288_v51 }
  0x4c   : > { %v249_v60 = vadd.f32 %v248_v57, %v217_v53  ;;  %v320_v61 = vadd.f32 %v319_v59, %v289_v55 }
  0x4e   : > { %v250_v62 = vrot.slane %v249_v60, 4  ;;  %v321_v63 = vadd.f32 %v320_v61, %v290_v58 }
  0x50   : > { %v251_v0 = vadd.f32 %v250_v62, %v249_v60  ;;  %v322_v1 = vrot.slane %v321_v63, 4 }
  0x52   : > { %v252_v2 = vrot.slane %v251_v0, 2  ;;  %v323_v3 = vadd.f32 %v322_v1, %v321_v63 }
  0x54   : > { %v253_v4 = vadd.f32 %v252_v2, %v251_v0  ;;  %v324_v5 = vrot.slane %v323_v3, 2 }
  0x56   : > { %v254_v6 = vrot.slane %v253_v4, 1  ;;  %v325_v8 = vadd.f32 %v324_v5, %v323_v3 }
  0x58   : > { %v255_v9 = vadd.f32 %v254_v6, %v253_v4  ;;  %v326_v10 = vrot.slane %v325_v8, 1 }
  0x5a   : > { %v256_v11 = vadd.f32 %v255_v9, %v218_v7  ;;  %v327_v13 = vadd.f32 %v326_v10, %v325_v8 }
  0x5c   : > { %257 = vst [vmem:[%s515_s16] sm:$0x1] %v256_v11  ;;  %v328_v14 = vadd.f32 %v327_v13, %v258_v12 }
  0x5e   : > { %329 = vst [vmem:[%s526_s22] sm:$0x1] %v328_v14 }
  0x5f PF: > { %s13_s11 = sadd.s32 1, %s476_s11   ;;  %s577_s9 = smov %s472_s10 }
  0x60   : > { %p10_p5 = scmp.ge.s32.totalorder %s13_s11, 4   ;;  %s578_s10 = smov %s580_s12 }
  0x62   :  { %12 = sbr.rel (!%p10_p5) target bundleno = 2 (0x2), region = 70 }

// kernel: preact_bottleneck.5
= control target key start
LH: loop header
LB: loop body
LE: loop exit
PB: predicated region body
PF: predicated region fallthrough
CT: control target
= control target key end

     0   :  { %s1283_s24 = smov 0   ;;  %s1285_s25 = smov 0   ;;  %s1719_s0 = inlined_call_operand.vmem [shape: f32[2,16,16,128], index: 0, kind: input, shape index: {}]   ;;  %s1720_s1 = inlined_call_operand.vmem [shape: f32[1,128], index: 1, kind: input, shape index: {}]   ;;  %s1721_s2 = inlined_call_operand.vmem [shape: f32[1,128], index: 2, kind: input, shape index: {}]   ;;  %s1722_s3 = inlined_call_operand.vmem [shape: f32[128,256], index: 3, kind: input, shape index: {}]   ;;  %s1723_s4 = inlined_call_operand.vmem [shape: f32[2,16,16,128], index: 4, kind: output, shape index: {0}]   ;;  %s1724_s5 = inlined_call_operand.vmem [shape: f32[2,1,128], index: 5, kind: output, shape index: {1}]   ;;  %s1725_s6 = inlined_call_operand.vmem [shape: f32[2,1,128], index: 6, kind: output, shape index: {2}]   ;;  %s1726_s7 = inlined_call_operand.vmem [shape: f32[2,16,16,128], index: 7, kind: output, shape index: {3}]  }
   0x1   :  { %s1287_s26 = smov 0  }
   0x2 LB: > { %s30_s27 = sadd.s32 1, %s1236_s25  ;;  %p1147_p0 = scmp.ge.s32.totalorder %s1240_s26, 1  ;;  %s1240_s26 = sphi %s1287_s26, %s18_s26   ;;  %s1236_s25 = sphi %s1285_s25, %s1728_s25   ;;  %s1232_s24 = sphi %s1283_s24, %s1727_s24  }
   0x3   : > { %p32_p1 = scmp.ge.s32.totalorder %s30_s27, 2  ;;  %p268_p2 = scmp.lt.s32.totalorder %s1240_s26, 3 }
   0x5   : > { %s1730_s27 = smov (%p32_p1, %s30_s27), 0  ;;  %p269_p3 = pnand %p1147_p0, %p268_p2 }
   0x6   : > { %p327_p4 = scmp.lt.s32.totalorder (!%p269_p3), %s1232_s24, 1 }
   0x7   : > { %272 = sbr.rel (%p269_p3) target bundleno = 341 (0x155), region = 36 }
   0xc   : > { %v531_v0 = vld [vmem:[%s1722_s3 + $0xf0] sm:$0xff]  ;;  %v529_v1 = vld [vmem:[%s1722_s3 + $0xe0] sm:$0xff]  ;;  %s1732_s24 = smov (!%p327_p4, %s1232_s24), 1  ;;  %v532_v6 = vld [vmem:[%s1722_s3 + $0xf8] sm:$0xff] }
   0xd   : > { %533 = vmatpush.msra.mxu0 %v531_v0  ;;  %1159 = vmatpush.msra.mxu2 %v531_v0  ;;  %v527_v2 = vld [vmem:[%s1722_s3 + $0xd0] sm:$0xff]  ;;  %v525_v3 = vld [vmem:[%s1722_s3 + $0xc0] sm:$0xff]  ;;  %v530_v7 = vld [vmem:[%s1722_s3 + $0xe8] sm:$0xff]  ;;  %s1331_s23 = sshll.u32 %s1732_s24, 8  ;;  %s1643_s13 = scalar_lea.vmem %s1724_s5, %s1732_s24 }
   0xe   : > { %v523_v4 = vld [vmem:[%s1722_s3 + $0xb0] sm:$0xff]  ;;  %v521_v5 = vld [vmem:[%s1722_s3 + $0xa0] sm:$0xff]  ;;  %1175 = vmatpush.msra.mxu3 %v532_v6  ;;  %646 = vmatpush.msra.mxu1 %v532_v6  ;;  %s1343_s11 = scalar_lea.vmem %s1719_s0, %s1331_s23  ;;  %v528_v13 = vld [vmem:[%s1722_s3 + $0xd8] sm:$0xff]  ;;  %s1524_s30 = scalar_lea.vmem %s1723_s4, %s1331_s23 }
   0xf   : > { %534 = vmatpush.msra.mxu0 %v529_v1  ;;  %1160 = vmatpush.msra.mxu2 %v529_v1  ;;  %v519_v8 = vld [vmem:[%s1722_s3 + $0x90] sm:$0xff]  ;;  %v517_v9 = vld [vmem:[%s1722_s3 + $0x80] sm:$0xff]  ;;  %v526_v15 = vld [vmem:[%s1722_s3 + $0xc8] sm:$0xff]  ;;  %s1540_s10 = scalar_lea.vmem %s1726_s7, %s1331_s23  ;;  %s1649_s16 = scalar_lea.vmem %s1725_s6, %s1732_s24 }
  0x10   : > { %1176 = vmatpush.msra.mxu3 %v530_v7  ;;  %647 = vmatpush.msra.mxu1 %v530_v7  ;;  %v515_v10 = vld [vmem:[%s1722_s3 + $0x70] sm:$0xff]  ;;  %v513_v11 = vld [vmem:[%s1722_s3 + $0x60] sm:$0xff]  ;;  %v524_v17 = vld [vmem:[%s1722_s3 + $0xb8] sm:$0xff] }
  0x11   : > { %535 = vmatpush.msra.mxu0 %v527_v2  ;;  %1161 = vmatpush.msra.mxu2 %v527_v2  ;;  %v1351_v12 = vld [vmem:[%s1720_s1] ss:$0 sm:$0xff]  ;;  %v511_v16 = vld [vmem:[%s1722_s3 + $0x50] sm:$0xff]  ;;  %v522_v23 = vld [vmem:[%s1722_s3 + $0xa8] sm:$0xff] }
  0x12   : > { %v365_v14 = vld [vmem:[%s1343_s11] sm:$0xff]  ;;  %1177 = vmatpush.msra.mxu3 %v528_v13  ;;  %648 = vmatpush.msra.mxu1 %v528_v13  ;;  %v507_v24 = vld [vmem:[%s1722_s3 + $0x30] sm:$0xff]  ;;  %v520_v27 = vld [vmem:[%s1722_s3 + $0x98] sm:$0xff] }
  0x13   : > { %536 = vmatpush.msra.mxu0 %v525_v3  ;;  %1162 = vmatpush.msra.mxu2 %v525_v3  ;;  %v381_v18 = vld [vmem:[%s1343_s11 + $0x80] sm:$0xff]  ;;  %v401_v20 = vmul.f32 %v1351_v12, %v365_v14  ;;  %v366_v29 = vld [vmem:[%s1343_s11 + $0x8] sm:$0xff]  ;;  %v503_v31 = vld [vmem:[%s1722_s3 + $0x10] sm:$0xff] }
  0x14   : > { %v509_v19 = vld [vmem:[%s1722_s3 + $0x40] sm:$0xff]  ;;  %1178 = vmatpush.msra.mxu3 %v526_v15  ;;  %649 = vmatpush.msra.mxu1 %v526_v15  ;;  %v417_v22 = vmul.f32 %v1351_v12, %v381_v18  ;;  %v518_v30 = vld [vmem:[%s1722_s3 + $0x88] sm:$0xff]  ;;  %v516_v32 = vld [vmem:[%s1722_s3 + $0x78] sm:$0xff]  ;;  %v402_v36 = vmul.f32 %v1351_v12, %v366_v29 }
  0x15   : > { %537 = vmatpush.msra.mxu0 %v523_v4  ;;  %1163 = vmatpush.msra.mxu2 %v523_v4  ;;  %v1374_v21 = vld [vmem:[%s1721_s2] ss:$0 sm:$0xff]  ;;  %v382_v33 = vld [vmem:[%s1343_s11 + $0x88] sm:$0xff]  ;;  %v512_v41 = vld [vmem:[%s1722_s3 + $0x58] sm:$0xff] }
  0x16   : > { %1179 = vmatpush.msra.mxu3 %v524_v17  ;;  %650 = vmatpush.msra.mxu1 %v524_v17  ;;  %v505_v25 = vld [vmem:[%s1722_s3 + $0x20] sm:$0xff]  ;;  %v1387_v26 = vadd.f32 %v1374_v21, %v401_v20  ;;  %v1393_v28 = vadd.f32 %v1374_v21, %v417_v22  ;;  %v418_v38 = vmul.f32 %v1351_v12, %v382_v33  ;;  %v514_v39 = vld [vmem:[%s1722_s3 + $0x68] sm:$0xff]  ;;  %v367_v43 = vld [vmem:[%s1343_s11 + $0x10] sm:$0xff] }
  0x17   : > { %538 = vmatpush.msra.mxu0 %v521_v5  ;;  %1164 = vmatpush.msra.mxu2 %v521_v5  ;;  %v501_v34 = vld [vmem:[%s1722_s3] sm:$0xff]  ;;  %v438_v40 = vadd.f32 %v1374_v21, %v402_v36  ;;  %v510_v44 = vld [vmem:[%s1722_s3 + $0x48] sm:$0xff]  ;;  %v383_v45 = vld [vmem:[%s1343_s11 + $0x90] sm:$0xff]  ;;  %v403_v47 = vmul.f32 %v1351_v12, %v367_v43 }
  0x18   : > { %1180 = vmatpush.msra.mxu3 %v522_v23  ;;  %651 = vmatpush.msra.mxu1 %v522_v23  ;;  %v469_v35 = vmax.f32 %v1387_v26, 0.0  ;;  %v485_v37 = vmax.f32 %v1393_v28, 0.0  ;;  %v454_v42 = vadd.f32 %v1374_v21, %v418_v38  ;;  %v508_v49 = vld [vmem:[%s1722_s3 + $0x38] sm:$0xff]  ;;  %v419_v50 = vmul.f32 %v1351_v12, %v383_v45  ;;  %v506_v51 = vld [vmem:[%s1722_s3 + $0x28] sm:$0xff]  ;;  %v369_v0 = vld [vmem:[%s1343_s11 + $0x20] sm:$0xff] }
  0x19   : > { %539 = vmatpush.msra.mxu0 %v519_v8  ;;  %1165 = vmatpush.msra.mxu2 %v519_v8  ;;  %v470_v46 = vmax.f32 %v438_v40, 0.0  ;;  %v439_v52 = vadd.f32 %v1374_v21, %v403_v47  ;;  %v504_v53 = vld [vmem:[%s1722_s3 + $0x18] sm:$0xff]  ;;  %v502_v56 = vld [vmem:[%s1722_s3 + $0x8] sm:$0xff]  ;;  %v385_v1 = vld [vmem:[%s1343_s11 + $0xa0] sm:$0xff]  ;;  %v405_v3 = vmul.f32 %v1351_v12, %v369_v0 }
  0x1a   : > { %1181 = vmatpush.msra.mxu3 %v520_v27  ;;  %652 = vmatpush.msra.mxu1 %v520_v27  ;;  %v486_v48 = vmax.f32 %v454_v42, 0.0  ;;  %v455_v54 = vadd.f32 %v1374_v21, %v419_v50  ;;  %v368_v55 = vld [vmem:[%s1343_s11 + $0x18] sm:$0xff]  ;;  %v421_v5 = vmul.f32 %v1351_v12, %v385_v1  ;;  %v370_v8 = vld [vmem:[%s1343_s11 + $0x28] sm:$0xff]  ;;  %v371_v17 = vld [vmem:[%s1343_s11 + $0x30] sm:$0xff] }
  0x1b   : > { %540 = vmatpush.msra.mxu0 %v517_v9  ;;  %1166 = vmatpush.msra.mxu2 %v517_v9  ;;  %v384_v57 = vld [vmem:[%s1343_s11 + $0x98] sm:$0xff]  ;;  %v471_v58 = vmax.f32 %v439_v52, 0.0  ;;  %v404_v59 = vmul.f32 %v1351_v12, %v368_v55  ;;  %v441_v6 = vadd.f32 %v1374_v21, %v405_v3  ;;  %v386_v9 = vld [vmem:[%s1343_s11 + $0xa8] sm:$0xff]  ;;  %v387_v18 = vld [vmem:[%s1343_s11 + $0xb0] sm:$0xff]  ;;  %v407_v20 = vmul.f32 %v1351_v12, %v371_v17 }
  0x1c   : > { %1182 = vmatpush.msra.mxu3 %v518_v30  ;;  %653 = vmatpush.msra.mxu1 %v518_v30  ;;  %v487_v60 = vmax.f32 %v455_v54, 0.0  ;;  %v420_v61 = vmul.f32 %v1351_v12, %v384_v57  ;;  %v457_v7 = vadd.f32 %v1374_v21, %v421_v5  ;;  %v422_v14 = vmul.f32 %v1351_v12, %v386_v9  ;;  %v372_v26 = vld [vmem:[%s1343_s11 + $0x38] sm:$0xff]  ;;  %v374_v42 = vld [vmem:[%s1343_s11 + $0x48] sm:$0xff]  ;;  %v375_v50 = vld [vmem:[%s1343_s11 + $0x50] sm:$0xff] }
  0x1d   : > { %541 = vmatpush.msra.mxu0 %v515_v10  ;;  %1167 = vmatpush.msra.mxu2 %v515_v10  ;;  %v440_v62 = vadd.f32 %v1374_v21, %v404_v59  ;;  %v473_v10 = vmax.f32 %v441_v6, 0.0  ;;  %v423_v23 = vmul.f32 %v1351_v12, %v387_v18  ;;  %v388_v27 = vld [vmem:[%s1343_s11 + $0xb8] sm:$0xff]  ;;  %v408_v29 = vmul.f32 %v1351_v12, %v372_v26  ;;  %v390_v43 = vld [vmem:[%s1343_s11 + $0xc8] sm:$0xff]  ;;  %v393_v3 = vld [vmem:[%s1343_s11 + $0xe0] sm:$0xff] }
  0x1e   : > { %1183 = vmatpush.msra.mxu3 %v516_v32  ;;  %654 = vmatpush.msra.mxu1 %v516_v32  ;;  %v456_v63 = vadd.f32 %v1374_v21, %v420_v61  ;;  %v489_v13 = vmax.f32 %v457_v7, 0.0  ;;  %v410_v45 = vmul.f32 %v1351_v12, %v374_v42  ;;  %v426_v47 = vmul.f32 %v1351_v12, %v390_v43  ;;  %v392_v59 = vld [vmem:[%s1343_s11 + $0xd8] sm:$0xff] }
  0x1f   : > { %542 = vmatpush.msra.mxu0 %v513_v11  ;;  %1168 = vmatpush.msra.mxu2 %v513_v11  ;;  %v472_v2 = vmax.f32 %v440_v62, 0.0  ;;  %v406_v11 = vmul.f32 %v1351_v12, %v370_v8  ;;  %v444_v32 = vadd.f32 %v1374_v21, %v408_v29  ;;  %v429_v7 = vmul.f32 %v1351_v12, %v393_v3  ;;  %v396_v29 = vld [vmem:[%s1343_s11 + $0xf8] sm:$0xff] }
  0x20   : > { %1184 = vmatpush.msra.mxu3 %v514_v39  ;;  %655 = vmatpush.msra.mxu1 %v514_v39  ;;  %v488_v4 = vmax.f32 %v456_v63, 0.0  ;;  %v428_v63 = vmul.f32 %v1351_v12, %v392_v59 }
  0x21   : > { %543 = vmatpush.msra.mxu0 %v511_v16  ;;  %1169 = vmatpush.msra.mxu2 %v511_v16  ;;  %v442_v15 = vadd.f32 %v1374_v21, %v406_v11  ;;  %v458_v16 = vadd.f32 %v1374_v21, %v422_v14  ;;  %v476_v36 = vmax.f32 %v444_v32, 0.0  ;;  %v465_v9 = vadd.f32 %v1374_v21, %v429_v7  ;;  %v394_v11 = vld [vmem:[%s1343_s11 + $0xe8] sm:$0xff] }
  0x22   : > { %1185 = vmatpush.msra.mxu3 %v512_v41  ;;  %656 = vmatpush.msra.mxu1 %v512_v41  ;;  %v464_v1 = vadd.f32 %v1374_v21, %v428_v63 }
  0x23   : > { %544 = vmatpush.msra.mxu0 %v509_v19  ;;  %1170 = vmatpush.msra.mxu2 %v509_v19  ;;  %v474_v19 = vmax.f32 %v442_v15, 0.0  ;;  %v490_v22 = vmax.f32 %v458_v16, 0.0  ;;  %v497_v15 = vmax.f32 %v465_v9, 0.0  ;;  %v430_v16 = vmul.f32 %v1351_v12, %v394_v11 }
  0x24   : > { %1186 = vmatpush.msra.mxu3 %v510_v44  ;;  %657 = vmatpush.msra.mxu1 %v510_v44  ;;  %v496_v6 = vmax.f32 %v464_v1, 0.0 }
  0x25   : > { %545 = vmatpush.msra.mxu0 %v507_v24  ;;  %1171 = vmatpush.msra.mxu2 %v507_v24  ;;  %v443_v24 = vadd.f32 %v1374_v21, %v407_v20  ;;  %v466_v18 = vadd.f32 %v1374_v21, %v430_v16  ;;  %v395_v20 = vld [vmem:[%s1343_s11 + $0xf0] sm:$0xff] }
  0x26   : > { %1187 = vmatpush.msra.mxu3 %v508_v49  ;;  %658 = vmatpush.msra.mxu1 %v508_v49  ;;  %v462_v49 = vadd.f32 %v1374_v21, %v426_v47 }
  0x27   : > { %546 = vmatpush.msra.mxu0 %v505_v25  ;;  %1172 = vmatpush.msra.mxu2 %v505_v25  ;;  %v459_v25 = vadd.f32 %v1374_v21, %v423_v23  ;;  %v475_v28 = vmax.f32 %v443_v24, 0.0  ;;  %v498_v24 = vmax.f32 %v466_v18, 0.0 }
  0x28   : > { %1188 = vmatpush.msra.mxu3 %v506_v51  ;;  %659 = vmatpush.msra.mxu1 %v506_v51  ;;  %v391_v51 = vld [vmem:[%s1343_s11 + $0xd0] sm:$0xff]  ;;  %v494_v54 = vmax.f32 %v462_v49, 0.0 }
  0x29   : > { %547 = vmatpush.msra.mxu0 %v503_v31  ;;  %1173 = vmatpush.msra.mxu2 %v503_v31  ;;  %v491_v30 = vmax.f32 %v459_v25, 0.0  ;;  %v424_v31 = vmul.f32 %v1351_v12, %v388_v27  ;;  %v427_v55 = vmul.f32 %v1351_v12, %v391_v51  ;;  %v431_v25 = vmul.f32 %v1351_v12, %v395_v20 }
  0x2a   : > { %1189 = vmatpush.msra.mxu3 %v504_v53  ;;  %660 = vmatpush.msra.mxu1 %v504_v53  ;;  %v411_v53 = vmul.f32 %v1351_v12, %v375_v50 }
  0x2b   : > { %548 = vmatpush.msra.mxu0 %v501_v34  ;;  %1174 = vmatpush.msra.mxu2 %v501_v34  ;;  %v460_v33 = vadd.f32 %v1374_v21, %v424_v31  ;;  %v373_v34 = vld [vmem:[%s1343_s11 + $0x40] sm:$0xff]  ;;  %v463_v57 = vadd.f32 %v1374_v21, %v427_v55  ;;  %v467_v27 = vadd.f32 %v1374_v21, %v431_v25 }
  0x2c   : > { %549 = vmatmul.f32.vlgmr.msra.gmra.mxu0 %v469_v35  ;;  %597 = vmatmul.f32.vlgmr.msra.gmra.mxu2 %v485_v37 }
  0x2d   : > { %1190 = vmatpush.msra.mxu3 %v502_v56  ;;  %661 = vmatpush.msra.mxu1 %v502_v56  ;;  %v492_v38 = vmax.f32 %v460_v33, 0.0  ;;  %v447_v56 = vadd.f32 %v1374_v21, %v411_v53  ;;  %v495_v62 = vmax.f32 %v463_v57, 0.0  ;;  %v499_v32 = vmax.f32 %v467_v27, 0.0 }
  0x2e   : > { %710 = vmatmul.f32.vlgmr.msra.gmra.mxu3 %v485_v37  ;;  %662 = vmatmul.f32.vlgmr.msra.gmra.mxu1 %v469_v35  ;;  %v389_v35 = vld [vmem:[%s1343_s11 + $0xc0] sm:$0xff]  ;;  %v409_v37 = vmul.f32 %v1351_v12, %v373_v34  ;;  %v432_v33 = vmul.f32 %v1351_v12, %v396_v29 }
  0x2f   : > { %v425_v39 = vmul.f32 %v1351_v12, %v389_v35 }
  0x30   : > { %v445_v40 = vadd.f32 %v1374_v21, %v409_v37  ;;  %v468_v35 = vadd.f32 %v1374_v21, %v432_v33 }
  0x31   : > { %v461_v41 = vadd.f32 %v1374_v21, %v425_v39 }
  0x32   : > { %v477_v44 = vmax.f32 %v445_v40, 0.0  ;;  %v500_v37 = vmax.f32 %v468_v35, 0.0 }
  0x34   : > { %552 = vmatmul.f32.gmra.mxu0 %v470_v46  ;;  %600 = vmatmul.f32.gmra.mxu2 %v486_v48 }
  0x36   : > { %713 = vmatmul.f32.gmra.mxu3 %v486_v48  ;;  %665 = vmatmul.f32.gmra.mxu1 %v470_v46  ;;  %v493_v46 = vmax.f32 %v461_v41, 0.0  ;;  %v446_v48 = vadd.f32 %v1374_v21, %v410_v45 }
  0x38   : > { %v478_v52 = vmax.f32 %v446_v48, 0.0 }
  0x3c   : > { %555 = vmatmul.f32.gmra.mxu0 %v471_v58  ;;  %603 = vmatmul.f32.gmra.mxu2 %v487_v60 }
  0x3e   : > { %716 = vmatmul.f32.gmra.mxu3 %v487_v60  ;;  %668 = vmatmul.f32.gmra.mxu1 %v471_v58  ;;  %v376_v58 = vld [vmem:[%s1343_s11 + $0x58] sm:$0xff]  ;;  %v479_v60 = vmax.f32 %v447_v56, 0.0 }
  0x3f   : > { %v412_v61 = vmul.f32 %v1351_v12, %v376_v58 }
  0x41   : > { %v448_v0 = vadd.f32 %v1374_v21, %v412_v61 }
  0x44   : > { %558 = vmatmul.f32.gmra.mxu0 %v472_v2  ;;  %606 = vmatmul.f32.gmra.mxu2 %v488_v4 }
  0x46   : > { %719 = vmatmul.f32.gmra.mxu3 %v488_v4  ;;  %671 = vmatmul.f32.gmra.mxu1 %v472_v2  ;;  %v377_v2 = vld [vmem:[%s1343_s11 + $0x60] sm:$0xff]  ;;  %v480_v4 = vmax.f32 %v448_v0, 0.0 }
  0x47   : > { %v413_v5 = vmul.f32 %v1351_v12, %v377_v2 }
  0x49   : > { %v449_v8 = vadd.f32 %v1374_v21, %v413_v5 }
  0x4c   : > { %561 = vmatmul.f32.gmra.mxu0 %v473_v10  ;;  %609 = vmatmul.f32.gmra.mxu2 %v489_v13 }
  0x4e   : > { %722 = vmatmul.f32.gmra.mxu3 %v489_v13  ;;  %674 = vmatmul.f32.gmra.mxu1 %v473_v10  ;;  %v378_v10 = vld [vmem:[%s1343_s11 + $0x68] sm:$0xff]  ;;  %v481_v13 = vmax.f32 %v449_v8, 0.0 }
  0x4f   : > { %v414_v14 = vmul.f32 %v1351_v12, %v378_v10 }
  0x51   : > { %v450_v17 = vadd.f32 %v1374_v21, %v414_v14 }
  0x54   : > { %564 = vmatmul.f32.gmra.mxu0 %v474_v19  ;;  %612 = vmatmul.f32.gmra.mxu2 %v490_v22 }
  0x56   : > { %725 = vmatmul.f32.gmra.mxu3 %v490_v22  ;;  %677 = vmatmul.f32.gmra.mxu1 %v474_v19  ;;  %v379_v19 = vld [vmem:[%s1343_s11 + $0x70] sm:$0xff]  ;;  %v482_v22 = vmax.f32 %v450_v17, 0.0 }
  0x57   : > { %v415_v23 = vmul.f32 %v1351_v12, %v379_v19 }
  0x59   : > { %v451_v26 = vadd.f32 %v1374_v21, %v415_v23 }
  0x5c   : > { %567 = vmatmul.f32.gmra.mxu0 %v475_v28  ;;  %615 = vmatmul.f32.gmra.mxu2 %v491_v30 }
  0x5e   : > { %728 = vmatmul.f32.gmra.mxu3 %v491_v30  ;;  %680 = vmatmul.f32.gmra.mxu1 %v475_v28  ;;  %v380_v28 = vld [vmem:[%s1343_s11 + $0x78] sm:$0xff]  ;;  %v483_v30 = vmax.f32 %v451_v26, 0.0 }
  0x5f   : > { %v416_v31 = vmul.f32 %v1351_v12, %v380_v28 }
  0x61   : > { %v452_v34 = vadd.f32 %v1374_v21, %v416_v31 }
  0x64   : > { %570 = vmatmul.f32.gmra.mxu0 %v476_v36  ;;  %618 = vmatmul.f32.gmra.mxu2 %v492_v38 }
  0x66   : > { %731 = vmatmul.f32.gmra.mxu3 %v492_v38  ;;  %683 = vmatmul.f32.gmra.mxu1 %v476_v36  ;;  %v484_v36 = vmax.f32 %v452_v34, 0.0 }
  0x6c   : > { %573 = vmatmul.f32.gmra.mxu0 %v477_v44  ;;  %621 = vmatmul.f32.gmra.mxu2 %v493_v46 }
  0x6e   : > { %734 = vmatmul.f32.gmra.mxu3 %v493_v46  ;;  %686 = vmatmul.f32.gmra.mxu1 %v477_v44 }
  0x74   : > { %576 = vmatmul.f32.gmra.mxu0 %v478_v52  ;;  %624 = vmatmul.f32.gmra.mxu2 %v494_v54 }
  0x76   : > { %737 = vmatmul.f32.gmra.mxu3 %v494_v54  ;;  %689 = vmatmul.f32.gmra.mxu1 %v478_v52 }
  0x7c   : > { %579 = vmatmul.f32.gmra.mxu0 %v479_v60  ;;  %627 = vmatmul.f32.gmra.mxu2 %v495_v62 }
  0x7e   : > { %740 = vmatmul.f32.gmra.mxu3 %v495_v62  ;;  %692 = vmatmul.f32.gmra.mxu1 %v479_v60 }
  0x84   : > { %582 = vmatmul.f32.gmra.mxu0 %v480_v4  ;;  %630 = vmatmul.f32.gmra.mxu2 %v496_v6 }
  0x86   : > { %743 = vmatmul.f32.gmra.mxu3 %v496_v6  ;;  %695 = vmatmul.f32.gmra.mxu1 %v480_v4 }
  0x8c   : > { %585 = vmatmul.f32.gmra.mxu0 %v481_v13  ;;  %633 = vmatmul.f32.gmra.mxu2 %v497_v15 }
  0x8e   : > { %746 = vmatmul.f32.gmra.mxu3 %v497_v15  ;;  %698 = vmatmul.f32.gmra.mxu1 %v481_v13 }
  0x94   : > { %588 = vmatmul.f32.gmra.mxu0 %v482_v22  ;;  %636 = vmatmul.f32.gmra.mxu2 %v498_v24 }
  0x96   : > { %749 = vmatmul.f32.gmra.mxu3 %v498_v24  ;;  %701 = vmatmul.f32.gmra.mxu1 %v482_v22 }
  0x9c   : > { %591 = vmatmul.f32.gmra.mxu0 %v483_v30  ;;  %639 = vmatmul.f32.gmra.mxu2 %v499_v32 }
  0x9e   : > { %752 = vmatmul.f32.gmra.mxu3 %v499_v32  ;;  %704 = vmatmul.f32.gmra.mxu1 %v483_v30 }
  0xa4   : > { %594 = vmatmul.f32.gmra.mxu0 %v484_v36  ;;  %642 = vmatmul.f32.gmra.mxu2 %v500_v37 }
  0xa6   : > { %755 = vmatmul.f32.gmra.mxu3 %v500_v37  ;;  %707 = vmatmul.f32.gmra.mxu1 %v484_v36 }
  0xa9   : > { %v550_v12 = vpop.f32.mrf.mxu0 }
  0xaa   : > { %791 = vst [vmem:[%s1524_s30] sm:$0xff] %v550_v12  ;;  %v870_v39 = vmul.f32 %v550_v12, %v550_v12 }
  0xab   : > { %v663_v47 = vpop.f32.mrf.mxu1 }
  0xac   : > { %759 = vst [vmem:[%s1540_s10] sm:$0xff] %v663_v47 }
  0xaf   : > { %v1527_v21 = vpop.f32.mrf.mxu2 }
  0xb0   : > { %807 = vst [vmem:[%s1524_s30 + $0x80] sm:$0xff] %v1527_v21 }
  0xb1   : > { %v553_v38 = vpop.f32.mrf.mxu0  ;;  %v711_v49 = vpop.f32.mrf.mxu3 }
  0xb2   : > { %792 = vst [vmem:[%s1524_s30 + $0x8] sm:$0xff] %v553_v38  ;;  %v830_v40 = vadd.f32 %v553_v38, %v550_v12  ;;  %v871_v41 = vmul.f32 %v553_v38, %v553_v38 }
  0xb3   : > { %775 = vst [vmem:[%s1540_s10 + $0x80] sm:$0xff] %v711_v49  ;;  %v666_v54 = vpop.f32.mrf.mxu1 }
  0xb4   : > { %v902_v42 = vadd.f32 %v871_v41, %v870_v39  ;;  %760 = vst [vmem:[%s1540_s10 + $0x8] sm:$0xff] %v666_v54 }
  0xb7   : > { %v1532_v43 = vpop.f32.mrf.mxu2 }
  0xb8   : > { %808 = vst [vmem:[%s1524_s30 + $0x88] sm:$0xff] %v1532_v43 }
  0xb9   : > { %v556_v44 = vpop.f32.mrf.mxu0  ;;  %v714_v56 = vpop.f32.mrf.mxu3 }
  0xba   : > { %793 = vst [vmem:[%s1524_s30 + $0x10] sm:$0xff] %v556_v44  ;;  %v831_v45 = vadd.f32 %v830_v40, %v556_v44  ;;  %v872_v46 = vmul.f32 %v556_v44, %v556_v44 }
  0xbb   : > { %776 = vst [vmem:[%s1540_s10 + $0x88] sm:$0xff] %v714_v56  ;;  %v669_v61 = vpop.f32.mrf.mxu1 }
  0xbc   : > { %v903_v48 = vadd.f32 %v902_v42, %v872_v46  ;;  %761 = vst [vmem:[%s1540_s10 + $0x10] sm:$0xff] %v669_v61 }
  0xbf   : > { %v1545_v50 = vpop.f32.mrf.mxu2 }
  0xc0   : > { %809 = vst [vmem:[%s1524_s30 + $0x90] sm:$0xff] %v1545_v50 }
  0xc1   : > { %v559_v51 = vpop.f32.mrf.mxu0  ;;  %v717_v63 = vpop.f32.mrf.mxu3 }
  0xc2   : > { %794 = vst [vmem:[%s1524_s30 + $0x18] sm:$0xff] %v559_v51  ;;  %v832_v52 = vadd.f32 %v831_v45, %v559_v51  ;;  %v873_v53 = vmul.f32 %v559_v51, %v559_v51 }
  0xc3   : > { %777 = vst [vmem:[%s1540_s10 + $0x90] sm:$0xff] %v717_v63  ;;  %v672_v2 = vpop.f32.mrf.mxu1 }
  0xc4   : > { %v904_v55 = vadd.f32 %v903_v48, %v873_v53  ;;  %762 = vst [vmem:[%s1540_s10 + $0x18] sm:$0xff] %v672_v2 }
  0xc7   : > { %v1552_v57 = vpop.f32.mrf.mxu2 }
  0xc8   : > { %810 = vst [vmem:[%s1524_s30 + $0x98] sm:$0xff] %v1552_v57 }
  0xc9   : > { %v562_v58 = vpop.f32.mrf.mxu0  ;;  %v720_v3 = vpop.f32.mrf.mxu3 }
  0xca   : > { %795 = vst [vmem:[%s1524_s30 + $0x20] sm:$0xff] %v562_v58  ;;  %v1557_v59 = vadd.f32 %v832_v52, %v562_v58  ;;  %v874_v60 = vmul.f32 %v562_v58, %v562_v58 }
  0xcb   : > { %778 = vst [vmem:[%s1540_s10 + $0x98] sm:$0xff] %v720_v3  ;;  %v675_v6 = vpop.f32.mrf.mxu1 }
  0xcc   : > { %v1559_v62 = vadd.f32 %v904_v55, %v874_v60  ;;  %763 = vst [vmem:[%s1540_s10 + $0x20] sm:$0xff] %v675_v6 }
  0xcf   : > { %v1563_v0 = vpop.f32.mrf.mxu2 }
  0xd0   : > { %811 = vst [vmem:[%s1524_s30 + $0xa0] sm:$0xff] %v1563_v0 }
  0xd1   : > { %v565_v1 = vpop.f32.mrf.mxu0  ;;  %v723_v7 = vpop.f32.mrf.mxu3 }
  0xd2   : > { %796 = vst [vmem:[%s1524_s30 + $0x28] sm:$0xff] %v565_v1  ;;  %v875_v33 = vmul.f32 %v565_v1, %v565_v1  ;;  %v834_v35 = vadd.f32 %v1557_v59, %v565_v1 }
  0xd3   : > { %779 = vst [vmem:[%s1540_s10 + $0xa0] sm:$0xff] %v723_v7  ;;  %v678_v10 = vpop.f32.mrf.mxu1 }
  0xd4   : > { %764 = vst [vmem:[%s1540_s10 + $0x28] sm:$0xff] %v678_v10  ;;  %v906_v12 = vadd.f32 %v1559_v62, %v875_v33 }
  0xd7   : > { %v1570_v4 = vpop.f32.mrf.mxu2 }
  0xd8   : > { %812 = vst [vmem:[%s1524_s30 + $0xa8] sm:$0xff] %v1570_v4 }
  0xd9   : > { %v568_v5 = vpop.f32.mrf.mxu0  ;;  %v726_v11 = vpop.f32.mrf.mxu3 }
  0xda   : > { %797 = vst [vmem:[%s1524_s30 + $0x30] sm:$0xff] %v568_v5  ;;  %v876_v36 = vmul.f32 %v568_v5, %v568_v5  ;;  %v835_v38 = vadd.f32 %v834_v35, %v568_v5 }
  0xdb   : > { %780 = vst [vmem:[%s1540_s10 + $0xa8] sm:$0xff] %v726_v11  ;;  %v681_v15 = vpop.f32.mrf.mxu1 }
  0xdc   : > { %765 = vst [vmem:[%s1540_s10 + $0x30] sm:$0xff] %v681_v15  ;;  %v907_v41 = vadd.f32 %v906_v12, %v876_v36  ;;  %v889_v36 = vmul.f32 %v1552_v57, %v1552_v57 }
  0xdf   : > { %v1577_v8 = vpop.f32.mrf.mxu2 }
  0xe0   : > { %813 = vst [vmem:[%s1524_s30 + $0xb0] sm:$0xff] %v1577_v8 }
  0xe1   : > { %v571_v9 = vpop.f32.mrf.mxu0  ;;  %v729_v16 = vpop.f32.mrf.mxu3 }
  0xe2   : > { %798 = vst [vmem:[%s1524_s30 + $0x38] sm:$0xff] %v571_v9  ;;  %v877_v39 = vmul.f32 %v571_v9, %v571_v9  ;;  %v836_v42 = vadd.f32 %v835_v38, %v571_v9 }
  0xe3   : > { %781 = vst [vmem:[%s1540_s10 + $0xb0] sm:$0xff] %v729_v16  ;;  %v684_v19 = vpop.f32.mrf.mxu1 }
  0xe4   : > { %766 = vst [vmem:[%s1540_s10 + $0x38] sm:$0xff] %v684_v19  ;;  %v908_v46 = vadd.f32 %v907_v41, %v877_v39 }
  0xe7   : > { %v1584_v13 = vpop.f32.mrf.mxu2 }
  0xe8   : > { %814 = vst [vmem:[%s1524_s30 + $0xb8] sm:$0xff] %v1584_v13 }
  0xe9   : > { %v574_v14 = vpop.f32.mrf.mxu0  ;;  %v732_v20 = vpop.f32.mrf.mxu3 }
  0xea   : > { %799 = vst [vmem:[%s1524_s30 + $0x40] sm:$0xff] %v574_v14  ;;  %v878_v44 = vmul.f32 %v574_v14, %v574_v14  ;;  %v837_v47 = vadd.f32 %v836_v42, %v574_v14 }
  0xeb   : > { %782 = vst [vmem:[%s1540_s10 + $0xb8] sm:$0xff] %v732_v20  ;;  %v687_v24 = vpop.f32.mrf.mxu1  ;;  %v1242_v20 = vmov 0.0  }
  0xec   : > { %767 = vst [vmem:[%s1540_s10 + $0x40] sm:$0xff] %v687_v24  ;;  %v909_v51 = vadd.f32 %v908_v46, %v878_v44  ;;  %v886_v24 = vmul.f32 %v1527_v21, %v1527_v21 }
  0xed   : > { %827 = vst [vmem:[%s1643_s13] sm:$0x1] %v1242_v20 }
  0xee   : > { %828 = vst [vmem:[%s1649_s16] sm:$0x1] %v1242_v20 }
  0xef   : > { %v1591_v17 = vpop.f32.mrf.mxu2 }
  0xf0   : > { %815 = vst [vmem:[%s1524_s30 + $0xc0] sm:$0xff] %v1591_v17 }
  0xf1   : > { %v577_v18 = vpop.f32.mrf.mxu0  ;;  %v735_v25 = vpop.f32.mrf.mxu3 }
  0xf2   : > { %800 = vst [vmem:[%s1524_s30 + $0x48] sm:$0xff] %v577_v18  ;;  %v879_v48 = vmul.f32 %v577_v18, %v577_v18  ;;  %v838_v52 = vadd.f32 %v837_v47, %v577_v18 }
  0xf3   : > { %783 = vst [vmem:[%s1540_s10 + $0xc0] sm:$0xff] %v735_v25  ;;  %v690_v28 = vpop.f32.mrf.mxu1 }
  0xf4   : > { %768 = vst [vmem:[%s1540_s10 + $0x48] sm:$0xff] %v690_v28  ;;  %v910_v55 = vadd.f32 %v909_v51, %v879_v48 }
  0xf7   : > { %v1598_v22 = vpop.f32.mrf.mxu2 }
  0xf8   : > { %816 = vst [vmem:[%s1524_s30 + $0xc8] sm:$0xff] %v1598_v22 }
  0xf9   : > { %v580_v23 = vpop.f32.mrf.mxu0  ;;  %v738_v29 = vpop.f32.mrf.mxu3 }
  0xfa   : > { %801 = vst [vmem:[%s1524_s30 + $0x50] sm:$0xff] %v580_v23  ;;  %v880_v53 = vmul.f32 %v580_v23, %v580_v23  ;;  %v839_v56 = vadd.f32 %v838_v52, %v580_v23  ;;  %v894_v52 = vmul.f32 %v1591_v17, %v1591_v17 }
  0xfb   : > { %784 = vst [vmem:[%s1540_s10 + $0xc8] sm:$0xff] %v738_v29  ;;  %v693_v32 = vpop.f32.mrf.mxu1  ;;  %v887_v29 = vmul.f32 %v1532_v43, %v1532_v43 }
  0xfc   : > { %769 = vst [vmem:[%s1540_s10 + $0x50] sm:$0xff] %v693_v32  ;;  %v911_v60 = vadd.f32 %v910_v55, %v880_v53 }
  0xff   : > { %v1605_v26 = vpop.f32.mrf.mxu2 }
 0x100   : > { %817 = vst [vmem:[%s1524_s30 + $0xd0] sm:$0xff] %v1605_v26 }
 0x101   : > { %v583_v27 = vpop.f32.mrf.mxu0  ;;  %v741_v34 = vpop.f32.mrf.mxu3 }
 0x102   : > { %802 = vst [vmem:[%s1524_s30 + $0x58] sm:$0xff] %v583_v27  ;;  %v881_v58 = vmul.f32 %v583_v27, %v583_v27  ;;  %v840_v61 = vadd.f32 %v839_v56, %v583_v27  ;;  %v895_v56 = vmul.f32 %v1598_v22, %v1598_v22 }
 0x103   : > { %785 = vst [vmem:[%s1540_s10 + $0xd0] sm:$0xff] %v741_v34  ;;  %v696_v45 = vpop.f32.mrf.mxu1  ;;  %v888_v34 = vmul.f32 %v1545_v50, %v1545_v50 }
 0x104   : > { %770 = vst [vmem:[%s1540_s10 + $0x58] sm:$0xff] %v696_v45  ;;  %v912_v1 = vadd.f32 %v911_v60, %v881_v58 }
 0x107   : > { %v1612_v30 = vpop.f32.mrf.mxu2 }
 0x108   : > { %818 = vst [vmem:[%s1524_s30 + $0xd8] sm:$0xff] %v1612_v30 }
 0x109   : > { %v586_v31 = vpop.f32.mrf.mxu0  ;;  %v744_v49 = vpop.f32.mrf.mxu3 }
 0x10a   : > { %803 = vst [vmem:[%s1524_s30 + $0x60] sm:$0xff] %v586_v31  ;;  %v882_v62 = vmul.f32 %v586_v31, %v586_v31  ;;  %v841_v2 = vadd.f32 %v840_v61, %v586_v31 }
 0x10b   : > { %786 = vst [vmem:[%s1540_s10 + $0xd8] sm:$0xff] %v744_v49  ;;  %v699_v63 = vpop.f32.mrf.mxu1 }
 0x10c   : > { %771 = vst [vmem:[%s1540_s10 + $0x60] sm:$0xff] %v699_v63  ;;  %v913_v6 = vadd.f32 %v912_v1, %v882_v62 }
 0x10f   : > { %v1620_v37 = vpop.f32.mrf.mxu2 }
 0x110   : > { %819 = vst [vmem:[%s1524_s30 + $0xe0] sm:$0xff] %v1620_v37 }
 0x111   : > { %v589_v40 = vpop.f32.mrf.mxu0  ;;  %v747_v5 = vpop.f32.mrf.mxu3 }
 0x112   : > { %804 = vst [vmem:[%s1524_s30 + $0x68] sm:$0xff] %v589_v40  ;;  %v883_v3 = vmul.f32 %v589_v40, %v589_v40  ;;  %v842_v7 = vadd.f32 %v841_v2, %v589_v40 }
 0x113   : > { %787 = vst [vmem:[%s1540_s10 + $0xe0] sm:$0xff] %v747_v5  ;;  %v702_v23 = vpop.f32.mrf.mxu1 }
 0x114   : > { %v914_v11 = vadd.f32 %v913_v6, %v883_v3  ;;  %772 = vst [vmem:[%s1540_s10 + $0x68] sm:$0xff] %v702_v23 }
 0x117   : > { %v1628_v54 = vpop.f32.mrf.mxu2 }
 0x118   : > { %820 = vst [vmem:[%s1524_s30 + $0xe8] sm:$0xff] %v1628_v54  ;;  %v899_v5 = vmul.f32 %v1628_v54, %v1628_v54 }
 0x119   : > { %v592_v59 = vpop.f32.mrf.mxu0  ;;  %v750_v28 = vpop.f32.mrf.mxu3 }
 0x11a   : > { %805 = vst [vmem:[%s1524_s30 + $0x70] sm:$0xff] %v592_v59  ;;  %v884_v9 = vmul.f32 %v592_v59, %v592_v59  ;;  %v843_v14 = vadd.f32 %v842_v7, %v592_v59 }
 0x11b   : > { %788 = vst [vmem:[%s1540_s10 + $0xe8] sm:$0xff] %v750_v28  ;;  %v705_v39 = vpop.f32.mrf.mxu1 }
 0x11c   : > { %v915_v16 = vadd.f32 %v914_v11, %v884_v9  ;;  %773 = vst [vmem:[%s1540_s10 + $0x70] sm:$0xff] %v705_v39 }
 0x11f   : > { %v1635_v10 = vpop.f32.mrf.mxu2 }
 0x120   : > { %821 = vst [vmem:[%s1524_s30 + $0xf0] sm:$0xff] %v1635_v10 }
 0x121   : > { %v595_v15 = vpop.f32.mrf.mxu0  ;;  %v753_v42 = vpop.f32.mrf.mxu3 }
 0x122   : > { %806 = vst [vmem:[%s1524_s30 + $0x78] sm:$0xff] %v595_v15  ;;  %v844_v18 = vadd.f32 %v843_v14, %v595_v15  ;;  %v885_v19 = vmul.f32 %v595_v15, %v595_v15 }
 0x123   : > { %789 = vst [vmem:[%s1540_s10 + $0xf0] sm:$0xff] %v753_v42  ;;  %v708_v51 = vpop.f32.mrf.mxu1 }
 0x124   : > { %v845_v25 = vadd.f32 %v844_v18, %v1527_v21  ;;  %v916_v27 = vadd.f32 %v915_v16, %v885_v19  ;;  %774 = vst [vmem:[%s1540_s10 + $0x78] sm:$0xff] %v708_v51 }
 0x126   : > { %v846_v31 = vadd.f32 %v845_v25, %v1532_v43  ;;  %v917_v32 = vadd.f32 %v916_v27, %v886_v24  ;;  %v890_v43 = vmul.f32 %v1563_v0, %v1563_v0  ;;  %v829_v25 = vld [vmem:[%s1643_s13] sm:$0x1] }
 0x127   : > { %v643_v33 = vpop.f32.mrf.mxu2 }
 0x128   : > { %v847_v35 = vadd.f32 %v846_v31, %v1545_v50  ;;  %v918_v21 = vadd.f32 %v917_v32, %v887_v29  ;;  %822 = vst [vmem:[%s1524_s30 + $0xf8] sm:$0xff] %v643_v33  ;;  %v891_v50 = vmul.f32 %v1570_v4, %v1570_v4  ;;  %v901_v7 = vmul.f32 %v643_v33, %v643_v33 }
 0x129   : > { %v756_v55 = vpop.f32.mrf.mxu3 }
 0x12a   : > { %v848_v12 = vadd.f32 %v847_v35, %v1552_v57  ;;  %v919_v38 = vadd.f32 %v918_v21, %v888_v34  ;;  %v892_v57 = vmul.f32 %v1577_v8, %v1577_v8  ;;  %790 = vst [vmem:[%s1540_s10 + $0xf8] sm:$0xff] %v756_v55 }
 0x12c   : > { %v849_v40 = vadd.f32 %v848_v12, %v1563_v0  ;;  %v920_v41 = vadd.f32 %v919_v38, %v889_v36  ;;  %v893_v0 = vmul.f32 %v1584_v13, %v1584_v13 }
 0x12e   : > { %v850_v44 = vadd.f32 %v849_v40, %v1570_v4  ;;  %v921_v45 = vadd.f32 %v920_v41, %v890_v43 }
 0x130   : > { %v922_v46 = vadd.f32 %v921_v45, %v891_v50  ;;  %v851_v47 = vadd.f32 %v850_v44, %v1577_v8 }
 0x132   : > { %v852_v48 = vadd.f32 %v851_v47, %v1584_v13  ;;  %v923_v49 = vadd.f32 %v922_v46, %v892_v57  ;;  %v896_v13 = vmul.f32 %v1605_v26, %v1605_v26 }
 0x134   : > { %v853_v4 = vadd.f32 %v852_v48, %v1591_v17  ;;  %v924_v53 = vadd.f32 %v923_v49, %v893_v0  ;;  %v897_v17 = vmul.f32 %v1612_v30, %v1612_v30 }
 0x136   : > { %v854_v8 = vadd.f32 %v853_v4, %v1598_v22  ;;  %v925_v58 = vadd.f32 %v924_v53, %v894_v52  ;;  %v898_v22 = vmul.f32 %v1620_v37, %v1620_v37 }
 0x138   : > { %v855_v59 = vadd.f32 %v854_v8, %v1605_v26  ;;  %v926_v60 = vadd.f32 %v925_v58, %v895_v56 }
 0x13a   : > { %v856_v61 = vadd.f32 %v855_v59, %v1612_v30  ;;  %v927_v62 = vadd.f32 %v926_v60, %v896_v13  ;;  %v900_v30 = vmul.f32 %v1635_v10, %v1635_v10 }
 0x13c   : > { %v928_v63 = vadd.f32 %v927_v62, %v897_v17  ;;  %v857_v1 = vadd.f32 %v856_v61, %v1620_v37 }
 0x13e   : > { %v929_v2 = vadd.f32 %v928_v63, %v898_v22  ;;  %v858_v3 = vadd.f32 %v857_v1, %v1628_v54 }
 0x140   : > { %v930_v26 = vadd.f32 %v929_v2, %v899_v5  ;;  %v859_v6 = vadd.f32 %v858_v3, %v1635_v10  ;;  %v869_v10 = vld [vmem:[%s1649_s16] sm:$0x1] }
 0x142   : > { %v931_v9 = vadd.f32 %v930_v26, %v900_v30  ;;  %v860_v11 = vadd.f32 %v859_v6, %v643_v33 }
 0x144   : > { %v861_v14 = vrot.slane %v860_v11, 4  ;;  %v932_v37 = vadd.f32 %v931_v9, %v901_v7 }
 0x146   : > { %v862_v15 = vadd.f32 %v861_v14, %v860_v11  ;;  %v933_v16 = vrot.slane %v932_v37, 4 }
 0x148   : > { %v863_v18 = vrot.slane %v862_v15, 2  ;;  %v934_v19 = vadd.f32 %v933_v16, %v932_v37 }
 0x14a   : > { %v864_v54 = vadd.f32 %v863_v18, %v862_v15  ;;  %v935_v20 = vrot.slane %v934_v19, 2 }
 0x14c   : > { %v865_v23 = vrot.slane %v864_v54, 1  ;;  %v936_v24 = vadd.f32 %v935_v20, %v934_v19 }
 0x14e   : > { %v866_v27 = vadd.f32 %v865_v23, %v864_v54  ;;  %v937_v28 = vrot.slane %v936_v24, 1 }
 0x150   : > { %v867_v29 = vadd.f32 %v866_v27, %v829_v25  ;;  %v938_v31 = vadd.f32 %v937_v28, %v936_v24 }
 0x152   : > { %868 = vst [vmem:[%s1643_s13] sm:$0x1] %v867_v29  ;;  %v939_v32 = vadd.f32 %v938_v31, %v869_v10 }
 0x154   : > { %940 = vst [vmem:[%s1649_s16] sm:$0x1] %v939_v32 }
 0x155 PF: > { %s18_s26 = sadd.s32 1, %s1240_s26   ;;  %s1727_s24 = smov %s1236_s25 }
 0x156   : > { %p15_p5 = scmp.ge.s32.totalorder %s18_s26, 4   ;;  %s1728_s25 = smov %s1730_s27 }
 0x158   :  { %17 = sbr.rel (!%p15_p5) target bundleno = 2 (0x2), region = 106 }

// kernel: preact_bottleneck.7
= control target key start
LH: loop header
LB: loop body
LE: loop exit
PB: predicated region body
PF: predicated region fallthrough
CT: control target
= control target key end

     0   :  { %s930_s18 = smov 0   ;;  %s932_s19 = smov 0   ;;  %s1199_s0 = inlined_call_operand.vmem [shape: f32[2,16,16,128], index: 0, kind: input, shape index: {}]   ;;  %s1200_s1 = inlined_call_operand.vmem [shape: f32[1,128], index: 1, kind: input, shape index: {}]   ;;  %s1201_s2 = inlined_call_operand.vmem [shape: f32[1,128], index: 2, kind: input, shape index: {}]   ;;  %s1202_s3 = inlined_call_operand.vmem [shape: f32[128,128], index: 3, kind: input, shape index: {}]   ;;  %s1203_s4 = inlined_call_operand.vmem [shape: f32[2,16,16,128], index: 4, kind: input, shape index: {}]   ;;  %s1204_s5 = inlined_call_operand.vmem [shape: f32[2,16,16,128], index: 5, kind: output, shape index: {}]  }
   0x1   :  { %s934_s20 = smov 0  }
   0x2 LB: > { %s27_s21 = sadd.s32 1, %s894_s19  ;;  %p790_p0 = scmp.ge.s32.totalorder %s898_s20, 1  ;;  %s898_s20 = sphi %s934_s20, %s15_s20   ;;  %s894_s19 = sphi %s932_s19, %s1206_s19   ;;  %s890_s18 = sphi %s930_s18, %s1205_s18  }
   0x3   : > { %p29_p1 = scmp.ge.s32.totalorder %s27_s21, 2  ;;  %p227_p2 = scmp.lt.s32.totalorder %s898_s20, 3 }
   0x5   : > { %s1208_s21 = smov (%p29_p1, %s27_s21), 0  ;;  %p228_p3 = pnand %p790_p0, %p227_p2 }
   0x6   : > { %p276_p4 = scmp.lt.s32.totalorder (!%p228_p3), %s890_s18, 1 }
   0x7   : > { %231 = sbr.rel (%p228_p3) target bundleno = 236 (0xec), region = 40 }
   0xc   : > { %v459_v0 = vld [vmem:[%s1202_s3 + $0x78] sm:$0xff]  ;;  %v458_v1 = vld [vmem:[%s1202_s3 + $0x70] sm:$0xff]  ;;  %v457_v2 = vld [vmem:[%s1202_s3 + $0x68] sm:$0xff]  ;;  %s1210_s18 = smov (!%p276_p4, %s890_s18), 1 }
   0xd   : > { %803 = vmatpush.msra.mxu2 %v459_v0  ;;  %804 = vmatpush.msra.mxu3 %v459_v0  ;;  %v456_v3 = vld [vmem:[%s1202_s3 + $0x60] sm:$0xff]  ;;  %v455_v4 = vld [vmem:[%s1202_s3 + $0x58] sm:$0xff]  ;;  %v454_v5 = vld [vmem:[%s1202_s3 + $0x50] sm:$0xff]  ;;  %s973_s11 = sshll.u32 %s1210_s18, 8 }
   0xe   : > { %460 = vmatpush.msra.mxu0 %v459_v0  ;;  %802 = vmatpush.msra.mxu1 %v459_v0  ;;  %v453_v6 = vld [vmem:[%s1202_s3 + $0x48] sm:$0xff]  ;;  %v452_v7 = vld [vmem:[%s1202_s3 + $0x40] sm:$0xff]  ;;  %v451_v8 = vld [vmem:[%s1202_s3 + $0x38] sm:$0xff]  ;;  %s985_s18 = scalar_lea.vmem %s1199_s0, %s973_s11  ;;  %s1126_s24 = scalar_lea.vmem %s1204_s5, %s973_s11 }
   0xf   : > { %806 = vmatpush.msra.mxu2 %v458_v1  ;;  %807 = vmatpush.msra.mxu3 %v458_v1  ;;  %v450_v9 = vld [vmem:[%s1202_s3 + $0x30] sm:$0xff]  ;;  %v993_v10 = vld [vmem:[%s1200_s1] ss:$0 sm:$0xff]  ;;  %v449_v13 = vld [vmem:[%s1202_s3 + $0x28] sm:$0xff] }
  0x10   : > { %461 = vmatpush.msra.mxu0 %v458_v1  ;;  %805 = vmatpush.msra.mxu1 %v458_v1  ;;  %v324_v11 = vld [vmem:[%s985_s18 + $0x80] sm:$0xff]  ;;  %v447_v20 = vld [vmem:[%s1202_s3 + $0x18] sm:$0xff]  ;;  %v446_v23 = vld [vmem:[%s1202_s3 + $0x10] sm:$0xff] }
  0x11   : > { %809 = vmatpush.msra.mxu2 %v457_v2  ;;  %810 = vmatpush.msra.mxu3 %v457_v2  ;;  %v332_v12 = vld [vmem:[%s985_s18 + $0xc0] sm:$0xff]  ;;  %v360_v17 = vmul.f32 %v993_v10, %v324_v11  ;;  %v325_v26 = vld [vmem:[%s985_s18 + $0x88] sm:$0xff]  ;;  %v326_v44 = vld [vmem:[%s985_s18 + $0x90] sm:$0xff] }
  0x12   : > { %462 = vmatpush.msra.mxu0 %v457_v2  ;;  %808 = vmatpush.msra.mxu1 %v457_v2  ;;  %v308_v14 = vld [vmem:[%s985_s18] sm:$0xff]  ;;  %v368_v19 = vmul.f32 %v993_v10, %v332_v12  ;;  %v333_v27 = vld [vmem:[%s985_s18 + $0xc8] sm:$0xff]  ;;  %v361_v36 = vmul.f32 %v993_v10, %v325_v26  ;;  %v334_v45 = vld [vmem:[%s985_s18 + $0xd0] sm:$0xff]  ;;  %v362_v52 = vmul.f32 %v993_v10, %v326_v44 }
  0x13   : > { %812 = vmatpush.msra.mxu2 %v456_v3  ;;  %813 = vmatpush.msra.mxu3 %v456_v3  ;;  %v316_v15 = vld [vmem:[%s985_s18 + $0x40] sm:$0xff]  ;;  %v344_v21 = vmul.f32 %v993_v10, %v308_v14  ;;  %v445_v28 = vld [vmem:[%s1202_s3 + $0x8] sm:$0xff]  ;;  %v369_v37 = vmul.f32 %v993_v10, %v333_v27  ;;  %v310_v48 = vld [vmem:[%s985_s18 + $0x10] sm:$0xff]  ;;  %v370_v53 = vmul.f32 %v993_v10, %v334_v45 }
  0x14   : > { %463 = vmatpush.msra.mxu0 %v456_v3  ;;  %811 = vmatpush.msra.mxu1 %v456_v3  ;;  %v448_v16 = vld [vmem:[%s1202_s3 + $0x20] sm:$0xff]  ;;  %v352_v22 = vmul.f32 %v993_v10, %v316_v15  ;;  %v309_v31 = vld [vmem:[%s985_s18 + $0x8] sm:$0xff]  ;;  %v318_v49 = vld [vmem:[%s985_s18 + $0x50] sm:$0xff]  ;;  %v346_v56 = vmul.f32 %v993_v10, %v310_v48 }
  0x15   : > { %815 = vmatpush.msra.mxu2 %v455_v4  ;;  %816 = vmatpush.msra.mxu3 %v455_v4  ;;  %v1009_v18 = vld [vmem:[%s1201_s2] ss:$0 sm:$0xff]  ;;  %v317_v32 = vld [vmem:[%s985_s18 + $0x48] sm:$0xff]  ;;  %v345_v40 = vmul.f32 %v993_v10, %v309_v31  ;;  %v354_v57 = vmul.f32 %v993_v10, %v318_v49  ;;  %v327_v60 = vld [vmem:[%s985_s18 + $0x98] sm:$0xff] }
  0x16   : > { %464 = vmatpush.msra.mxu0 %v455_v4  ;;  %814 = vmatpush.msra.mxu1 %v455_v4  ;;  %v396_v24 = vadd.f32 %v1009_v18, %v360_v17  ;;  %v404_v25 = vadd.f32 %v1009_v18, %v368_v19  ;;  %v380_v29 = vadd.f32 %v1009_v18, %v344_v21  ;;  %v444_v33 = vld [vmem:[%s1202_s3] sm:$0xff]  ;;  %v335_v61 = vld [vmem:[%s985_s18 + $0xd8] sm:$0xff]  ;;  %v337_v31 = vld [vmem:[%s985_s18 + $0xe8] sm:$0xff] }
  0x17   : > { %818 = vmatpush.msra.mxu2 %v454_v5  ;;  %819 = vmatpush.msra.mxu3 %v454_v5  ;;  %v388_v30 = vadd.f32 %v1009_v18, %v352_v22  ;;  %v353_v41 = vmul.f32 %v993_v10, %v317_v32  ;;  %v397_v42 = vadd.f32 %v1009_v18, %v361_v36  ;;  %v311_v0 = vld [vmem:[%s985_s18 + $0x18] sm:$0xff]  ;;  %v336_v14 = vld [vmem:[%s985_s18 + $0xe0] sm:$0xff] }
  0x18   : > { %465 = vmatpush.msra.mxu0 %v454_v5  ;;  %817 = vmatpush.msra.mxu1 %v454_v5  ;;  %v428_v34 = vmax.f32 %v396_v24, 0.0  ;;  %v436_v35 = vmax.f32 %v404_v25, 0.0  ;;  %v412_v38 = vmax.f32 %v380_v29, 0.0  ;;  %v405_v43 = vadd.f32 %v1009_v18, %v369_v37  ;;  %v319_v1 = vld [vmem:[%s985_s18 + $0x58] sm:$0xff]  ;;  %v312_v17 = vld [vmem:[%s985_s18 + $0x20] sm:$0xff] }
  0x19   : > { %821 = vmatpush.msra.mxu2 %v453_v6  ;;  %822 = vmatpush.msra.mxu3 %v453_v6  ;;  %v420_v39 = vmax.f32 %v388_v30, 0.0  ;;  %v381_v46 = vadd.f32 %v1009_v18, %v345_v40  ;;  %v389_v47 = vadd.f32 %v1009_v18, %v353_v41  ;;  %v429_v50 = vmax.f32 %v397_v42, 0.0  ;;  %v320_v19 = vld [vmem:[%s985_s18 + $0x60] sm:$0xff]  ;;  %v329_v30 = vld [vmem:[%s985_s18 + $0xa8] sm:$0xff] }
  0x1a   : > { %466 = vmatpush.msra.mxu0 %v453_v6  ;;  %820 = vmatpush.msra.mxu1 %v453_v6  ;;  %v437_v51 = vmax.f32 %v405_v43, 0.0  ;;  %v398_v58 = vadd.f32 %v1009_v18, %v362_v52  ;;  %v406_v59 = vadd.f32 %v1009_v18, %v370_v53  ;;  %v382_v62 = vadd.f32 %v1009_v18, %v346_v56 }
  0x1b   : > { %824 = vmatpush.msra.mxu2 %v452_v7  ;;  %825 = vmatpush.msra.mxu3 %v452_v7  ;;  %v413_v54 = vmax.f32 %v381_v46, 0.0  ;;  %v421_v55 = vmax.f32 %v389_v47, 0.0  ;;  %v390_v63 = vadd.f32 %v1009_v18, %v354_v57  ;;  %v363_v4 = vmul.f32 %v993_v10, %v327_v60  ;;  %v330_v46 = vld [vmem:[%s985_s18 + $0xb0] sm:$0xff] }
  0x1c   : > { %467 = vmatpush.msra.mxu0 %v452_v7  ;;  %823 = vmatpush.msra.mxu1 %v452_v7  ;;  %v430_v2 = vmax.f32 %v398_v58, 0.0  ;;  %v438_v3 = vmax.f32 %v406_v59, 0.0  ;;  %v371_v5 = vmul.f32 %v993_v10, %v335_v61  ;;  %v414_v6 = vmax.f32 %v382_v62, 0.0  ;;  %v338_v47 = vld [vmem:[%s985_s18 + $0xf0] sm:$0xff]  ;;  %v331_v62 = vld [vmem:[%s985_s18 + $0xb8] sm:$0xff] }
  0x1d   : > { %827 = vmatpush.msra.mxu2 %v451_v8  ;;  %828 = vmatpush.msra.mxu3 %v451_v8  ;;  %v422_v7 = vmax.f32 %v390_v63, 0.0  ;;  %v399_v11 = vadd.f32 %v1009_v18, %v363_v4  ;;  %v348_v26 = vmul.f32 %v993_v10, %v312_v17  ;;  %v356_v27 = vmul.f32 %v993_v10, %v320_v19  ;;  %v339_v63 = vld [vmem:[%s985_s18 + $0xf8] sm:$0xff] }
  0x1e   : > { %468 = vmatpush.msra.mxu0 %v451_v8  ;;  %826 = vmatpush.msra.mxu1 %v451_v8  ;;  %v347_v8 = vmul.f32 %v993_v10, %v311_v0  ;;  %v407_v12 = vadd.f32 %v1009_v18, %v371_v5 }
  0x1f   : > { %830 = vmatpush.msra.mxu2 %v450_v9  ;;  %831 = vmatpush.msra.mxu3 %v450_v9  ;;  %v384_v32 = vadd.f32 %v1009_v18, %v348_v26 }
  0x20   : > { %469 = vmatpush.msra.mxu0 %v450_v9  ;;  %829 = vmatpush.msra.mxu1 %v450_v9  ;;  %v355_v9 = vmul.f32 %v993_v10, %v319_v1  ;;  %v383_v15 = vadd.f32 %v1009_v18, %v347_v8  ;;  %v439_v21 = vmax.f32 %v407_v12, 0.0 }
  0x21   : > { %833 = vmatpush.msra.mxu2 %v449_v13  ;;  %834 = vmatpush.msra.mxu3 %v449_v13  ;;  %v416_v40 = vmax.f32 %v384_v32, 0.0 }
  0x22   : > { %470 = vmatpush.msra.mxu0 %v449_v13  ;;  %832 = vmatpush.msra.mxu1 %v449_v13  ;;  %v328_v13 = vld [vmem:[%s985_s18 + $0xa0] sm:$0xff]  ;;  %v415_v24 = vmax.f32 %v383_v15, 0.0 }
  0x23   : > { %836 = vmatpush.msra.mxu2 %v448_v16  ;;  %837 = vmatpush.msra.mxu3 %v448_v16  ;;  %v364_v22 = vmul.f32 %v993_v10, %v328_v13 }
  0x24   : > { %471 = vmatpush.msra.mxu0 %v448_v16  ;;  %835 = vmatpush.msra.mxu1 %v448_v16  ;;  %v391_v16 = vadd.f32 %v1009_v18, %v355_v9 }
  0x25   : > { %839 = vmatpush.msra.mxu2 %v447_v20  ;;  %840 = vmatpush.msra.mxu3 %v447_v20 }
  0x26   : > { %472 = vmatpush.msra.mxu0 %v447_v20  ;;  %838 = vmatpush.msra.mxu1 %v447_v20  ;;  %v431_v20 = vmax.f32 %v399_v11, 0.0  ;;  %v423_v25 = vmax.f32 %v391_v16, 0.0 }
  0x27   : > { %842 = vmatpush.msra.mxu2 %v446_v23  ;;  %843 = vmatpush.msra.mxu3 %v446_v23 }
  0x28   : > { %473 = vmatpush.msra.mxu0 %v446_v23  ;;  %841 = vmatpush.msra.mxu1 %v446_v23  ;;  %v372_v23 = vmul.f32 %v993_v10, %v336_v14 }
  0x29   : > { %845 = vmatpush.msra.mxu2 %v445_v28  ;;  %846 = vmatpush.msra.mxu3 %v445_v28 }
  0x2a   : > { %474 = vmatpush.msra.mxu0 %v445_v28  ;;  %844 = vmatpush.msra.mxu1 %v445_v28  ;;  %v400_v28 = vadd.f32 %v1009_v18, %v364_v22  ;;  %v408_v29 = vadd.f32 %v1009_v18, %v372_v23 }
  0x2b   : > { %848 = vmatpush.msra.mxu2 %v444_v33  ;;  %849 = vmatpush.msra.mxu3 %v444_v33 }
  0x2c   : > { %524 = vmatmul.f32.vlgmr.msra.gmra.mxu2 %v428_v34  ;;  %548 = vmatmul.f32.vlgmr.msra.gmra.mxu3 %v436_v35  ;;  %v313_v34 = vld [vmem:[%s985_s18 + $0x28] sm:$0xff]  ;;  %v432_v36 = vmax.f32 %v400_v28, 0.0  ;;  %v440_v37 = vmax.f32 %v408_v29, 0.0 }
  0x2d   : > { %475 = vmatpush.msra.mxu0 %v444_v33  ;;  %847 = vmatpush.msra.mxu1 %v444_v33  ;;  %v392_v33 = vadd.f32 %v1009_v18, %v356_v27  ;;  %v321_v35 = vld [vmem:[%s985_s18 + $0x68] sm:$0xff]  ;;  %v349_v42 = vmul.f32 %v993_v10, %v313_v34 }
  0x2e   : > { %476 = vmatmul.f32.vlgmr.msra.gmra.mxu0 %v412_v38  ;;  %500 = vmatmul.f32.vlgmr.msra.gmra.mxu1 %v420_v39  ;;  %v365_v38 = vmul.f32 %v993_v10, %v329_v30  ;;  %v373_v39 = vmul.f32 %v993_v10, %v337_v31  ;;  %v357_v43 = vmul.f32 %v993_v10, %v321_v35 }
  0x2f   : > { %v424_v41 = vmax.f32 %v392_v33, 0.0  ;;  %v385_v48 = vadd.f32 %v1009_v18, %v349_v42 }
  0x30   : > { %v401_v44 = vadd.f32 %v1009_v18, %v365_v38  ;;  %v409_v45 = vadd.f32 %v1009_v18, %v373_v39  ;;  %v393_v49 = vadd.f32 %v1009_v18, %v357_v43 }
  0x31   : > { %v417_v56 = vmax.f32 %v385_v48, 0.0 }
  0x32   : > { %v433_v52 = vmax.f32 %v401_v44, 0.0  ;;  %v441_v53 = vmax.f32 %v409_v45, 0.0  ;;  %v425_v57 = vmax.f32 %v393_v49, 0.0 }
  0x34   : > { %527 = vmatmul.f32.gmra.mxu2 %v429_v50  ;;  %551 = vmatmul.f32.gmra.mxu3 %v437_v51  ;;  %v314_v50 = vld [vmem:[%s985_s18 + $0x30] sm:$0xff] }
  0x35   : > { %v322_v51 = vld [vmem:[%s985_s18 + $0x70] sm:$0xff]  ;;  %v350_v58 = vmul.f32 %v993_v10, %v314_v50 }
  0x36   : > { %479 = vmatmul.f32.gmra.mxu0 %v413_v54  ;;  %503 = vmatmul.f32.gmra.mxu1 %v421_v55  ;;  %v366_v54 = vmul.f32 %v993_v10, %v330_v46  ;;  %v374_v55 = vmul.f32 %v993_v10, %v338_v47  ;;  %v358_v59 = vmul.f32 %v993_v10, %v322_v51 }
  0x37   : > { %v386_v0 = vadd.f32 %v1009_v18, %v350_v58 }
  0x38   : > { %v402_v60 = vadd.f32 %v1009_v18, %v366_v54  ;;  %v410_v61 = vadd.f32 %v1009_v18, %v374_v55  ;;  %v394_v1 = vadd.f32 %v1009_v18, %v358_v59 }
  0x39   : > { %v418_v8 = vmax.f32 %v386_v0, 0.0 }
  0x3a   : > { %v434_v4 = vmax.f32 %v402_v60, 0.0  ;;  %v442_v5 = vmax.f32 %v410_v61, 0.0  ;;  %v426_v9 = vmax.f32 %v394_v1, 0.0 }
  0x3c   : > { %530 = vmatmul.f32.gmra.mxu2 %v430_v2  ;;  %554 = vmatmul.f32.gmra.mxu3 %v438_v3  ;;  %v315_v2 = vld [vmem:[%s985_s18 + $0x38] sm:$0xff] }
  0x3d   : > { %v323_v3 = vld [vmem:[%s985_s18 + $0x78] sm:$0xff]  ;;  %v351_v11 = vmul.f32 %v993_v10, %v315_v2  ;;  %s1118_s18 = scalar_lea.vmem %s1203_s4, %s973_s11 }
  0x3e   : > { %482 = vmatmul.f32.gmra.mxu0 %v414_v6  ;;  %506 = vmatmul.f32.gmra.mxu1 %v422_v7  ;;  %v367_v6 = vmul.f32 %v993_v10, %v331_v62  ;;  %v375_v7 = vmul.f32 %v993_v10, %v339_v63  ;;  %v359_v12 = vmul.f32 %v993_v10, %v323_v3  ;;  %v573_v10 = vld [vmem:[%s1118_s18] sm:$0xff]  ;;  %v574_v32 = vld [vmem:[%s1118_s18 + $0x8] sm:$0xff]  ;;  %v575_v44 = vld [vmem:[%s1118_s18 + $0x10] sm:$0xff] }
  0x3f   : > { %v387_v15 = vadd.f32 %v1009_v18, %v351_v11  ;;  %v589_v26 = vld [vmem:[%s1118_s18 + $0x80] sm:$0xff]  ;;  %v582_v33 = vld [vmem:[%s1118_s18 + $0x48] sm:$0xff]  ;;  %v583_v45 = vld [vmem:[%s1118_s18 + $0x50] sm:$0xff] }
  0x40   : > { %v403_v13 = vadd.f32 %v1009_v18, %v367_v6  ;;  %v411_v14 = vadd.f32 %v1009_v18, %v375_v7  ;;  %v395_v16 = vadd.f32 %v1009_v18, %v359_v12  ;;  %v581_v18 = vld [vmem:[%s1118_s18 + $0x40] sm:$0xff]  ;;  %v590_v38 = vld [vmem:[%s1118_s18 + $0x88] sm:$0xff]  ;;  %v591_v50 = vld [vmem:[%s1118_s18 + $0x90] sm:$0xff] }
  0x41   : > { %v597_v27 = vld [vmem:[%s1118_s18 + $0xc0] sm:$0xff]  ;;  %v598_v39 = vld [vmem:[%s1118_s18 + $0xc8] sm:$0xff]  ;;  %v599_v51 = vld [vmem:[%s1118_s18 + $0xd0] sm:$0xff] }
  0x42   : > { %v435_v17 = vmax.f32 %v403_v13, 0.0  ;;  %v443_v19 = vmax.f32 %v411_v14, 0.0  ;;  %v592_v62 = vld [vmem:[%s1118_s18 + $0x98] sm:$0xff]  ;;  %v593_v11 = vld [vmem:[%s1118_s18 + $0xa0] sm:$0xff] }
  0x43   : > { %v600_v63 = vld [vmem:[%s1118_s18 + $0xd8] sm:$0xff]  ;;  %v601_v12 = vld [vmem:[%s1118_s18 + $0xe0] sm:$0xff] }
  0x44   : > { %533 = vmatmul.f32.gmra.mxu2 %v431_v20  ;;  %557 = vmatmul.f32.gmra.mxu3 %v439_v21  ;;  %v419_v20 = vmax.f32 %v387_v15, 0.0  ;;  %v427_v21 = vmax.f32 %v395_v16, 0.0 }
  0x46   : > { %485 = vmatmul.f32.gmra.mxu0 %v415_v24  ;;  %509 = vmatmul.f32.gmra.mxu1 %v423_v25 }
  0x4c   : > { %536 = vmatmul.f32.gmra.mxu2 %v432_v36  ;;  %560 = vmatmul.f32.gmra.mxu3 %v440_v37 }
  0x4e   : > { %488 = vmatmul.f32.gmra.mxu0 %v416_v40  ;;  %512 = vmatmul.f32.gmra.mxu1 %v424_v41 }
  0x54   : > { %539 = vmatmul.f32.gmra.mxu2 %v433_v52  ;;  %563 = vmatmul.f32.gmra.mxu3 %v441_v53 }
  0x56   : > { %491 = vmatmul.f32.gmra.mxu0 %v417_v56  ;;  %515 = vmatmul.f32.gmra.mxu1 %v425_v57  ;;  %v576_v56 = vld [vmem:[%s1118_s18 + $0x18] sm:$0xff] }
  0x57   : > { %v584_v57 = vld [vmem:[%s1118_s18 + $0x58] sm:$0xff] }
  0x5c   : > { %542 = vmatmul.f32.gmra.mxu2 %v434_v4  ;;  %566 = vmatmul.f32.gmra.mxu3 %v442_v5  ;;  %v577_v4 = vld [vmem:[%s1118_s18 + $0x20] sm:$0xff] }
  0x5d   : > { %v585_v5 = vld [vmem:[%s1118_s18 + $0x60] sm:$0xff] }
  0x5e   : > { %494 = vmatmul.f32.gmra.mxu0 %v418_v8  ;;  %518 = vmatmul.f32.gmra.mxu1 %v426_v9 }
  0x64   : > { %545 = vmatmul.f32.gmra.mxu2 %v435_v17  ;;  %569 = vmatmul.f32.gmra.mxu3 %v443_v19  ;;  %v578_v17 = vld [vmem:[%s1118_s18 + $0x28] sm:$0xff] }
  0x65   : > { %v586_v19 = vld [vmem:[%s1118_s18 + $0x68] sm:$0xff] }
  0x66   : > { %497 = vmatmul.f32.gmra.mxu0 %v419_v20  ;;  %521 = vmatmul.f32.gmra.mxu1 %v427_v21 }
  0xab   : > { %v477_v22 = vpop.f32.mrf.mxu0  ;;  %v501_v23 = vpop.f32.mrf.mxu1 }
  0xac   : > { %v605_v24 = vadd.f32 %v573_v10, %v477_v22  ;;  %v613_v25 = vadd.f32 %v581_v18, %v501_v23  ;;  %v594_v22 = vld [vmem:[%s1118_s18 + $0xa8] sm:$0xff] }
  0xad   : > { %v602_v23 = vld [vmem:[%s1118_s18 + $0xe8] sm:$0xff] }
  0xae   : > { %637 = vst [vmem:[%s1126_s24] sm:$0xff] %v605_v24 }
  0xaf   : > { %645 = vst [vmem:[%s1126_s24 + $0x40] sm:$0xff] %v613_v25  ;;  %v525_v28 = vpop.f32.mrf.mxu2  ;;  %v549_v29 = vpop.f32.mrf.mxu3 }
  0xb0   : > { %v621_v30 = vadd.f32 %v589_v26, %v525_v28  ;;  %v629_v31 = vadd.f32 %v597_v27, %v549_v29  ;;  %v579_v28 = vld [vmem:[%s1118_s18 + $0x30] sm:$0xff] }
  0xb1   : > { %v587_v29 = vld [vmem:[%s1118_s18 + $0x70] sm:$0xff] }
  0xb2   : > { %653 = vst [vmem:[%s1126_s24 + $0x80] sm:$0xff] %v621_v30 }
  0xb3   : > { %661 = vst [vmem:[%s1126_s24 + $0xc0] sm:$0xff] %v629_v31  ;;  %v480_v34 = vpop.f32.mrf.mxu0  ;;  %v504_v35 = vpop.f32.mrf.mxu1 }
  0xb4   : > { %v606_v36 = vadd.f32 %v574_v32, %v480_v34  ;;  %v614_v37 = vadd.f32 %v582_v33, %v504_v35  ;;  %v595_v34 = vld [vmem:[%s1118_s18 + $0xb0] sm:$0xff] }
  0xb5   : > { %v603_v35 = vld [vmem:[%s1118_s18 + $0xf0] sm:$0xff] }
  0xb6   : > { %638 = vst [vmem:[%s1126_s24 + $0x8] sm:$0xff] %v606_v36 }
  0xb7   : > { %646 = vst [vmem:[%s1126_s24 + $0x48] sm:$0xff] %v614_v37  ;;  %v528_v40 = vpop.f32.mrf.mxu2  ;;  %v552_v41 = vpop.f32.mrf.mxu3 }
  0xb8   : > { %v622_v42 = vadd.f32 %v590_v38, %v528_v40  ;;  %v630_v43 = vadd.f32 %v598_v39, %v552_v41  ;;  %v580_v40 = vld [vmem:[%s1118_s18 + $0x38] sm:$0xff] }
  0xb9   : > { %v588_v41 = vld [vmem:[%s1118_s18 + $0x78] sm:$0xff] }
  0xba   : > { %654 = vst [vmem:[%s1126_s24 + $0x88] sm:$0xff] %v622_v42 }
  0xbb   : > { %662 = vst [vmem:[%s1126_s24 + $0xc8] sm:$0xff] %v630_v43  ;;  %v483_v46 = vpop.f32.mrf.mxu0  ;;  %v507_v47 = vpop.f32.mrf.mxu1 }
  0xbc   : > { %v607_v48 = vadd.f32 %v575_v44, %v483_v46  ;;  %v615_v49 = vadd.f32 %v583_v45, %v507_v47  ;;  %v596_v46 = vld [vmem:[%s1118_s18 + $0xb8] sm:$0xff] }
  0xbd   : > { %v604_v47 = vld [vmem:[%s1118_s18 + $0xf8] sm:$0xff] }
  0xbe   : > { %639 = vst [vmem:[%s1126_s24 + $0x10] sm:$0xff] %v607_v48 }
  0xbf   : > { %647 = vst [vmem:[%s1126_s24 + $0x50] sm:$0xff] %v615_v49  ;;  %v531_v52 = vpop.f32.mrf.mxu2  ;;  %v555_v53 = vpop.f32.mrf.mxu3 }
  0xc0   : > { %v623_v54 = vadd.f32 %v591_v50, %v531_v52  ;;  %v631_v55 = vadd.f32 %v599_v51, %v555_v53 }
  0xc2   : > { %655 = vst [vmem:[%s1126_s24 + $0x90] sm:$0xff] %v623_v54 }
  0xc3   : > { %663 = vst [vmem:[%s1126_s24 + $0xd0] sm:$0xff] %v631_v55  ;;  %v486_v58 = vpop.f32.mrf.mxu0  ;;  %v510_v59 = vpop.f32.mrf.mxu1 }
  0xc4   : > { %v608_v60 = vadd.f32 %v576_v56, %v486_v58  ;;  %v616_v61 = vadd.f32 %v584_v57, %v510_v59 }
  0xc6   : > { %640 = vst [vmem:[%s1126_s24 + $0x18] sm:$0xff] %v608_v60 }
  0xc7   : > { %648 = vst [vmem:[%s1126_s24 + $0x58] sm:$0xff] %v616_v61  ;;  %v534_v0 = vpop.f32.mrf.mxu2  ;;  %v558_v1 = vpop.f32.mrf.mxu3 }
  0xc8   : > { %v624_v2 = vadd.f32 %v592_v62, %v534_v0  ;;  %v632_v3 = vadd.f32 %v600_v63, %v558_v1 }
  0xca   : > { %656 = vst [vmem:[%s1126_s24 + $0x98] sm:$0xff] %v624_v2 }
  0xcb   : > { %664 = vst [vmem:[%s1126_s24 + $0xd8] sm:$0xff] %v632_v3  ;;  %v489_v6 = vpop.f32.mrf.mxu0  ;;  %v513_v7 = vpop.f32.mrf.mxu1 }
  0xcc   : > { %v609_v8 = vadd.f32 %v577_v4, %v489_v6  ;;  %v617_v9 = vadd.f32 %v585_v5, %v513_v7 }
  0xce   : > { %641 = vst [vmem:[%s1126_s24 + $0x20] sm:$0xff] %v609_v8 }
  0xcf   : > { %649 = vst [vmem:[%s1126_s24 + $0x60] sm:$0xff] %v617_v9  ;;  %v537_v13 = vpop.f32.mrf.mxu2  ;;  %v561_v14 = vpop.f32.mrf.mxu3 }
  0xd0   : > { %v625_v15 = vadd.f32 %v593_v11, %v537_v13  ;;  %v633_v16 = vadd.f32 %v601_v12, %v561_v14 }
  0xd2   : > { %657 = vst [vmem:[%s1126_s24 + $0xa0] sm:$0xff] %v625_v15 }
  0xd3   : > { %665 = vst [vmem:[%s1126_s24 + $0xe0] sm:$0xff] %v633_v16  ;;  %v492_v20 = vpop.f32.mrf.mxu0  ;;  %v516_v21 = vpop.f32.mrf.mxu1 }
  0xd4   : > { %v610_v10 = vadd.f32 %v578_v17, %v492_v20  ;;  %v618_v18 = vadd.f32 %v586_v19, %v516_v21 }
  0xd6   : > { %642 = vst [vmem:[%s1126_s24 + $0x28] sm:$0xff] %v610_v10 }
  0xd7   : > { %650 = vst [vmem:[%s1126_s24 + $0x68] sm:$0xff] %v618_v18  ;;  %v540_v24 = vpop.f32.mrf.mxu2  ;;  %v564_v25 = vpop.f32.mrf.mxu3 }
  0xd8   : > { %v626_v26 = vadd.f32 %v594_v22, %v540_v24  ;;  %v634_v27 = vadd.f32 %v602_v23, %v564_v25 }
  0xda   : > { %658 = vst [vmem:[%s1126_s24 + $0xa8] sm:$0xff] %v626_v26 }
  0xdb   : > { %666 = vst [vmem:[%s1126_s24 + $0xe8] sm:$0xff] %v634_v27  ;;  %v495_v30 = vpop.f32.mrf.mxu0  ;;  %v519_v31 = vpop.f32.mrf.mxu1 }
  0xdc   : > { %v611_v32 = vadd.f32 %v579_v28, %v495_v30  ;;  %v619_v33 = vadd.f32 %v587_v29, %v519_v31 }
  0xde   : > { %643 = vst [vmem:[%s1126_s24 + $0x30] sm:$0xff] %v611_v32 }
  0xdf   : > { %651 = vst [vmem:[%s1126_s24 + $0x70] sm:$0xff] %v619_v33  ;;  %v543_v36 = vpop.f32.mrf.mxu2  ;;  %v567_v37 = vpop.f32.mrf.mxu3 }
  0xe0   : > { %v627_v38 = vadd.f32 %v595_v34, %v543_v36  ;;  %v635_v39 = vadd.f32 %v603_v35, %v567_v37 }
  0xe2   : > { %659 = vst [vmem:[%s1126_s24 + $0xb0] sm:$0xff] %v627_v38 }
  0xe3   : > { %667 = vst [vmem:[%s1126_s24 + $0xf0] sm:$0xff] %v635_v39  ;;  %v498_v42 = vpop.f32.mrf.mxu0  ;;  %v522_v43 = vpop.f32.mrf.mxu1 }
  0xe4   : > { %v612_v44 = vadd.f32 %v580_v40, %v498_v42  ;;  %v620_v45 = vadd.f32 %v588_v41, %v522_v43 }
  0xe6   : > { %644 = vst [vmem:[%s1126_s24 + $0x38] sm:$0xff] %v612_v44 }
  0xe7   : > { %652 = vst [vmem:[%s1126_s24 + $0x78] sm:$0xff] %v620_v45  ;;  %v546_v48 = vpop.f32.mrf.mxu2  ;;  %v570_v49 = vpop.f32.mrf.mxu3 }
  0xe8   : > { %v628_v50 = vadd.f32 %v596_v46, %v546_v48  ;;  %v636_v51 = vadd.f32 %v604_v47, %v570_v49 }
  0xea   : > { %660 = vst [vmem:[%s1126_s24 + $0xb8] sm:$0xff] %v628_v50 }
  0xeb   : > { %668 = vst [vmem:[%s1126_s24 + $0xf8] sm:$0xff] %v636_v51 }
  0xec PF: > { %s15_s20 = sadd.s32 1, %s898_s20   ;;  %s1205_s18 = smov %s894_s19 }
  0xed   : > { %p12_p5 = scmp.ge.s32.totalorder %s15_s20, 4   ;;  %s1206_s19 = smov %s1208_s21 }
  0xef   :  { %14 = sbr.rel (!%p12_p5) target bundleno = 2 (0x2), region = 73 }

// kernel: preact_bottleneck.6
= control target key start
LH: loop header
LB: loop body
LE: loop exit
PB: predicated region body
PF: predicated region fallthrough
CT: control target
= control target key end

     0   :  { %s3368_s21 = smov 0   ;;  %s4943_s0 = inlined_call_operand.vmem [shape: f32[2,16,16,128], index: 0, kind: input, shape index: {}]   ;;  %s4944_s1 = inlined_call_operand.vmem [shape: f32[1,128], index: 1, kind: input, shape index: {}]   ;;  %s4945_s2 = inlined_call_operand.vmem [shape: f32[1,128], index: 2, kind: input, shape index: {}]   ;;  %s4946_s3 = inlined_call_operand.vmem [shape: f32[3,384,128], index: 3, kind: input, shape index: {}]   ;;  %s4947_s4 = inlined_call_operand.vmem [shape: f32[2,16,16,128], index: 4, kind: output, shape index: {0}]   ;;  %s4948_s5 = inlined_call_operand.vmem [shape: f32[2,1,128], index: 5, kind: output, shape index: {1}]   ;;  %s4949_s6 = inlined_call_operand.vmem [shape: f32[2,1,128], index: 6, kind: output, shape index: {2}]  }
   0x1 LB: > { %s3104_s22 = sadd.s32 4294967295, %s3330_s21   ;;  %p3108_p0 = scmp.ge.s32.totalorder %s3330_s21, 1  ;;  %s3330_s21 = sphi %s3368_s21, %s17_s21  }
   0x2   : > { %p217_p1 = scmp.lt.s32.totalorder %s3330_s21, 3 }
   0x4   : > { %p218_p2 = pnand %p3108_p0, %p217_p1 }
   0x6   : > { %221 = sbr.rel (%p218_p2) target bundleno = 783 (0x30f), region = 36 }
   0xb   : > { %v814_v0 = vld [vmem:[%s4946_s3 + $0x78] sm:$0xff]  ;;  %v813_v1 = vld [vmem:[%s4946_s3 + $0x70] sm:$0xff]  ;;  %p253_p3 = scmp.lt.s32.totalorder %s3104_s22, 1  ;;  %v3332_v2 = vmov 0.0   ;;  %v812_v3 = vld [vmem:[%s4946_s3 + $0x68] sm:$0xff]  ;;  %vm573_vm0 = vcmask 1046528  }
   0xc   : > { %3213 = vmatpush.msra.mxu1 %v814_v0  ;;  %3214 = vmatpush.msra.mxu2 %v814_v0  ;;  %448 = vst [vmem:[#allocation2 + $0x60] sm:$0x1] %v3332_v2  ;;  %v811_v4 = vld [vmem:[%s4946_s3 + $0x60] sm:$0xff]  ;;  %v810_v5 = vld [vmem:[%s4946_s3 + $0x58] sm:$0xff]  ;;  %v809_v10 = vld [vmem:[%s4946_s3 + $0x50] sm:$0xff]  ;;  %vm686_vm1 = vcmask 1045504  }
   0xd   : > { %3215 = vmatpush.msra.mxu3 %v814_v0  ;;  %847 = vmatpush.msra.mxu0 %v814_v0  ;;  %s5133_s22 = smov (!%p253_p3, %s3104_s22), 1  ;;  %438 = vst [vmem:[#allocation2] sm:$0xff] %v3332_v2  ;;  %v3407_v6 = vld [vmem:[%s4944_s1] ss:$0 sm:$0xff]  ;;  %v808_v12 = vld [vmem:[%s4946_s3 + $0x48] sm:$0xff]  ;;  %v806_v15 = vld [vmem:[%s4946_s3 + $0x38] sm:$0xff] }
   0xe   : > { %3216 = vmatpush.msra.mxu1 %v813_v1  ;;  %3217 = vmatpush.msra.mxu2 %v813_v1  ;;  %s3211_s7 = sshll.u32 %s5133_s22, 8  ;;  %440 = vst [vmem:[#allocation2 + $0x10] sm:$0x3] %v3332_v2  ;;  %v3413_v8 = vld [vmem:[%s4945_s2] ss:$0 sm:$0xff]  ;;  %v805_v16 = vld [vmem:[%s4946_s3 + $0x30] sm:$0xff]  ;;  %s265_s24 = scalar_lea.vmem %s4948_s5, %s5133_s22 }
   0xf   : > { %3218 = vmatpush.msra.mxu3 %v813_v1  ;;  %848 = vmatpush.msra.mxu0 %v813_v1  ;;  %s3402_s12 = scalar_lea.vmem %s4943_s0, %s3211_s7  ;;  %444 = vst [vmem:[#allocation2 + $0x1a8] sm:$0x3] %v3332_v2  ;;  %v807_v14 = vld [vmem:[%s4946_s3 + $0x40] sm:$0xff]  ;;  %v804_v17 = vld [vmem:[%s4946_s3 + $0x28] sm:$0xff]  ;;  %v802_v19 = vld [vmem:[%s4946_s3 + $0x18] sm:$0xff]  ;;  %s4704_s20 = scalar_lea.vmem %s4947_s4, %s3211_s7 }
  0x10   : > { %3219 = vmatpush.msra.mxu1 %v812_v3  ;;  %3220 = vmatpush.msra.mxu2 %v812_v3  ;;  %v275_v7 = vld [vmem:[%s3402_s12 + $0x30] sm:$0xff]  ;;  %445 = vst [vmem:[#allocation2 + $0x18] sm:$0x1] %v3332_v2  ;;  %v803_v18 = vld [vmem:[%s4946_s3 + $0x20] sm:$0xff]  ;;  %v800_v22 = vld [vmem:[%s4946_s3 + $0x8] sm:$0xff]  ;;  %s268_s27 = scalar_lea.vmem %s4949_s6, %s5133_s22 }
  0x11   : > { %3221 = vmatpush.msra.mxu3 %v812_v3  ;;  %849 = vmatpush.msra.mxu0 %v812_v3  ;;  %v311_v9 = vmul.f32 %v3407_v6, %v275_v7  ;;  %446 = vst [vmem:[#allocation2 + $0x30] sm:$0x1] %v3332_v2  ;;  %v801_v20 = vld [vmem:[%s4946_s3 + $0x10] sm:$0xff]  ;;  %v276_v24 = vld [vmem:[%s3402_s12 + $0x38] sm:$0xff]  ;;  %v799_v25 = vld [vmem:[%s4946_s3] sm:$0xff] }
  0x12   : > { %3222 = vmatpush.msra.mxu1 %v811_v4  ;;  %3223 = vmatpush.msra.mxu2 %v811_v4  ;;  %447 = vst [vmem:[#allocation2 + $0x48] sm:$0x1] %v3332_v2  ;;  %v283_v21 = vld [vmem:[%s3402_s12 + $0x70] sm:$0xff]  ;;  %v284_v27 = vld [vmem:[%s3402_s12 + $0x78] sm:$0xff]  ;;  %v312_v33 = vmul.f32 %v3407_v6, %v276_v24  ;;  %v277_v34 = vld [vmem:[%s3402_s12 + $0x40] sm:$0xff] }
  0x13   : > { %3224 = vmatpush.msra.mxu3 %v811_v4  ;;  %850 = vmatpush.msra.mxu0 %v811_v4  ;;  %v347_v11 = vadd.f32 %v3413_v8, %v311_v9  ;;  %449 = vst [vmem:[#allocation2 + $0x78] sm:$0x1] %v3332_v2  ;;  %v291_v23 = vld [vmem:[%s3402_s12 + $0xb0] sm:$0xff]  ;;  %v319_v26 = vmul.f32 %v3407_v6, %v283_v21  ;;  %v292_v30 = vld [vmem:[%s3402_s12 + $0xb8] sm:$0xff]  ;;  %v285_v37 = vld [vmem:[%s3402_s12 + $0x80] sm:$0xff] }
  0x14   : > { %3225 = vmatpush.msra.mxu1 %v810_v5  ;;  %3226 = vmatpush.msra.mxu2 %v810_v5  ;;  %450 = vst [vmem:[#allocation2 + $0x90] sm:$0x1] %v3332_v2  ;;  %v327_v29 = vmul.f32 %v3407_v6, %v291_v23  ;;  %v846_v31 = vld [vmem:[%s4946_s3 + $0x178] sm:$0xff]  ;;  %v320_v36 = vmul.f32 %v3407_v6, %v284_v27  ;;  %v845_v39 = vld [vmem:[%s4946_s3 + $0x170] sm:$0xff]  ;;  %v293_v42 = vld [vmem:[%s3402_s12 + $0xc0] sm:$0xff] }
  0x15   : > { %3227 = vmatpush.msra.mxu3 %v810_v5  ;;  %851 = vmatpush.msra.mxu0 %v810_v5  ;;  %v379_v13 = vmax.f32 %v347_v11, 0.0  ;;  %451 = vst [vmem:[#allocation2 + $0xa8] sm:$0x1] %v3332_v2  ;;  %v3128_v32 = vld [vmem:[%s4946_s3 + $0x1f8] sm:$0xff]  ;;  %v3499_v38 = vadd.f32 %v3413_v8, %v319_v26  ;;  %v3127_v40 = vld [vmem:[%s4946_s3 + $0x1f0] sm:$0xff]  ;;  %v328_v41 = vmul.f32 %v3407_v6, %v292_v30  ;;  %v269_v46 = vld [vmem:[%s3402_s12] sm:$0xff] }
  0x16   : > { %3228 = vmatpush.msra.mxu1 %v809_v10  ;;  %3229 = vmatpush.msra.mxu2 %v809_v10  ;;  %452 = vst [vmem:[#allocation2 + $0xc0] sm:$0x1] %v3332_v2  ;;  %v830_v35 = vld [vmem:[%s4946_s3 + $0xf8] sm:$0xff]  ;;  %v3511_v43 = vadd.f32 %v3413_v8, %v327_v29  ;;  %v829_v44 = vld [vmem:[%s4946_s3 + $0xf0] sm:$0xff]  ;;  %v313_v45 = vmul.f32 %v3407_v6, %v277_v34  ;;  %v844_v48 = vld [vmem:[%s4946_s3 + $0x168] sm:$0xff] }
  0x17   : > { %3230 = vmatpush.msra.mxu3 %v809_v10  ;;  %852 = vmatpush.msra.mxu0 %v809_v10  ;;  %412 = vst [vmem:[#allocation2 + $0x61] sm:$0xff] %v379_v13  ;;  %v3520_v47 = vadd.f32 %v3413_v8, %v312_v33  ;;  %v3126_v49 = vld [vmem:[%s4946_s3 + $0x1e8] sm:$0xff]  ;;  %v321_v50 = vmul.f32 %v3407_v6, %v285_v37  ;;  %v3144_v53 = vld [vmem:[%s4946_s3 + $0x278] sm:$0xff]  ;;  %v387_v57 = vmax.f32 %v3499_v38, 0.0  ;;  %v843_v59 = vld [vmem:[%s4946_s3 + $0x160] sm:$0xff] }
  0x18   : > { %3231 = vmatpush.msra.mxu1 %v808_v12  ;;  %3232 = vmatpush.msra.mxu2 %v808_v12  ;;  %453 = vst [vmem:[#allocation2 + $0xd8] sm:$0x1] %v3332_v2  ;;  %v278_v51 = vld [vmem:[%s3402_s12 + $0x48] sm:$0xff]  ;;  %v3532_v52 = vadd.f32 %v3413_v8, %v320_v36  ;;  %v329_v55 = vmul.f32 %v3407_v6, %v293_v42  ;;  %v3125_v60 = vld [vmem:[%s4946_s3 + $0x1e0] sm:$0xff]  ;;  %v395_v63 = vmax.f32 %v3511_v43, 0.0  ;;  %v3143_v0 = vld [vmem:[%s4946_s3 + $0x270] sm:$0xff] }
  0x19   : > { %3233 = vmatpush.msra.mxu3 %v808_v12  ;;  %853 = vmatpush.msra.mxu0 %v808_v12  ;;  %454 = vst [vmem:[#allocation2 + $0xf0] sm:$0x1] %v3332_v2  ;;  %v828_v54 = vld [vmem:[%s4946_s3 + $0xe8] sm:$0xff]  ;;  %v3546_v58 = vadd.f32 %v3413_v8, %v328_v41  ;;  %v305_v61 = vmul.f32 %v3407_v6, %v269_v46  ;;  %v827_v3 = vld [vmem:[%s4946_s3 + $0xe0] sm:$0xff]  ;;  %v380_v7 = vmax.f32 %v3520_v47, 0.0  ;;  %v842_v10 = vld [vmem:[%s4946_s3 + $0x158] sm:$0xff] }
  0x1a   : > { %3234 = vmatpush.msra.mxu1 %v807_v14  ;;  %3235 = vmatpush.msra.mxu2 %v807_v14  ;;  %455 = vst [vmem:[#allocation2 + $0x108] sm:$0x1] %v3332_v2  ;;  %v286_v56 = vld [vmem:[%s3402_s12 + $0x88] sm:$0xff]  ;;  %v3562_v1 = vadd.f32 %v3413_v8, %v313_v45  ;;  %v314_v4 = vmul.f32 %v3407_v6, %v278_v51  ;;  %v3124_v11 = vld [vmem:[%s4946_s3 + $0x1d8] sm:$0xff]  ;;  %v279_v13 = vld [vmem:[%s3402_s12 + $0x50] sm:$0xff] }
  0x1b   : > { %3236 = vmatpush.msra.mxu3 %v807_v14  ;;  %854 = vmatpush.msra.mxu0 %v807_v14  ;;  %456 = vst [vmem:[#allocation2 + $0x120] sm:$0x1] %v3332_v2  ;;  %v294_v62 = vld [vmem:[%s3402_s12 + $0xc8] sm:$0xff]  ;;  %v3572_v9 = vadd.f32 %v3413_v8, %v321_v50  ;;  %v322_v12 = vmul.f32 %v3407_v6, %v286_v56  ;;  %v388_v14 = vmax.f32 %v3532_v52, 0.0  ;;  %v841_v21 = vld [vmem:[%s4946_s3 + $0x150] sm:$0xff]  ;;  %v3141_v27 = vld [vmem:[%s4946_s3 + $0x260] sm:$0xff] }
  0x1c   : > { %3237 = vmatpush.msra.mxu1 %v806_v15  ;;  %3238 = vmatpush.msra.mxu2 %v806_v15  ;;  %457 = vst [vmem:[#allocation2 + $0x138] sm:$0x1] %v3332_v2  ;;  %v270_v5 = vld [vmem:[%s3402_s12 + $0x8] sm:$0xff]  ;;  %v341_v23 = vadd.f32 %v3413_v8, %v305_v61  ;;  %v381_v26 = vmax.f32 %v3562_v1, 0.0  ;;  %v350_v29 = vadd.f32 %v3413_v8, %v314_v4  ;;  %v825_v36 = vld [vmem:[%s4946_s3 + $0xd0] sm:$0xff]  ;;  %v280_v43 = vld [vmem:[%s3402_s12 + $0x58] sm:$0xff] }
  0x1d   : > { %3239 = vmatpush.msra.mxu3 %v806_v15  ;;  %855 = vmatpush.msra.mxu0 %v806_v15  ;;  %458 = vst [vmem:[#allocation2 + $0x150] sm:$0x1] %v3332_v2  ;;  %v3585_v15 = vadd.f32 %v3413_v8, %v329_v55  ;;  %v306_v24 = vmul.f32 %v3407_v6, %v270_v5  ;;  %v840_v34 = vld [vmem:[%s4946_s3 + $0x148] sm:$0xff]  ;;  %v839_v45 = vld [vmem:[%s4946_s3 + $0x140] sm:$0xff]  ;;  %v3139_v55 = vld [vmem:[%s4946_s3 + $0x250] sm:$0xff] }
  0x1e   : > { %3240 = vmatpush.msra.mxu1 %v805_v16  ;;  %3241 = vmatpush.msra.mxu2 %v805_v16  ;;  %459 = vst [vmem:[#allocation2 + $0x168] sm:$0x1] %v3332_v2  ;;  %v3476_v28 = vld [vmem:[#allocation2 + $0x60] sm:$0xff]  ;;  %v315_v30 = vmul.f32 %v3407_v6, %v279_v13  ;;  %v358_v33 = vadd.f32 %v3413_v8, %v322_v12  ;;  %v824_v41 = vld [vmem:[%s4946_s3 + $0xc8] sm:$0xff]  ;;  %v382_v50 = vmax.f32 %v350_v29, 0.0  ;;  %v272_v1 = vld [vmem:[%s3402_s12 + $0x18] sm:$0xff] }
  0x1f   : > { %3242 = vmatpush.msra.mxu3 %v805_v16  ;;  %856 = vmatpush.msra.mxu0 %v805_v16  ;;  %460 = vst [vmem:[#allocation2 + $0x180] sm:$0x1] %v3332_v2  ;;  %v3142_v16 = vld [vmem:[%s4946_s3 + $0x268] sm:$0xff]  ;;  %v397_v38 = vmax.f32 %v3585_v15, 0.0  ;;  %v342_v46 = vadd.f32 %v3413_v8, %v306_v24  ;;  %v3121_v51 = vld [vmem:[%s4946_s3 + $0x1c0] sm:$0xff]  ;;  %v838_v5 = vld [vmem:[%s4946_s3 + $0x138] sm:$0xff] }
  0x20   : > { %3243 = vmatpush.msra.mxu1 %v804_v17  ;;  %3244 = vmatpush.msra.mxu2 %v804_v17  ;;  %461 = vst [vmem:[#allocation2 + $0x29] sm:$0x1] %v3332_v2  ;;  %v351_v52 = vadd.f32 %v3413_v8, %v315_v30  ;;  %v3138_v12 = vld [vmem:[%s4946_s3 + $0x248] sm:$0xff]  ;;  %v823_v13 = vld [vmem:[%s4946_s3 + $0xc0] sm:$0xff] }
  0x21   : > { %3245 = vmatpush.msra.mxu3 %v804_v17  ;;  %857 = vmatpush.msra.mxu0 %v804_v17  ;;  %462 = vst [vmem:[#allocation2 + $0x41] sm:$0x1] %v3332_v2  ;;  %v826_v17 = vld [vmem:[%s4946_s3 + $0xd8] sm:$0xff]  ;;  %v281_v29 = vld [vmem:[%s3402_s12 + $0x60] sm:$0xff] }
  0x22   : > { %3246 = vmatpush.msra.mxu1 %v803_v18  ;;  %3247 = vmatpush.msra.mxu2 %v803_v18  ;;  %463 = vst [vmem:[#allocation2 + $0x59] sm:$0x1] %v3332_v2  ;;  %v383_v4 = vmax.f32 %v351_v52, 0.0 }
  0x23   : > { %3248 = vmatpush.msra.mxu3 %v803_v18  ;;  %858 = vmatpush.msra.mxu0 %v803_v18  ;;  %464 = vst [vmem:[#allocation2 + $0x71] sm:$0x1] %v3332_v2  ;;  %v330_v18 = vmul.f32 %v3407_v6, %v294_v62 }
  0x24   : > { %3249 = vmatpush.msra.mxu1 %v802_v19  ;;  %3250 = vmatpush.msra.mxu2 %v802_v19  ;;  %465 = vst [vmem:[#allocation2 + $0x89] sm:$0x1] %v3332_v2 }
  0x25   : > { %3251 = vmatpush.msra.mxu3 %v802_v19  ;;  %859 = vmatpush.msra.mxu0 %v802_v19  ;;  %466 = vst [vmem:[#allocation2 + $0xa1] sm:$0x1] %v3332_v2  ;;  %v287_v19 = vld [vmem:[%s3402_s12 + $0x90] sm:$0xff] }
  0x26   : > { %3252 = vmatpush.msra.mxu1 %v801_v20  ;;  %3253 = vmatpush.msra.mxu2 %v801_v20  ;;  %467 = vst [vmem:[#allocation2 + $0xb9] sm:$0x1] %v3332_v2  ;;  %v323_v37 = vmul.f32 %v3407_v6, %v287_v19  ;;  %v3137_v19 = vld [vmem:[%s4946_s3 + $0x240] sm:$0xff] }
  0x27   : > { %3254 = vmatpush.msra.mxu3 %v801_v20  ;;  %860 = vmatpush.msra.mxu0 %v801_v20  ;;  %468 = vst [vmem:[#allocation2 + $0xd1] sm:$0x1] %v3332_v2  ;;  %v396_v20 = vmax.f32 %v3546_v58, 0.0 }
  0x28   : > { %3255 = vmatpush.msra.mxu1 %v800_v22  ;;  %3256 = vmatpush.msra.mxu2 %v800_v22  ;;  %469 = vst [vmem:[#allocation2 + $0xe9] sm:$0x1] %v3332_v2  ;;  %v359_v56 = vadd.f32 %v3413_v8, %v323_v37 }
  0x29   : > { %3257 = vmatpush.msra.mxu3 %v800_v22  ;;  %861 = vmatpush.msra.mxu0 %v800_v22  ;;  %470 = vst [vmem:[#allocation2 + $0x101] sm:$0x1] %v3332_v2  ;;  %v3123_v22 = vld [vmem:[%s4946_s3 + $0x1d0] sm:$0xff] }
  0x2a   : > { %3258 = vmatpush.msra.mxu1 %v799_v25  ;;  %3259 = vmatpush.msra.mxu2 %v799_v25  ;;  %471 = vst [vmem:[#allocation2 + $0x119] sm:$0x1] %v3332_v2 }
  0x2b   : > { %3260 = vmatpush.msra.mxu3 %v799_v25  ;;  %887 = vmatmul.f32.vlgmr.msra.gmra.mxu1 %v3476_v28  ;;  %472 = vst [vmem:[#allocation2 + $0x131] sm:$0x1] %v3332_v2 }
  0x2c   : > { %1073 = vmatpush.msrb.mxu2 %v846_v31  ;;  %862 = vmatpush.msra.mxu0 %v799_v25  ;;  %473 = vst [vmem:[#allocation2 + $0x149] sm:$0x1] %v3332_v2  ;;  %v295_v25 = vld [vmem:[%s3402_s12 + $0xd0] sm:$0xff] }
  0x2d   : > { %1587 = vmatpush.msrb.mxu3 %v3128_v32  ;;  %960 = vmatpush.msrb.mxu1 %v830_v35  ;;  %474 = vst [vmem:[#allocation2 + $0x161] sm:$0x1] %v3332_v2  ;;  %v271_v31 = vld [vmem:[%s3402_s12 + $0x10] sm:$0xff]  ;;  %v389_v32 = vmax.f32 %v3572_v9, 0.0  ;;  %v3122_v35 = vld [vmem:[%s4946_s3 + $0x1c8] sm:$0xff]  ;;  %v331_v42 = vmul.f32 %v3407_v6, %v295_v25 }
  0x2e   : > { %1074 = vmatpush.msrb.mxu2 %v845_v39  ;;  %863 = vmatmul.f32.vlgmr.msra.gmra.mxu0 %v3332_v2  ;;  %475 = vst [vmem:[#allocation2 + $0x179] sm:$0x1] %v3332_v2  ;;  %v366_v39 = vadd.f32 %v3413_v8, %v330_v18  ;;  %v307_v47 = vmul.f32 %v3407_v6, %v271_v31 }
  0x2f   : > { %1588 = vmatpush.msrb.mxu3 %v3127_v40  ;;  %961 = vmatpush.msrb.mxu1 %v829_v44  ;;  %476 = vst [vmem:[#allocation2 + $0x191] sm:$0x1] %v3332_v2  ;;  %v3140_v40 = vld [vmem:[%s4946_s3 + $0x258] sm:$0xff]  ;;  %v373_v44 = vmax.f32 %v341_v23, 0.0 }
  0x30   : > { %1075 = vmatpush.msrb.mxu2 %v844_v48  ;;  %1700 = vmatpush.msrb.mxu0 %v3144_v53  ;;  %420 = vst [vmem:[#allocation2 + $0xc1] sm:$0xff] %v387_v57  ;;  %v288_v48 = vld [vmem:[%s3402_s12 + $0x98] sm:$0xff]  ;;  %v316_v53 = vmul.f32 %v3407_v6, %v280_v43 }
  0x31   : > { %1589 = vmatpush.msrb.mxu3 %v3126_v49  ;;  %962 = vmatpush.msrb.mxu1 %v828_v54  ;;  %428 = vst [vmem:[#allocation2 + $0x121] sm:$0xff] %v395_v63  ;;  %v296_v49 = vld [vmem:[%s3402_s12 + $0xd8] sm:$0xff]  ;;  %v390_v54 = vmax.f32 %v358_v33, 0.0  ;;  %v324_v57 = vmul.f32 %v3407_v6, %v288_v48  ;;  %v374_v63 = vmax.f32 %v342_v46, 0.0  ;;  %v289_v33 = vld [vmem:[%s3402_s12 + $0xa0] sm:$0xff] }
  0x32   : > { %1076 = vmatpush.msrb.mxu2 %v843_v59  ;;  %1701 = vmatpush.msrb.mxu0 %v3143_v0  ;;  %413 = vst [vmem:[#allocation2 + $0x69] sm:$0xff] %v380_v7  ;;  %v398_v59 = vmax.f32 %v366_v39, 0.0  ;;  %v332_v61 = vmul.f32 %v3407_v6, %v296_v49  ;;  %v343_v0 = vadd.f32 %v3413_v8, %v307_v47  ;;  %v3120_v7 = vld [vmem:[%s4946_s3 + $0x1b8] sm:$0xff]  ;;  %v836_v39 = vld [vmem:[%s4946_s3 + $0x128] sm:$0xff]  ;;  %v835_v47 = vld [vmem:[%s4946_s3 + $0x120] sm:$0xff] }
  0x33   : > { %1590 = vmatpush.msrb.mxu3 %v3125_v60  ;;  %963 = vmatpush.msrb.mxu1 %v827_v3  ;;  %421 = vst [vmem:[#allocation2 + $0xc9] sm:$0xff] %v388_v14  ;;  %v367_v60 = vadd.f32 %v3413_v8, %v331_v42  ;;  %v352_v9 = vadd.f32 %v3413_v8, %v316_v53  ;;  %v3136_v43 = vld [vmem:[%s4946_s3 + $0x238] sm:$0xff]  ;;  %v3117_v48 = vld [vmem:[%s4946_s3 + $0x1a0] sm:$0xff] }
  0x34   : > { %1077 = vmatpush.msrb.mxu2 %v842_v10  ;;  %1702 = vmatpush.msrb.mxu0 %v3142_v16  ;;  %429 = vst [vmem:[#allocation2 + $0x129] sm:$0xff] %v396_v20  ;;  %v308_v10 = vmul.f32 %v3407_v6, %v272_v1  ;;  %v360_v14 = vadd.f32 %v3413_v8, %v324_v57  ;;  %v837_v16 = vld [vmem:[%s4946_s3 + $0x130] sm:$0xff]  ;;  %v375_v20 = vmax.f32 %v343_v0, 0.0  ;;  %v298_v1 = vld [vmem:[%s3402_s12 + $0xe8] sm:$0xff] }
  0x35   : > { %1591 = vmatpush.msrb.mxu3 %v3124_v11  ;;  %964 = vmatpush.msrb.mxu1 %v826_v17  ;;  %414 = vst [vmem:[#allocation2 + $0x79] sm:$0xff] %v381_v26  ;;  %v391_v11 = vmax.f32 %v359_v56, 0.0  ;;  %v399_v15 = vmax.f32 %v367_v60, 0.0  ;;  %v3119_v17 = vld [vmem:[%s4946_s3 + $0x1b0] sm:$0xff]  ;;  %v368_v18 = vadd.f32 %v3413_v8, %v332_v61  ;;  %v384_v24 = vmax.f32 %v352_v9, 0.0  ;;  %v282_v56 = vld [vmem:[%s3402_s12 + $0x68] sm:$0xff] }
  0x36   : > { %1078 = vmatpush.msrb.mxu2 %v841_v21  ;;  %866 = vmatmul.f32.gmra.mxu0 %v3332_v2  ;;  %422 = vst [vmem:[#allocation2 + $0xd9] sm:$0xff] %v389_v32  ;;  %v822_v21 = vld [vmem:[%s4946_s3 + $0xb8] sm:$0xff]  ;;  %v317_v32 = vmul.f32 %v3407_v6, %v281_v29  ;;  %v290_v61 = vld [vmem:[%s3402_s12 + $0xa8] sm:$0xff] }
  0x37   : > { %1592 = vmatpush.msrb.mxu3 %v3123_v22  ;;  %965 = vmatpush.msrb.mxu1 %v825_v36  ;;  %v3652_v58 = vld [vmem:[#allocation2 + $0xc0] sm:$0xff]  ;;  %430 = vst [vmem:[#allocation2 + $0x139] sm:$0xff] %v397_v38  ;;  %v344_v22 = vadd.f32 %v3413_v8, %v308_v10  ;;  %v400_v31 = vmax.f32 %v368_v18, 0.0  ;;  %v325_v36 = vmul.f32 %v3407_v6, %v289_v33  ;;  %v3116_v9 = vld [vmem:[%s4946_s3 + $0x198] sm:$0xff] }
  0x38   : > { %1703 = vmatpush.msrb.mxu0 %v3141_v27  ;;  %1079 = vmatpush.msrb.mxu2 %v840_v34  ;;  %v513_v62 = vld [vmem:[#allocation2 + $0x120] sm:$0xff]  ;;  %406 = vst [vmem:[#allocation2 + $0x19] sm:$0xff] %v373_v44  ;;  %v392_v27 = vmax.f32 %v360_v14, 0.0  ;;  %v821_v44 = vld [vmem:[%s4946_s3 + $0xb0] sm:$0xff]  ;;  %v326_v0 = vmul.f32 %v3407_v6, %v290_v61  ;;  %v3132_v33 = vld [vmem:[%s4946_s3 + $0x218] sm:$0xff] }
  0x39   : > { %1593 = vmatpush.msrb.mxu3 %v3122_v35  ;;  %966 = vmatpush.msrb.mxu1 %v824_v41  ;;  %v3659_v3 = vld [vmem:[#allocation2 + $0x68] sm:$0xff]  ;;  %415 = vst [vmem:[#allocation2 + $0x81] sm:$0xff] %v382_v50  ;;  %v297_v34 = vld [vmem:[%s3402_s12 + $0xe0] sm:$0xff]  ;;  %v376_v35 = vmax.f32 %v344_v22, 0.0  ;;  %v353_v41 = vadd.f32 %v3413_v8, %v317_v32  ;;  %v3135_v50 = vld [vmem:[%s4946_s3 + $0x230] sm:$0xff] }
  0x3a   : > { %1704 = vmatpush.msrb.mxu0 %v3140_v40  ;;  %1080 = vmatpush.msrb.mxu2 %v839_v45  ;;  %423 = vst [vmem:[#allocation2 + $0xe1] sm:$0xff] %v390_v54  ;;  %v3691_v23 = vld [vmem:[#allocation2 + $0xc8] sm:$0xff]  ;;  %v333_v37 = vmul.f32 %v3407_v6, %v297_v34  ;;  %v273_v38 = vld [vmem:[%s3402_s12 + $0x20] sm:$0xff]  ;;  %v361_v45 = vadd.f32 %v3413_v8, %v325_v36  ;;  %v817_v34 = vld [vmem:[%s4946_s3 + $0x90] sm:$0xff] }
  0x3b   : > { %911 = vmatmul.f32.vlgmr.msra.gmra.mxu2 %v3652_v58  ;;  %1594 = vmatpush.msrb.mxu3 %v3121_v51  ;;  %431 = vst [vmem:[#allocation2 + $0x141] sm:$0xff] %v398_v59  ;;  %v514_v25 = vld [vmem:[#allocation2 + $0x128] sm:$0xff]  ;;  %v309_v42 = vmul.f32 %v3407_v6, %v273_v38  ;;  %v385_v54 = vmax.f32 %v353_v41, 0.0  ;;  %v3113_v36 = vld [vmem:[%s4946_s3 + $0x180] sm:$0xff] }
  0x3c   : > { %935 = vmatmul.f32.vlgmr.msra.gmra.mxu3 %v513_v62  ;;  %1705 = vmatpush.msrb.mxu0 %v3139_v55  ;;  %407 = vst [vmem:[#allocation2 + $0x21] sm:$0xff] %v374_v63  ;;  %v3693_v26 = vld [vmem:[#allocation2 + $0x78] sm:$0xff]  ;;  %v3118_v40 = vld [vmem:[%s4946_s3 + $0x1a8] sm:$0xff]  ;;  %v369_v46 = vadd.f32 %v3413_v8, %v333_v37  ;;  %v393_v55 = vmax.f32 %v361_v45, 0.0  ;;  %v318_v63 = vmul.f32 %v3407_v6, %v282_v56  ;;  %v3131_v37 = vld [vmem:[%s4946_s3 + $0x210] sm:$0xff] }
  0x3d   : > { %890 = vmatmul.f32.gmra.mxu1 %v3659_v3  ;;  %1081 = vmatpush.msrb.mxu2 %v838_v5  ;;  %416 = vst [vmem:[#allocation2 + $0x91] sm:$0xff] %v383_v4  ;;  %v345_v49 = vadd.f32 %v3413_v8, %v309_v42  ;;  %v820_v51 = vld [vmem:[%s4946_s3 + $0xa8] sm:$0xff]  ;;  %v3736_v52 = vld [vmem:[#allocation2 + $0xd8] sm:$0xff]  ;;  %v334_v4 = vmul.f32 %v3407_v6, %v298_v1  ;;  %v815_v42 = vld [vmem:[%s4946_s3 + $0x80] sm:$0xff] }
  0x3e   : > { %1595 = vmatpush.msrb.mxu3 %v3120_v7  ;;  %1706 = vmatpush.msrb.mxu0 %v3138_v12  ;;  %424 = vst [vmem:[#allocation2 + $0xf1] sm:$0xff] %v391_v11  ;;  %v516_v57 = vld [vmem:[#allocation2 + $0x138] sm:$0xff]  ;;  %v401_v59 = vmax.f32 %v369_v46, 0.0  ;;  %v274_v5 = vld [vmem:[%s3402_s12 + $0x28] sm:$0xff]  ;;  %v354_v10 = vadd.f32 %v3413_v8, %v318_v63  ;;  %v362_v11 = vadd.f32 %v3413_v8, %v326_v0  ;;  %v3175_v0 = vld [vmem:[%s4946_s3 + $0x370] sm:$0xff] }
  0x3f   : > { %967 = vmatpush.msrb.mxu1 %v823_v13  ;;  %1082 = vmatpush.msrb.mxu2 %v837_v16  ;;  %v3696_v30 = vld [vmem:[#allocation2 + $0x18] sm:$0xff]  ;;  %432 = vst [vmem:[#allocation2 + $0x151] sm:$0xff] %v399_v15  ;;  %v377_v60 = vmax.f32 %v345_v49, 0.0  ;;  %v3134_v12 = vld [vmem:[%s4946_s3 + $0x228] sm:$0xff]  ;;  %v819_v13 = vld [vmem:[%s4946_s3 + $0xa0] sm:$0xff]  ;;  %v370_v14 = vadd.f32 %v3413_v8, %v334_v4  ;;  %v310_v15 = vmul.f32 %v3407_v6, %v274_v5  ;;  %v574_v5 = vrot.slane %v3332_v2, 1 }
  0x40   : > { %1596 = vmatpush.msrb.mxu3 %v3119_v17  ;;  %1707 = vmatpush.msrb.mxu0 %v3137_v19  ;;  %408 = vst [vmem:[#allocation2 + $0x31] sm:$0xff] %v375_v20  ;;  %v3742_v62 = vld [vmem:[#allocation2 + $0x80] sm:$0xff]  ;;  %v834_v7 = vld [vmem:[%s4946_s3 + $0x118] sm:$0xff]  ;;  %v833_v16 = vld [vmem:[%s4946_s3 + $0x110] sm:$0xff]  ;;  %v386_v18 = vmax.f32 %v354_v10, 0.0  ;;  %v394_v20 = vmax.f32 %v362_v11, 0.0 }
  0x41   : > { %968 = vmatpush.msrb.mxu1 %v822_v21  ;;  %869 = vmatmul.f32.gmra.mxu0 %v3696_v30  ;;  %417 = vst [vmem:[#allocation2 + $0x99] sm:$0xff] %v384_v24  ;;  %v3115_v17 = vld [vmem:[%s4946_s3 + $0x190] sm:$0xff]  ;;  %v3133_v19 = vld [vmem:[%s4946_s3 + $0x220] sm:$0xff]  ;;  %v818_v6 = vld [vmem:[%s4946_s3 + $0x98] sm:$0xff]  ;;  %v402_v21 = vmax.f32 %v370_v14, 0.0  ;;  %v579_v61 = vrot.slane %v3696_v30, 1 }
  0x42   : > { %425 = vst [vmem:[#allocation2 + $0xf9] sm:$0xff] %v392_v27  ;;  %1083 = vmatpush.msrb.mxu2 %v836_v39  ;;  %1597 = vmatpush.msrb.mxu3 %v3118_v40  ;;  %v3780_v22 = vld [vmem:[#allocation2 + $0xe0] sm:$0xff]  ;;  %v832_v32 = vld [vmem:[%s4946_s3 + $0x108] sm:$0xff]  ;;  %v3176_v45 = vld [vmem:[%s4946_s3 + $0x378] sm:$0xff] }
  0x43   : > { %914 = vmatmul.f32.gmra.mxu2 %v3691_v23  ;;  %433 = vst [vmem:[#allocation2 + $0x159] sm:$0xff] %v400_v31  ;;  %1708 = vmatpush.msrb.mxu0 %v3136_v43  ;;  %v3738_v53 = vld [vmem:[#allocation2 + $0x20] sm:$0xff]  ;;  %v816_v38 = vld [vmem:[%s4946_s3 + $0x88] sm:$0xff]  ;;  %v3192_v46 = vld [vmem:[%s4946_s3 + $0x3f8] sm:$0xff] }
  0x44   : > { %938 = vmatmul.f32.gmra.mxu3 %v514_v25  ;;  %969 = vmatpush.msrb.mxu1 %v821_v44  ;;  %409 = vst [vmem:[#allocation2 + $0x39] sm:$0xff] %v376_v35  ;;  %v346_v25 = vadd.f32 %v3413_v8, %v310_v15  ;;  %v517_v27 = vld [vmem:[#allocation2 + $0x140] sm:$0xff]  ;;  %v3785_v29 = vld [vmem:[#allocation2 + $0x90] sm:$0xff]  ;;  %v3114_v8 = vld [vmem:[%s4946_s3 + $0x188] sm:$0xff]  ;;  %v580_v63 = vrot.slane %v3738_v53, 1 }
  0x45   : > { %893 = vmatmul.f32.gmra.mxu1 %v3693_v26  ;;  %1084 = vmatpush.msrb.mxu2 %v835_v47  ;;  %418 = vst [vmem:[#allocation2 + $0xa9] sm:$0xff] %v385_v54  ;;  %v831_v35 = vld [vmem:[%s4946_s3 + $0x100] sm:$0xff]  ;;  %v3814_v39 = vld [vmem:[#allocation2 + $0xf0] sm:$0xff]  ;;  %v3130_v44 = vld [vmem:[%s4946_s3 + $0x208] sm:$0xff] }
  0x46   : > { %1598 = vmatpush.msrb.mxu3 %v3117_v48  ;;  %1709 = vmatpush.msrb.mxu0 %v3135_v50  ;;  %426 = vst [vmem:[#allocation2 + $0x109] sm:$0xff] %v393_v55  ;;  %v378_v31 = vmax.f32 %v346_v25, 0.0  ;;  %v519_v41 = vld [vmem:[#allocation2 + $0x150] sm:$0xff]  ;;  %v3129_v47 = vld [vmem:[%s4946_s3 + $0x200] sm:$0xff]  ;;  %v3160_v48 = vld [vmem:[%s4946_s3 + $0x2f8] sm:$0xff] }
  0x47   : > { %970 = vmatpush.msrb.mxu1 %v820_v51  ;;  %434 = vst [vmem:[#allocation2 + $0x169] sm:$0xff] %v401_v59  ;;  %1085 = vmatpush.msrb.mxu2 %v834_v7  ;;  %v3782_v24 = vld [vmem:[#allocation2 + $0x30] sm:$0xff]  ;;  %v3208_v55 = vld [vmem:[%s4946_s3 + $0x478] sm:$0xff]  ;;  %v1220_v11 = vld [vmem:[#allocation2 + $0x28] sm:$0x3] }
  0x48   : > { %410 = vst [vmem:[#allocation2 + $0x49] sm:$0xff] %v377_v60  ;;  %1599 = vmatpush.msrb.mxu3 %v3116_v9  ;;  %1710 = vmatpush.msrb.mxu0 %v3134_v12  ;;  %v3821_v43 = vld [vmem:[#allocation2 + $0x98] sm:$0xff]  ;;  %v3191_v1 = vld [vmem:[%s4946_s3 + $0x3f0] sm:$0xff]  ;;  %v1316_v9 = vsel %vm573_vm0, %v579_v61, %v580_v63  ;;  %v1317_v14 = vrot.slane %v1220_v11, 1  ;;  %v3158_v25 = vld [vmem:[%s4946_s3 + $0x2e8] sm:$0xff] }
  0x49   : > { %872 = vmatmul.f32.gmra.mxu0 %v3738_v53  ;;  %971 = vmatpush.msrb.mxu1 %v819_v13  ;;  %419 = vst [vmem:[#allocation2 + $0xb1] sm:$0xff] %v386_v18  ;;  %v3841_v49 = vld [vmem:[#allocation2 + $0xf8] sm:$0xff]  ;;  %v3159_v4 = vld [vmem:[%s4946_s3 + $0x2f0] sm:$0xff]  ;;  %v687_v13 = vrot.slane %v3332_v2, 2 }
  0x4a   : > { %1086 = vmatpush.msrb.mxu2 %v833_v16  ;;  %1600 = vmatpush.msrb.mxu3 %v3115_v17  ;;  %427 = vst [vmem:[#allocation2 + $0x111] sm:$0xff] %v394_v20  ;;  %v520_v51 = vld [vmem:[#allocation2 + $0x158] sm:$0xff]  ;;  %v479_v12 = vld [vmem:[#allocation2 + $0x10] sm:$0x3]  ;;  %v1318_v17 = vsel %vm573_vm0, %v580_v63, %v1317_v14  ;;  %v3174_v20 = vld [vmem:[%s4946_s3 + $0x368] sm:$0xff] }
  0x4b   : > { %917 = vmatmul.f32.gmra.mxu2 %v3736_v52  ;;  %1711 = vmatpush.msrb.mxu0 %v3133_v19  ;;  %435 = vst [vmem:[#allocation2 + $0x171] sm:$0xff] %v402_v21  ;;  %v3816_v40 = vld [vmem:[#allocation2 + $0x38] sm:$0xff]  ;;  %v3207_v15 = vld [vmem:[%s4946_s3 + $0x470] sm:$0xff]  ;;  %v577_v16 = vrot.slane %v479_v12, 1  ;;  %v584_v19 = vrot.slane %v3782_v24, 1  ;;  %v3190_v21 = vld [vmem:[%s4946_s3 + $0x3e8] sm:$0xff] }
  0x4c   : > { %941 = vmatmul.f32.gmra.mxu3 %v516_v57  ;;  %972 = vmatpush.msrb.mxu1 %v818_v6  ;;  %411 = vst [vmem:[#allocation2 + $0x51] sm:$0xff] %v378_v31  ;;  %v3845_v54 = vld [vmem:[#allocation2 + $0xa8] sm:$0xff]  ;;  %v585_v2 = vrot.slane %v3816_v40, 1  ;;  %v690_v6 = vrot.slane %v479_v12, 2  ;;  %v485_v61 = vld [vmem:[#allocation2 + $0x40] sm:$0x3] }
  0x4d   : > { %896 = vmatmul.f32.gmra.mxu1 %v3742_v62  ;;  %1087 = vmatpush.msrb.mxu2 %v832_v32  ;;  %v3853_v56 = vld [vmem:[#allocation2 + $0x108] sm:$0xff]  ;;  %v578_v18 = vsel %vm573_vm0, %v574_v5, %v577_v16  ;;  %v1223_v32 = vld [vmem:[#allocation2 + $0x40] sm:$0x3]  ;;  %v3188_v16 = vld [vmem:[%s4946_s3 + $0x3d8] sm:$0xff] }
  0x4e   : > { %1601 = vmatpush.msrb.mxu3 %v3114_v8  ;;  %1712 = vmatpush.msrb.mxu0 %v3132_v33  ;;  %v522_v59 = vld [vmem:[#allocation2 + $0x168] sm:$0xff]  ;;  %v1321_v31 = vsel %vm573_vm0, %v584_v19, %v585_v2  ;;  %v4955_v33 = vrot.slane %v3696_v30, 2  ;;  %v1227_v12 = vld [vmem:[#allocation2 + $0x60] sm:$0xff] }
  0x4f   : > { %973 = vmatpush.msrb.mxu1 %v817_v34  ;;  %1088 = vmatpush.msrb.mxu2 %v831_v35  ;;  %v3843_v50 = vld [vmem:[#allocation2 + $0x48] sm:$0xff]  ;;  %v693_v34 = vrot.slane %v3738_v53, 2  ;;  %v1322_v35 = vrot.slane %v1223_v32, 1  ;;  %v1329_v14 = vrot.slane %v1227_v12, 1 }
  0x50   : > { %1602 = vmatpush.msrb.mxu3 %v3113_v36  ;;  %1713 = vmatpush.msrb.mxu0 %v3131_v37  ;;  %v3857_v60 = vld [vmem:[#allocation2 + $0xb0] sm:$0xff]  ;;  %v482_v8 = vld [vmem:[#allocation2 + $0x28] sm:$0x3] }
  0x51   : > { %875 = vmatmul.f32.gmra.mxu0 %v3782_v24  ;;  %974 = vmatpush.msrb.mxu1 %v816_v38  ;;  %v3874_v7 = vld [vmem:[#allocation2 + $0x110] sm:$0xff]  ;;  %v3206_v36 = vld [vmem:[%s4946_s3 + $0x468] sm:$0xff]  ;;  %v582_v37 = vrot.slane %v482_v8, 1  ;;  %v694_v38 = vsel %vm686_vm1, %v4955_v33, %v693_v34 }
  0x52   : > { %1714 = vmatpush.msrb.mxu0 %v3130_v44  ;;  %2392 = vmatpush.msra.mxu2 %v3176_v45  ;;  %v523_v10 = vld [vmem:[#allocation2 + $0x170] sm:$0xff]  ;;  %v695_v45 = vrot.slane %v482_v8, 2 }
  0x53   : > { %920 = vmatmul.f32.gmra.mxu2 %v3780_v22  ;;  %975 = vmatpush.msrb.mxu1 %v815_v42  ;;  %v3855_v57 = vld [vmem:[#allocation2 + $0x50] sm:$0xff]  ;;  %v583_v42 = vsel %vm573_vm0, %v580_v63, %v582_v37  ;;  %v4954_v63 = vrot.slane %v3782_v24, 2 }
  0x54   : > { %944 = vmatmul.f32.gmra.mxu3 %v517_v27  ;;  %1715 = vmatpush.msrb.mxu0 %v3129_v47  ;;  %v691_v27 = vsel %vm686_vm1, %v687_v13, %v690_v6  ;;  %v590_v44 = vrot.slane %v3855_v57, 1  ;;  %v3189_v47 = vld [vmem:[%s4946_s3 + $0x3e0] sm:$0xff]  ;;  %v488_v6 = vld [vmem:[#allocation2 + $0x58] sm:$0x3]  ;;  %v3183_v33 = vld [vmem:[%s4946_s3 + $0x3b0] sm:$0xff] }
  0x55   : > { %899 = vmatmul.f32.gmra.mxu1 %v3785_v29  ;;  %2505 = vmatpush.msra.mxu3 %v3192_v46  ;;  %v3173_v46 = vld [vmem:[%s4946_s3 + $0x360] sm:$0xff] }
  0x56   : > { %1813 = vmatpush.msra.mxu1 %v3160_v48  ;;  %2618 = vmatpush.msra.mxu0 %v3208_v55  ;;  %v3157_v48 = vld [vmem:[%s4946_s3 + $0x2e0] sm:$0xff] }
  0x57   : > { %2393 = vmatpush.msra.mxu2 %v3175_v0  ;;  %2506 = vmatpush.msra.mxu3 %v3191_v1  ;;  %v698_v0 = vrot.slane %v3816_v40, 2 }
  0x58   : > { %1814 = vmatpush.msra.mxu1 %v3159_v4  ;;  %2619 = vmatpush.msra.mxu0 %v3207_v15  ;;  %v3205_v4 = vld [vmem:[%s4946_s3 + $0x460] sm:$0xff]  ;;  %v3172_v15 = vld [vmem:[%s4946_s3 + $0x358] sm:$0xff] }
  0x59   : > { %878 = vmatmul.f32.gmra.mxu0 %v3816_v40  ;;  %2394 = vmatpush.msra.mxu2 %v3174_v20  ;;  %v4952_v20 = vrot.slane %v3843_v50, 2 }
  0x5a   : > { %2507 = vmatpush.msra.mxu3 %v3190_v21  ;;  %1815 = vmatpush.msra.mxu1 %v3158_v25  ;;  %v703_v21 = vrot.slane %v3855_v57, 2 }
  0x5b   : > { %923 = vmatmul.f32.gmra.mxu2 %v3814_v39  ;;  %2620 = vmatpush.msra.mxu0 %v3206_v36  ;;  %v705_v36 = vrot.slane %v488_v6, 2 }
  0x5c   : > { %947 = vmatmul.f32.gmra.mxu3 %v519_v41  ;;  %v1323_v41 = vsel %vm573_vm0, %v585_v2, %v1322_v35  ;;  %2395 = vmatpush.msra.mxu2 %v3173_v46  ;;  %v704_v32 = vsel %vm686_vm1, %v4952_v20, %v703_v21  ;;  %v3964_v35 = vrot.slane %v3742_v62, 1 }
  0x5d   : > { %902 = vmatmul.f32.gmra.mxu1 %v3821_v43  ;;  %2508 = vmatpush.msra.mxu3 %v3189_v47  ;;  %v1232_v47 = vld [vmem:[#allocation2 + $0x88] sm:$0x3] }
  0x5e   : > { %1816 = vmatpush.msra.mxu1 %v3157_v48  ;;  %2621 = vmatpush.msra.mxu0 %v3205_v4 }
  0x5f   : > { %2396 = vmatpush.msra.mxu2 %v3172_v15  ;;  %2509 = vmatpush.msra.mxu3 %v3188_v16  ;;  %v3154_v16 = vld [vmem:[%s4946_s3 + $0x2c8] sm:$0xff] }
  0x61   : > { %881 = vmatmul.f32.gmra.mxu0 %v3843_v50 }
  0x63   : > { %926 = vmatmul.f32.gmra.mxu2 %v3841_v49 }
  0x64   : > { %950 = vmatmul.f32.gmra.mxu3 %v520_v51  ;;  %v696_v51 = vsel %vm686_vm1, %v693_v34, %v695_v45 }
  0x65   : > { %905 = vmatmul.f32.gmra.mxu1 %v3845_v54 }
  0x69   : > { %884 = vmatmul.f32.gmra.mxu0 %v3855_v57 }
  0x6b   : > { %929 = vmatmul.f32.gmra.mxu2 %v3853_v56 }
  0x6c   : > { %953 = vmatmul.f32.gmra.mxu3 %v522_v59  ;;  %v1226_v59 = vld [vmem:[#allocation2 + $0x58] sm:$0x3] }
  0x6d   : > { %908 = vmatmul.f32.gmra.mxu1 %v3857_v60  ;;  %v1327_v1 = vrot.slane %v1226_v59, 1  ;;  %v708_v59 = vrot.slane %v3659_v3, 2 }
  0x71   : > { %1716 = vmatmul.f32.vlgmr.msrb.gmra.mxu0 %v1316_v9 }
  0x73   : > { %932 = vmatmul.f32.gmra.mxu2 %v3874_v7 }
  0x74   : > { %956 = vmatmul.f32.gmra.mxu3 %v523_v10  ;;  %v1328_v10 = vsel %vm573_vm0, %v590_v44, %v1327_v1 }
  0x75   : > { %976 = vmatmul.f32.vlgmr.msrb.gmra.mxu1 %v574_v5  ;;  %v587_v5 = vrot.slane %v485_v61, 1 }
  0x77   : > { %v588_v11 = vsel %vm573_vm0, %v585_v2, %v587_v5  ;;  %v1229_v2 = vld [vmem:[#allocation2 + $0x70] sm:$0x3] }
  0x78   : > { %v1332_v25 = vrot.slane %v1229_v2, 1  ;;  %v1235_v2 = vld [vmem:[#allocation2 + $0xa0] sm:$0x3] }
  0x79   : > { %1719 = vmatmul.f32.gmra.mxu0 %v1318_v17  ;;  %v3156_v17 = vld [vmem:[%s4946_s3 + $0x2d8] sm:$0xff] }
  0x7a   : > { %1817 = vmatpush.msra.mxu1 %v3156_v17 }
  0x7b   : > { %1089 = vmatmul.f32.vlgmr.msrb.gmra.mxu2 %v687_v13  ;;  %v700_v13 = vrot.slane %v485_v61, 2  ;;  %v1337_v61 = vrot.slane %v1232_v47, 1  ;;  %v3169_v47 = vld [vmem:[%s4946_s3 + $0x340] sm:$0xff] }
  0x7c   : > { %1603 = vmatmul.f32.vlgmr.msrb.gmra.mxu3 %v3696_v30 }
  0x7d   : > { %979 = vmatmul.f32.gmra.mxu1 %v578_v18  ;;  %v701_v18 = vsel %vm686_vm1, %v698_v0, %v700_v13  ;;  %v3170_v13 = vld [vmem:[%s4946_s3 + $0x348] sm:$0xff] }
  0x81   : > { %1722 = vmatmul.f32.gmra.mxu0 %v1321_v31 }
  0x83   : > { %1092 = vmatmul.f32.gmra.mxu2 %v691_v27  ;;  %v3204_v27 = vld [vmem:[%s4946_s3 + $0x458] sm:$0xff] }
  0x84   : > { %1606 = vmatmul.f32.gmra.mxu3 %v3738_v53  ;;  %v589_v53 = vrot.slane %v3843_v50, 1  ;;  %2622 = vmatpush.msra.mxu0 %v3204_v27  ;;  %v713_v27 = vrot.slane %v3742_v62, 2 }
  0x85   : > { %982 = vmatmul.f32.gmra.mxu1 %v1316_v9  ;;  %v699_v9 = vsel %vm686_vm1, %v4954_v63, %v698_v0  ;;  %v3203_v0 = vld [vmem:[%s4946_s3 + $0x450] sm:$0xff] }
  0x86   : > { %v1326_v55 = vsel %vm573_vm0, %v589_v53, %v590_v44  ;;  %v3155_v53 = vld [vmem:[%s4946_s3 + $0x2d0] sm:$0xff]  ;;  %2623 = vmatpush.msra.mxu0 %v3203_v0 }
  0x87   : > { %1818 = vmatpush.msra.mxu1 %v3155_v53  ;;  %v609_v53 = vrot.slane %v3845_v54, 1 }
  0x89   : > { %1725 = vmatmul.f32.gmra.mxu0 %v1323_v41  ;;  %v3187_v41 = vld [vmem:[%s4946_s3 + $0x3d0] sm:$0xff]  ;;  %1819 = vmatpush.msra.mxu1 %v3154_v16  ;;  %v718_v16 = vrot.slane %v3821_v43, 2 }
  0x8a   : > { %2510 = vmatpush.msra.mxu3 %v3187_v41 }
  0x8b   : > { %1095 = vmatmul.f32.gmra.mxu2 %v694_v38  ;;  %v3171_v38 = vld [vmem:[%s4946_s3 + $0x350] sm:$0xff] }
  0x8c   : > { %1609 = vmatmul.f32.gmra.mxu3 %v3782_v24  ;;  %2397 = vmatpush.msra.mxu2 %v3171_v38 }
  0x8d   : > { %985 = vmatmul.f32.gmra.mxu1 %v583_v42  ;;  %v594_v42 = vrot.slane %v3476_v28, 1 }
  0x8e   : > { %2398 = vmatpush.msra.mxu2 %v3170_v13  ;;  %v497_v13 = vld [vmem:[#allocation2 + $0xa0] sm:$0x3] }
  0x90   : > { %2399 = vmatpush.msra.mxu2 %v3169_v47 }
  0x91   : > { %1728 = vmatmul.f32.gmra.mxu0 %v1326_v55 }
  0x93   : > { %1098 = vmatmul.f32.gmra.mxu2 %v696_v51  ;;  %v491_v51 = vld [vmem:[#allocation2 + $0x70] sm:$0x3] }
  0x94   : > { %1612 = vmatmul.f32.gmra.mxu3 %v3816_v40  ;;  %v3935_v40 = vrot.slane %v3659_v3, 1  ;;  %v597_v1 = vrot.slane %v491_v51, 1 }
  0x95   : > { %988 = vmatmul.f32.gmra.mxu1 %v1321_v31  ;;  %v592_v31 = vrot.slane %v488_v6, 1 }
  0x96   : > { %v1331_v19 = vsel %vm573_vm0, %v1329_v14, %v3935_v40  ;;  %v1333_v8 = vsel %vm573_vm0, %v3935_v40, %v1332_v25  ;;  %v596_v48 = vsel %vm573_vm0, %v594_v42, %v3935_v40  ;;  %v3186_v14 = vld [vmem:[%s4946_s3 + $0x3c8] sm:$0xff]  ;;  %v4951_v25 = vrot.slane %v3693_v26, 2 }
  0x97   : > { %v593_v34 = vsel %vm573_vm0, %v590_v44, %v592_v31  ;;  %v706_v44 = vsel %vm686_vm1, %v703_v21, %v705_v36  ;;  %2511 = vmatpush.msra.mxu3 %v3186_v14  ;;  %v494_v21 = vld [vmem:[#allocation2 + $0x88] sm:$0x3]  ;;  %v1342_v31 = vrot.slane %v1235_v2, 1  ;;  %v4950_v14 = vrot.slane %v3785_v29, 2  ;;  %v3201_v2 = vld [vmem:[%s4946_s3 + $0x440] sm:$0xff] }
  0x98   : > { %v714_v36 = vsel %vm686_vm1, %v4951_v25, %v713_v27 }
  0x99   : > { %1731 = vmatmul.f32.gmra.mxu0 %v1328_v10  ;;  %v604_v10 = vrot.slane %v3785_v29, 1 }
  0x9b   : > { %1101 = vmatmul.f32.gmra.mxu2 %v699_v9  ;;  %v1338_v9 = vsel %vm573_vm0, %v3964_v35, %v1337_v61 }
  0x9c   : > { %1615 = vmatmul.f32.gmra.mxu3 %v3843_v50 }
  0x9d   : > { %991 = vmatmul.f32.gmra.mxu1 %v588_v11  ;;  %v4002_v11 = vrot.slane %v3821_v43, 1 }
  0xa1   : > { %1734 = vmatmul.f32.gmra.mxu0 %v1331_v19  ;;  %v1341_v19 = vsel %vm573_vm0, %v604_v10, %v4002_v11  ;;  %v615_v10 = vrot.slane %v3691_v23, 1 }
  0xa3   : > { %1104 = vmatmul.f32.gmra.mxu2 %v701_v18 }
  0xa4   : > { %1618 = vmatmul.f32.gmra.mxu3 %v3855_v57  ;;  %v599_v57 = vrot.slane %v3693_v26, 1 }
  0xa5   : > { %994 = vmatmul.f32.gmra.mxu1 %v1326_v55  ;;  %v707_v55 = vrot.slane %v3476_v28, 2 }
  0xa6   : > { %v1336_v46 = vsel %vm573_vm0, %v599_v57, %v3964_v35 }
  0xa7   : > { %v709_v5 = vsel %vm686_vm1, %v707_v55, %v708_v59  ;;  %v3153_v55 = vld [vmem:[%s4946_s3 + $0x2c0] sm:$0xff] }
  0xa8   : > { %v3979_v45 = vpop.f32.mrf.mxu1  ;;  %1820 = vmatpush.msra.mxu1 %v3153_v55  ;;  %v3168_v55 = vld [vmem:[%s4946_s3 + $0x338] sm:$0xff] }
  0xa9   : > { %1737 = vmatmul.f32.gmra.mxu0 %v1333_v8  ;;  %2400 = vmatpush.msra.mxu2 %v3168_v55  ;;  %v723_v55 = vrot.slane %v3857_v60, 2 }
  0xab   : > { %1107 = vmatmul.f32.gmra.mxu2 %v704_v32  ;;  %v3966_v37 = vpop.f32.mrf.mxu0  ;;  %v3202_v32 = vld [vmem:[%s4946_s3 + $0x448] sm:$0xff] }
  0xac   : > { %1621 = vmatmul.f32.gmra.mxu3 %v1227_v12  ;;  %v710_v12 = vrot.slane %v491_v51, 2  ;;  %2624 = vmatpush.msra.mxu0 %v3202_v32 }
  0xad   : > { %997 = vmatmul.f32.gmra.mxu1 %v593_v34  ;;  %v602_v34 = vrot.slane %v494_v21, 1 }
  0xae   : > { %v711_v17 = vsel %vm686_vm1, %v708_v59, %v710_v12  ;;  %v4958_v12 = vrot.slane %v3691_v23, 2  ;;  %2625 = vmatpush.msra.mxu0 %v3201_v2  ;;  %v1241_v2 = vld [vmem:[#allocation2 + $0xd0] sm:$0x3] }
  0xaf   : > { %v603_v42 = vsel %vm573_vm0, %v3964_v35, %v602_v34 }
  0xb1   : > { %1740 = vmatmul.f32.gmra.mxu0 %v1336_v46 }
  0xb3   : > { %1110 = vmatmul.f32.gmra.mxu2 %v706_v44  ;;  %v3991_v4 = vpop.f32.mrf.mxu0  ;;  %v4048_v44 = vrot.slane %v3857_v60, 1 }
  0xb4   : > { %1624 = vmatmul.f32.gmra.mxu3 %v3659_v3  ;;  %v598_v3 = vsel %vm573_vm0, %v3935_v40, %v597_v1  ;;  %v1238_v1 = vld [vmem:[#allocation2 + $0xb8] sm:$0x3] }
  0xb5   : > { %1000 = vmatmul.f32.gmra.mxu1 %v596_v48  ;;  %v3185_v48 = vld [vmem:[%s4946_s3 + $0x3c0] sm:$0xff]  ;;  %v1346_v0 = vsel %vm573_vm0, %v609_v53, %v4048_v44 }
  0xb6   : > { %2512 = vmatpush.msra.mxu3 %v3185_v48  ;;  %v1239_v53 = vld [vmem:[#allocation2 + $0xc0] sm:$0xff] }
  0xb7   : > { %v1349_v47 = vrot.slane %v1239_v53, 1 }
  0xb9   : > { %1743 = vmatmul.f32.gmra.mxu0 %v1338_v9  ;;  %v614_v9 = vrot.slane %v3652_v58, 1 }
  0xba   : > { %v3996_v28 = vpop.f32.mrf.mxu1 }
  0xbb   : > { %1113 = vmatmul.f32.gmra.mxu2 %v709_v5 }
  0xbc   : > { %1627 = vmatmul.f32.gmra.mxu3 %v3693_v26 }
  0xbd   : > { %1003 = vmatmul.f32.gmra.mxu1 %v598_v3  ;;  %v727_v3 = vrot.slane %v3652_v58, 2 }
  0xbe   : > { %v4011_v40 = vpop.f32.mrf.mxu2  ;;  %v4019_v18 = vpop.f32.mrf.mxu0 }
  0xbf   : > { %4961 = vst [vmem:[#allocation4_spill] sm:$0xff] %v4011_v40  ;;  %v4013_v15 = vpop.f32.mrf.mxu3  ;;  %v4426_v40 = vld [vmem:[#allocation2 + $0x170] sm:$0xff] }
  0xc0   : > { %4962 = vst [vmem:[#allocation5_spill] sm:$0xff] %v4013_v15  ;;  %v1253_v15 = vld [vmem:[#allocation2 + $0x130] sm:$0x3] }
  0xc1   : > { %1746 = vmatmul.f32.gmra.mxu0 %v1341_v19 }
  0xc2   : > { %v4023_v6 = vpop.f32.mrf.mxu1 }
  0xc3   : > { %1116 = vmatmul.f32.gmra.mxu2 %v711_v17  ;;  %v1347_v17 = vrot.slane %v1238_v1, 1 }
  0xc4   : > { %1630 = vmatmul.f32.gmra.mxu3 %v3742_v62  ;;  %v1343_v62 = vsel %vm573_vm0, %v4002_v11, %v1342_v31  ;;  %v4088_v31 = vsel %vm573_vm0, %v614_v9, %v615_v10 }
  0xc5   : > { %1006 = vmatmul.f32.gmra.mxu1 %v1336_v46  ;;  %v715_v46 = vrot.slane %v494_v21, 2  ;;  %v607_v21 = vrot.slane %v497_v13, 1  ;;  %v1348_v34 = vsel %vm573_vm0, %v4048_v44, %v1347_v17  ;;  %v3152_v17 = vld [vmem:[%s4946_s3 + $0x2b8] sm:$0xff] }
  0xc6   : > { %v4031_v8 = vpop.f32.mrf.mxu2  ;;  %v4038_v38 = vpop.f32.mrf.mxu0  ;;  %1821 = vmatpush.msra.mxu1 %v3152_v17  ;;  %v3200_v17 = vld [vmem:[%s4946_s3 + $0x438] sm:$0xff] }
  0xc7   : > { %4963 = vst [vmem:[#allocation6_spill] sm:$0xff] %v4031_v8  ;;  %v4033_v57 = vpop.f32.mrf.mxu3  ;;  %v716_v59 = vsel %vm686_vm1, %v713_v27, %v715_v46  ;;  %v720_v46 = vrot.slane %v497_v13, 2  ;;  %2626 = vmatpush.msra.mxu0 %v3200_v17  ;;  %v4159_v17 = vld [vmem:[#allocation2 + $0xe0] sm:$0xff] }
  0xc8   : > { %4964 = vst [vmem:[#allocation7_spill] sm:$0xff] %v4033_v57  ;;  %v3148_v57 = vld [vmem:[%s4946_s3 + $0x298] sm:$0xff] }
  0xc9   : > { %1749 = vmatmul.f32.gmra.mxu0 %v1343_v62  ;;  %v721_v9 = vsel %vm686_vm1, %v718_v16, %v720_v46  ;;  %v4956_v46 = vrot.slane %v3780_v22, 2 }
  0xca   : > { %v4042_v41 = vpop.f32.mrf.mxu1 }
  0xcb   : > { %1119 = vmatmul.f32.gmra.mxu2 %v714_v36  ;;  %v4102_v36 = vld [vmem:[#allocation2 + $0xc8] sm:$0xff] }
  0xcc   : > { %1633 = vmatmul.f32.gmra.mxu3 %v3785_v29  ;;  %v1350_v48 = vrot.slane %v4102_v36, 1 }
  0xcd   : > { %1009 = vmatmul.f32.gmra.mxu1 %v603_v42  ;;  %v608_v42 = vsel %vm573_vm0, %v4002_v11, %v607_v21 }
  0xce   : > { %v4057_v35 = vpop.f32.mrf.mxu2  ;;  %v4065_v61 = vpop.f32.mrf.mxu0  ;;  %v1351_v13 = vsel %vm573_vm0, %v1349_v47, %v1350_v48  ;;  %v4953_v47 = vrot.slane %v3845_v54, 2 }
  0xcf   : > { %4965 = vst [vmem:[#allocation8_spill] sm:$0xff] %v4057_v35  ;;  %v4059_v51 = vpop.f32.mrf.mxu3  ;;  %v1259_v35 = vld [vmem:[#allocation2 + $0x160] sm:$0x3] }
  0xd0   : > { %4966 = vst [vmem:[#allocation9_spill] sm:$0xff] %v4059_v51 }
  0xd1   : > { %1752 = vmatmul.f32.gmra.mxu0 %v1346_v0 }
  0xd2   : > { %v4069_v5 = vpop.f32.mrf.mxu1 }
  0xd3   : > { %4967 = vst [vmem:[#allocation10_spill] sm:$0xff] %v4069_v5  ;;  %1122 = vmatmul.f32.gmra.mxu2 %v716_v59  ;;  %v3184_v59 = vld [vmem:[%s4946_s3 + $0x3b8] sm:$0xff] }
  0xd4   : > { %1636 = vmatmul.f32.gmra.mxu3 %v3821_v43  ;;  %v4093_v43 = vsel %vm686_vm1, %v727_v3, %v4958_v12 }
  0xd5   : > { %1012 = vmatmul.f32.gmra.mxu1 %v1341_v19  ;;  %v719_v19 = vsel %vm686_vm1, %v4950_v14, %v718_v16  ;;  %2513 = vmatpush.msra.mxu3 %v3184_v59  ;;  %v500_v16 = vld [vmem:[#allocation2 + $0xb8] sm:$0x3]  ;;  %v1352_v59 = vrot.slane %v1241_v2, 1  ;;  %v724_v14 = vsel %vm686_vm1, %v4953_v47, %v723_v55 }
  0xd6   : > { %v4081_v58 = vpop.f32.mrf.mxu2  ;;  %v4098_v32 = vpop.f32.mrf.mxu0 }
  0xd7   : > { %4968 = vst [vmem:[#allocation11_spill] sm:$0xff] %v4081_v58  ;;  %v4083_v27 = vpop.f32.mrf.mxu3  ;;  %2514 = vmatpush.msra.mxu3 %v3183_v33 }
  0xd8   : > { %4969 = vst [vmem:[#allocation12_spill] sm:$0xff] %v4083_v27 }
  0xd9   : > { %1755 = vmatmul.f32.gmra.mxu0 %v1348_v34  ;;  %v732_v34 = vrot.slane %v3736_v52, 2 }
  0xda   : > { %v4104_v62 = vpop.f32.mrf.mxu1 }
  0xdb   : > { %4970 = vst [vmem:[#allocation13_spill] sm:$0xff] %v4104_v62  ;;  %1125 = vmatmul.f32.gmra.mxu2 %v719_v19  ;;  %v619_v19 = vrot.slane %v3736_v52, 1 }
  0xdc   : > { %1639 = vmatmul.f32.gmra.mxu3 %v3845_v54 }
  0xdd   : > { %1015 = vmatmul.f32.gmra.mxu1 %v608_v42  ;;  %v4957_v42 = vrot.slane %v3780_v22, 1 }
  0xde   : > { %v4116_v11 = vpop.f32.mrf.mxu2  ;;  %v4121_v3 = vpop.f32.mrf.mxu0 }
  0xdf   : > { %4971 = vst [vmem:[#allocation14_spill] sm:$0xff] %v4116_v11  ;;  %v4118_v1 = vpop.f32.mrf.mxu3  ;;  %v4152_v2 = vsel %vm573_vm0, %v619_v19, %v4957_v42  ;;  %v1355_v19 = vrot.slane %v4159_v17, 1 }
  0xe0   : > { %4972 = vst [vmem:[#allocation15_spill] sm:$0xff] %v4118_v1 }
  0xe1   : > { %1758 = vmatmul.f32.gmra.mxu0 %v1351_v13 }
  0xe2   : > { %v4127_v21 = vpop.f32.mrf.mxu1 }
  0xe3   : > { %4973 = vst [vmem:[#allocation16_spill] sm:$0xff] %v4127_v21  ;;  %1128 = vmatmul.f32.gmra.mxu2 %v721_v9  ;;  %v612_v9 = vrot.slane %v500_v16, 1 }
  0xe4   : > { %1642 = vmatmul.f32.gmra.mxu3 %v3857_v60  ;;  %v1353_v60 = vsel %vm573_vm0, %v1350_v48, %v1352_v59  ;;  %v1242_v48 = vld [vmem:[#allocation2 + $0xd8] sm:$0xff]  ;;  %v725_v59 = vrot.slane %v500_v16, 2 }
  0xe5   : > { %1018 = vmatmul.f32.gmra.mxu1 %v1346_v0  ;;  %v4157_v0 = vsel %vm686_vm1, %v732_v34, %v4956_v46  ;;  %v613_v47 = vsel %vm573_vm0, %v4048_v44, %v612_v9  ;;  %v1354_v63 = vrot.slane %v1242_v48, 1  ;;  %v3167_v34 = vld [vmem:[%s4946_s3 + $0x330] sm:$0xff] }
  0xe6   : > { %v4139_v52 = vpop.f32.mrf.mxu2  ;;  %v4146_v25 = vpop.f32.mrf.mxu0  ;;  %2401 = vmatpush.msra.mxu2 %v3167_v34  ;;  %v3151_v9 = vld [vmem:[%s4946_s3 + $0x2b0] sm:$0xff] }
  0xe7   : > { %4974 = vst [vmem:[#allocation17_spill] sm:$0xff] %v4139_v52  ;;  %v4141_v13 = vpop.f32.mrf.mxu3  ;;  %v1356_v16 = vsel %vm573_vm0, %v1354_v63, %v1355_v19  ;;  %1822 = vmatpush.msra.mxu1 %v3151_v9  ;;  %v1256_v52 = vld [vmem:[#allocation2 + $0x148] sm:$0x3] }
  0xe8   : > { %4975 = vst [vmem:[#allocation18_spill] sm:$0xff] %v4141_v13 }
  0xe9   : > { %1761 = vmatmul.f32.gmra.mxu0 %v1353_v60  ;;  %v1244_v60 = vld [vmem:[#allocation2 + $0xe8] sm:$0x3] }
  0xea   : > { %v4161_v20 = vpop.f32.mrf.mxu1  ;;  %v1357_v33 = vrot.slane %v1244_v60, 1  ;;  %v1245_v60 = vld [vmem:[#allocation2 + $0xf0] sm:$0xff] }
  0xeb   : > { %4976 = vst [vmem:[#allocation19_spill] sm:$0xff] %v4161_v20  ;;  %1131 = vmatmul.f32.gmra.mxu2 %v724_v14  ;;  %v726_v14 = vsel %vm686_vm1, %v723_v55, %v725_v59  ;;  %v3199_v55 = vld [vmem:[%s4946_s3 + $0x430] sm:$0xff]  ;;  %v1359_v12 = vrot.slane %v1245_v60, 1  ;;  %v4960_v20 = vrot.slane %v4426_v40, 1 }
  0xec   : > { %1645 = vmatmul.f32.gmra.mxu3 %v1239_v53  ;;  %2627 = vmatpush.msra.mxu0 %v3199_v55 }
  0xed   : > { %1021 = vmatmul.f32.gmra.mxu1 %v613_v47  ;;  %v503_v47 = vld [vmem:[#allocation2 + $0xd0] sm:$0x3] }
  0xee   : > { %v4172_v46 = vpop.f32.mrf.mxu2  ;;  %v1717_v53 = vpop.f32.mrf.mxu0  ;;  %v617_v59 = vrot.slane %v503_v47, 1  ;;  %v730_v55 = vrot.slane %v503_v47, 2  ;;  %v4981_v47 = vrot.slane %v3691_v23, 2  ;;  %v3198_v23 = vld [vmem:[%s4946_s3 + $0x428] sm:$0xff] }
  0xef   : > { %4977 = vst [vmem:[#allocation20_spill] sm:$0xff] %v4172_v46  ;;  %v4174_v44 = vpop.f32.mrf.mxu3  ;;  %2628 = vmatpush.msra.mxu0 %v3198_v23 }
  0xf0   : > { %4978 = vst [vmem:[#allocation21_spill] sm:$0xff] %v4174_v44 }
  0xf1   : > { %1764 = vmatmul.f32.gmra.mxu0 %v1356_v16 }
  0xf2   : > { %v977_v42 = vpop.f32.mrf.mxu1 }
  0xf3   : > { %1134 = vmatmul.f32.gmra.mxu2 %v726_v14  ;;  %v1358_v14 = vsel %vm573_vm0, %v1355_v19, %v1357_v33  ;;  %v3182_v19 = vld [vmem:[%s4946_s3 + $0x3a8] sm:$0xff] }
  0xf4   : > { %1648 = vmatmul.f32.gmra.mxu3 %v4102_v36  ;;  %v618_v36 = vsel %vm573_vm0, %v615_v10, %v617_v59  ;;  %v978_v10 = vadd.f32 %v977_v42, %v3966_v37  ;;  %v3150_v37 = vld [vmem:[%s4946_s3 + $0x2a8] sm:$0xff]  ;;  %v1247_v42 = vld [vmem:[#allocation2 + $0x100] sm:$0x3] }
  0xf5   : > { %1024 = vmatmul.f32.gmra.mxu1 %v4088_v31  ;;  %v4196_v31 = vrot.slane %v3841_v49, 1  ;;  %2515 = vmatpush.msra.mxu3 %v3182_v19 }
  0xf6   : > { %v4186_v63 = vpop.f32.mrf.mxu2  ;;  %v1720_v9 = vpop.f32.mrf.mxu0  ;;  %1823 = vmatpush.msra.mxu1 %v3150_v37 }
  0xf7   : > { %4979 = vst [vmem:[#allocation22_spill] sm:$0xff] %v4186_v63  ;;  %v4188_v34 = vpop.f32.mrf.mxu3  ;;  %v1361_v13 = vsel %vm573_vm0, %v1359_v12, %v4196_v31 }
  0xf8   : > { %4980 = vst [vmem:[#allocation23_spill] sm:$0xff] %v4188_v34  ;;  %v3166_v34 = vld [vmem:[%s4946_s3 + $0x328] sm:$0xff] }
  0xf9   : > { %1767 = vmatmul.f32.gmra.mxu0 %v1358_v14  ;;  %2402 = vmatpush.msra.mxu2 %v3166_v34  ;;  %v731_v14 = vsel %vm686_vm1, %v4981_v47, %v730_v55 }
  0xfa   : > { %v980_v16 = vpop.f32.mrf.mxu1 }
  0xfb   : > { %1137 = vmatmul.f32.gmra.mxu2 %v4093_v43  ;;  %v981_v55 = vadd.f32 %v980_v16, %v3991_v4  ;;  %v629_v4 = vrot.slane %v3853_v56, 1  ;;  %v3165_v16 = vld [vmem:[%s4946_s3 + $0x320] sm:$0xff] }
  0xfc   : > { %1651 = vmatmul.f32.gmra.mxu3 %v1242_v48  ;;  %2403 = vmatpush.msra.mxu2 %v3165_v16 }
  0xfd   : > { %1027 = vmatmul.f32.gmra.mxu1 %v618_v36  ;;  %v506_v36 = vld [vmem:[#allocation2 + $0xe8] sm:$0x3] }
  0xfe   : > { %v1090_v43 = vpop.f32.mrf.mxu2  ;;  %v1723_v44 = vpop.f32.mrf.mxu0  ;;  %v622_v19 = vrot.slane %v506_v36, 1 }
  0xff   : > { %v4205_v33 = vadd.f32 %v1090_v43, %v978_v10  ;;  %v1604_v59 = vpop.f32.mrf.mxu3 }
 0x100   : > { %v4207_v48 = vadd.f32 %v1717_v53, %v1604_v59  ;;  %v1362_v53 = vrot.slane %v1247_v42, 1  ;;  %v3181_v42 = vld [vmem:[%s4946_s3 + $0x3a0] sm:$0xff] }
 0x101   : > { %1770 = vmatmul.f32.gmra.mxu0 %v1361_v13  ;;  %2516 = vmatpush.msra.mxu3 %v3181_v42 }
 0x102   : > { %v983_v34 = vpop.f32.mrf.mxu1 }
 0x103   : > { %1140 = vmatmul.f32.gmra.mxu2 %v731_v14  ;;  %v4982_v14 = vrot.slane %v3780_v22, 1 }
 0x104   : > { %1654 = vmatmul.f32.gmra.mxu3 %v4159_v17  ;;  %v1363_v17 = vsel %vm573_vm0, %v4196_v31, %v1362_v53  ;;  %v984_v53 = vadd.f32 %v983_v34, %v4019_v18  ;;  %v3149_v18 = vld [vmem:[%s4946_s3 + $0x2a0] sm:$0xff]  ;;  %v1250_v34 = vld [vmem:[#allocation2 + $0x118] sm:$0x3] }
 0x105   : > { %1030 = vmatmul.f32.gmra.mxu1 %v4152_v2  ;;  %v623_v37 = vsel %vm573_vm0, %v4982_v14, %v622_v19  ;;  %v4235_v2 = vrot.slane %v3874_v7, 1 }
 0x106   : > { %v1093_v12 = vpop.f32.mrf.mxu2  ;;  %v1726_v13 = vpop.f32.mrf.mxu0  ;;  %1824 = vmatpush.msra.mxu1 %v3149_v18 }
 0x107   : > { %v4223_v10 = vadd.f32 %v1093_v12, %v981_v55  ;;  %v1607_v43 = vpop.f32.mrf.mxu3  ;;  %v4983_v12 = vrot.slane %v3780_v22, 2  ;;  %v737_v22 = vrot.slane %v3814_v39, 2 }
 0x108   : > { %v4225_v59 = vadd.f32 %v1720_v9, %v1607_v43  ;;  %v735_v9 = vrot.slane %v506_v36, 2  ;;  %1825 = vmatpush.msra.mxu1 %v3148_v57  ;;  %v1372_v57 = vrot.slane %v1253_v15, 1 }
 0x109   : > { %1773 = vmatmul.f32.gmra.mxu0 %v1363_v17  ;;  %v4254_v17 = vsel %vm573_vm0, %v629_v4, %v4235_v2  ;;  %v509_v4 = vld [vmem:[#allocation2 + $0x100] sm:$0x3] }
 0x10a   : > { %v986_v47 = vpop.f32.mrf.mxu1  ;;  %v736_v19 = vsel %vm686_vm1, %v4983_v12, %v735_v9  ;;  %v738_v9 = vrot.slane %v3841_v49, 2  ;;  %v627_v18 = vrot.slane %v509_v4, 1 }
 0x10b   : > { %1143 = vmatmul.f32.gmra.mxu2 %v4157_v0  ;;  %v624_v0 = vrot.slane %v3814_v39, 1  ;;  %v3197_v39 = vld [vmem:[%s4946_s3 + $0x420] sm:$0xff]  ;;  %v987_v12 = vadd.f32 %v986_v47, %v4038_v38 }
 0x10c   : > { %1657 = vmatmul.f32.gmra.mxu3 %v1245_v60  ;;  %2629 = vmatpush.msra.mxu0 %v3197_v39 }
 0x10d   : > { %1033 = vmatmul.f32.gmra.mxu1 %v623_v37  ;;  %v3272_v37 = vld [vmem:[#allocation2 + $0x120] sm:$0xff] }
 0x10e   : > { %v1096_v23 = vpop.f32.mrf.mxu2  ;;  %v1729_v43 = vpop.f32.mrf.mxu0  ;;  %v634_v16 = vrot.slane %v3272_v37, 1  ;;  %v747_v42 = vrot.slane %v3272_v37, 2 }
 0x10f   : > { %v4245_v55 = vadd.f32 %v1096_v23, %v984_v53  ;;  %v1610_v60 = vpop.f32.mrf.mxu3  ;;  %v4264_v53 = vld [vmem:[#allocation2 + $0x128] sm:$0xff]  ;;  %v739_v23 = vsel %vm686_vm1, %v737_v22, %v738_v9  ;;  %v740_v22 = vrot.slane %v509_v4, 2 }
 0x110   : > { %v4247_v36 = vadd.f32 %v1723_v44, %v1610_v60  ;;  %v626_v44 = vsel %vm573_vm0, %v624_v0, %v4196_v31  ;;  %v1367_v0 = vrot.slane %v1250_v34, 1  ;;  %v4984_v34 = vrot.slane %v4264_v53, 1 }
 0x111   : > { %1776 = vmatmul.f32.gmra.mxu0 %v4254_v17  ;;  %v4985_v38 = vrot.slane %v4264_v53, 2 }
 0x112   : > { %v989_v14 = vpop.f32.mrf.mxu1  ;;  %v4283_v51 = vsel %vm573_vm0, %v634_v16, %v4984_v34 }
 0x113   : > { %1146 = vmatmul.f32.gmra.mxu2 %v736_v19  ;;  %v4288_v47 = vsel %vm686_vm1, %v747_v42, %v4985_v38  ;;  %v3164_v42 = vld [vmem:[%s4946_s3 + $0x318] sm:$0xff] }
 0x114   : > { %1660 = vmatmul.f32.gmra.mxu3 %v3841_v49  ;;  %v1368_v49 = vsel %vm573_vm0, %v4235_v2, %v1367_v0  ;;  %2404 = vmatpush.msra.mxu2 %v3164_v42 }
 0x115   : > { %1036 = vmatmul.f32.gmra.mxu1 %v626_v44  ;;  %v4290_v44 = vld [vmem:[#allocation2 + $0x128] sm:$0xff] }
 0x116   : > { %v1099_v19 = vpop.f32.mrf.mxu2  ;;  %v1732_v60 = vpop.f32.mrf.mxu0  ;;  %v1370_v16 = vrot.slane %v4290_v44, 1 }
 0x117   : > { %v4273_v37 = vadd.f32 %v1099_v19, %v987_v12  ;;  %v1613_v1 = vpop.f32.mrf.mxu3  ;;  %v3180_v12 = vld [vmem:[%s4946_s3 + $0x398] sm:$0xff]  ;;  %v990_v19 = vadd.f32 %v989_v14, %v4065_v61 }
 0x118   : > { %v4276_v27 = vadd.f32 %v1726_v13, %v1613_v1  ;;  %v628_v1 = vsel %vm573_vm0, %v4196_v31, %v627_v18  ;;  %v1251_v13 = vld [vmem:[#allocation2 + $0x120] sm:$0xff]  ;;  %2517 = vmatpush.msra.mxu3 %v3180_v12  ;;  %v3274_v14 = vld [vmem:[#allocation2 + $0x138] sm:$0xff]  ;;  %v743_v12 = vrot.slane %v3874_v7, 2  ;;  %v1373_v63 = vsel %vm573_vm0, %v1370_v16, %v1372_v57 }
 0x119   : > { %1779 = vmatmul.f32.gmra.mxu0 %v1368_v49  ;;  %v1369_v0 = vrot.slane %v1251_v13, 1  ;;  %v741_v49 = vsel %vm686_vm1, %v738_v9, %v740_v22  ;;  %v752_v9 = vrot.slane %v3274_v14, 2  ;;  %v4314_v22 = vld [vmem:[#allocation2 + $0x140] sm:$0xff] }
 0x11a   : > { %v992_v39 = vpop.f32.mrf.mxu1  ;;  %v4987_v46 = vrot.slane %v4314_v22, 1 }
 0x11b   : > { %1149 = vmatmul.f32.gmra.mxu2 %v739_v23  ;;  %v1371_v38 = vsel %vm573_vm0, %v1369_v0, %v1370_v16  ;;  %v4986_v0 = vrot.slane %v3853_v56, 2 }
 0x11c   : > { %1663 = vmatmul.f32.gmra.mxu3 %v3853_v56 }
 0x11d   : > { %1039 = vmatmul.f32.gmra.mxu1 %v628_v1  ;;  %v639_v1 = vrot.slane %v3274_v14, 1 }
 0x11e   : > { %v1102_v31 = vpop.f32.mrf.mxu2  ;;  %v1735_v34 = vpop.f32.mrf.mxu0 }
 0x11f   : > { %v4303_v23 = vadd.f32 %v1102_v31, %v990_v19  ;;  %v1616_v4 = vpop.f32.mrf.mxu3  ;;  %v3196_v31 = vld [vmem:[%s4946_s3 + $0x418] sm:$0xff]  ;;  %v744_v19 = vsel %vm686_vm1, %v4986_v0, %v743_v12 }
 0x120   : > { %v4305_v18 = vadd.f32 %v1729_v43, %v1616_v4  ;;  %v512_v43 = vld [vmem:[#allocation2 + $0x118] sm:$0x3]  ;;  %v993_v4 = vadd.f32 %v992_v39, %v4098_v32  ;;  %2630 = vmatpush.msra.mxu0 %v3196_v31  ;;  %v4335_v32 = vsel %vm573_vm0, %v639_v1, %v4987_v46  ;;  %v4342_v31 = vld [vmem:[#allocation2 + $0x140] sm:$0xff]  ;;  %v3163_v1 = vld [vmem:[%s4946_s3 + $0x310] sm:$0xff] }
 0x121   : > { %1782 = vmatmul.f32.gmra.mxu0 %v1371_v38  ;;  %v632_v38 = vrot.slane %v512_v43, 1  ;;  %v745_v16 = vrot.slane %v512_v43, 2  ;;  %v1375_v46 = vrot.slane %v4342_v31, 1  ;;  %2405 = vmatpush.msra.mxu2 %v3163_v1  ;;  %v515_v1 = vld [vmem:[#allocation2 + $0x130] sm:$0x3] }
 0x122   : > { %v995_v61 = vpop.f32.mrf.mxu1 }
 0x123   : > { %1152 = vmatmul.f32.gmra.mxu2 %v741_v49  ;;  %v996_v57 = vadd.f32 %v995_v61, %v4121_v3  ;;  %v3276_v61 = vld [vmem:[#allocation2 + $0x150] sm:$0xff] }
 0x124   : > { %1666 = vmatmul.f32.gmra.mxu3 %v3874_v7 }
 0x125   : > { %1042 = vmatmul.f32.gmra.mxu1 %v4254_v17  ;;  %v4988_v17 = vrot.slane %v4314_v22, 2 }
 0x126   : > { %v1105_v49 = vpop.f32.mrf.mxu2  ;;  %v1738_v15 = vpop.f32.mrf.mxu0 }
 0x127   : > { %v4324_v14 = vadd.f32 %v1105_v49, %v993_v4  ;;  %v1619_v42 = vpop.f32.mrf.mxu3  ;;  %v4340_v39 = vsel %vm686_vm1, %v752_v9, %v4988_v17  ;;  %v3179_v9 = vld [vmem:[%s4946_s3 + $0x390] sm:$0xff] }
 0x128   : > { %v4329_v7 = vadd.f32 %v1732_v60, %v1619_v42  ;;  %v633_v60 = vsel %vm573_vm0, %v4235_v2, %v632_v38  ;;  %v1254_v42 = vld [vmem:[#allocation2 + $0x138] sm:$0xff]  ;;  %2518 = vmatpush.msra.mxu3 %v3179_v9  ;;  %v3147_v17 = vld [vmem:[%s4946_s3 + $0x290] sm:$0xff] }
 0x129   : > { %1785 = vmatmul.f32.gmra.mxu0 %v1373_v63  ;;  %v1374_v0 = vrot.slane %v1254_v42, 1  ;;  %1826 = vmatpush.msra.mxu1 %v3147_v17  ;;  %v4365_v9 = vld [vmem:[#allocation2 + $0x158] sm:$0xff] }
 0x12a   : > { %v998_v4 = vpop.f32.mrf.mxu1 }
 0x12b   : > { %1155 = vmatmul.f32.gmra.mxu2 %v744_v19  ;;  %v746_v19 = vsel %vm686_vm1, %v743_v12, %v745_v16  ;;  %v1376_v38 = vsel %vm573_vm0, %v1374_v0, %v1375_v46  ;;  %v4959_v12 = vrot.slane %v4365_v9, 1  ;;  %v1377_v0 = vrot.slane %v1256_v52, 1 }
 0x12c   : > { %1669 = vmatmul.f32.gmra.mxu3 %v1251_v13 }
 0x12d   : > { %1045 = vmatmul.f32.gmra.mxu1 %v633_v60  ;;  %v644_v60 = vrot.slane %v3276_v61, 1 }
 0x12e   : > { %v1108_v2 = vpop.f32.mrf.mxu2  ;;  %v1741_v49 = vpop.f32.mrf.mxu0 }
 0x12f   : > { %v4354_v63 = vadd.f32 %v1108_v2, %v996_v57  ;;  %v1622_v13 = vpop.f32.mrf.mxu3  ;;  %v3195_v57 = vld [vmem:[%s4946_s3 + $0x410] sm:$0xff]  ;;  %v999_v2 = vadd.f32 %v998_v4, %v4146_v25  ;;  %v4383_v52 = vsel %vm573_vm0, %v644_v60, %v4959_v12  ;;  %v4989_v25 = vrot.slane %v4365_v9, 2  ;;  %v4390_v4 = vld [vmem:[#allocation2 + $0x158] sm:$0xff] }
 0x130   : > { %v4356_v43 = vadd.f32 %v1735_v34, %v1622_v13  ;;  %v757_v34 = vrot.slane %v3276_v61, 2  ;;  %2631 = vmatpush.msra.mxu0 %v3195_v57  ;;  %v750_v60 = vrot.slane %v515_v1, 2 }
 0x131   : > { %1788 = vmatmul.f32.gmra.mxu0 %v1376_v38 }
 0x132   : > { %v4363_v3 = vpop.f32.mrf.mxu1 }
 0x133   : > { %1158 = vmatmul.f32.gmra.mxu2 %v746_v19  ;;  %v637_v19 = vrot.slane %v515_v1, 1 }
 0x134   : > { %1672 = vmatmul.f32.gmra.mxu3 %v4290_v44  ;;  %v1378_v44 = vsel %vm573_vm0, %v1375_v46, %v1377_v0  ;;  %v1257_v46 = vld [vmem:[#allocation2 + $0x150] sm:$0xff] }
 0x135   : > { %1048 = vmatmul.f32.gmra.mxu1 %v4283_v51  ;;  %v4388_v51 = vsel %vm686_vm1, %v757_v34, %v4989_v25  ;;  %v1379_v0 = vrot.slane %v1257_v46, 1  ;;  %v3162_v34 = vld [vmem:[%s4946_s3 + $0x308] sm:$0xff] }
 0x136   : > { %v1111_v13 = vpop.f32.mrf.mxu2  ;;  %v1744_v16 = vpop.f32.mrf.mxu0  ;;  %2406 = vmatpush.msra.mxu2 %v3162_v34  ;;  %v3146_v34 = vld [vmem:[%s4946_s3 + $0x288] sm:$0xff] }
 0x137   : > { %v4375_v38 = vadd.f32 %v1111_v13, %v999_v2  ;;  %v1625_v17 = vpop.f32.mrf.mxu3  ;;  %v1380_v13 = vrot.slane %v4390_v4, 1  ;;  %1827 = vmatpush.msra.mxu1 %v3146_v34 }
 0x138   : > { %v4377_v61 = vadd.f32 %v1738_v15, %v1625_v17  ;;  %v4990_v15 = vrot.slane %v4264_v53, 1  ;;  %v3178_v17 = vld [vmem:[%s4946_s3 + $0x388] sm:$0xff] }
 0x139   : > { %1791 = vmatmul.f32.gmra.mxu0 %v1378_v44  ;;  %2519 = vmatpush.msra.mxu3 %v3178_v17  ;;  %v3279_v17 = vld [vmem:[%s4945_s2] ss:$0 sm:$0xff] }
 0x13a   : > { %v4392_v57 = vpop.f32.mrf.mxu1  ;;  %v638_v2 = vsel %vm573_vm0, %v4990_v15, %v637_v19  ;;  %v299_v19 = vld [vmem:[%s3402_s12 + $0xf0] sm:$0xff]  ;;  %v4991_v15 = vrot.slane %v4264_v53, 2 }
 0x13b   : > { %1161 = vmatmul.f32.gmra.mxu2 %v4288_v47 }
 0x13c   : > { %1675 = vmatmul.f32.gmra.mxu3 %v1254_v42  ;;  %v3278_v42 = vld [vmem:[%s4944_s1] ss:$0 sm:$0xff]  ;;  %v751_v12 = vsel %vm686_vm1, %v4991_v15, %v750_v60  ;;  %v3280_v60 = vld [vmem:[#allocation2 + $0x168] sm:$0xff] }
 0x13d   : > { %1051 = vmatmul.f32.gmra.mxu1 %v638_v2  ;;  %v335_v1 = vmul.f32 %v3278_v42, %v299_v19  ;;  %v1381_v2 = vsel %vm573_vm0, %v1379_v0, %v1380_v13  ;;  %v300_v19 = vld [vmem:[%s3402_s12 + $0xf8] sm:$0xff]  ;;  %v649_v15 = vrot.slane %v3280_v60, 1  ;;  %v762_v8 = vrot.slane %v3280_v60, 2  ;;  %v518_v0 = vld [vmem:[#allocation2 + $0x148] sm:$0x3] }
 0x13e   : > { %v4406_v47 = vpop.f32.mrf.mxu2  ;;  %v1747_v11 = vpop.f32.mrf.mxu0 }
 0x13f   : > { %v1628_v44 = vpop.f32.mrf.mxu3  ;;  %v371_v58 = vadd.f32 %v3279_v17, %v335_v1  ;;  %v1382_v1 = vrot.slane %v1259_v35, 1  ;;  %v4443_v35 = vsel %vm573_vm0, %v649_v15, %v4960_v20  ;;  %v755_v15 = vrot.slane %v518_v0, 2  ;;  %v1262_v20 = vld [vmem:[#allocation2 + $0x178] sm:$0x3] }
 0x140   : > { %v4411_v25 = vadd.f32 %v1741_v49, %v1628_v44  ;;  %v336_v49 = vmul.f32 %v3278_v42, %v300_v19  ;;  %v3194_v42 = vld [vmem:[%s4946_s3 + $0x408] sm:$0xff] }
 0x141   : > { %v403_v53 = vmax.f32 %v371_v58, 0.0  ;;  %1794 = vmatmul.f32.gmra.mxu0 %v1381_v2  ;;  %v642_v2 = vrot.slane %v518_v0, 1 }
 0x142   : > { %v4424_v44 = vpop.f32.mrf.mxu1  ;;  %v372_v58 = vadd.f32 %v3279_v17, %v336_v49  ;;  %2632 = vmatpush.msra.mxu0 %v3194_v42  ;;  %v4992_v17 = vrot.slane %v4426_v40, 2  ;;  %v1261_v49 = vld [vmem:[#allocation2 + $0x170] sm:$0xff] }
 0x143   : > { %1164 = vmatmul.f32.gmra.mxu2 %v751_v12  ;;  %436 = vst [vmem:[#allocation2 + $0x181] sm:$0xff] %v403_v53 }
 0x144   : > { %1678 = vmatmul.f32.gmra.mxu3 %v4342_v31  ;;  %v404_v34 = vmax.f32 %v372_v58, 0.0  ;;  %v1383_v31 = vsel %vm573_vm0, %v1380_v13, %v1382_v1  ;;  %v1260_v13 = vld [vmem:[#allocation2 + $0x168] sm:$0xff]  ;;  %v1385_v58 = vrot.slane %v1261_v49, 1 }
 0x145   : > { %1054 = vmatmul.f32.gmra.mxu1 %v4335_v32  ;;  %v4448_v32 = vsel %vm686_vm1, %v762_v8, %v4992_v17  ;;  %v1384_v1 = vrot.slane %v1260_v13, 1  ;;  %v3161_v8 = vld [vmem:[%s4946_s3 + $0x300] sm:$0xff] }
 0x146   : > { %v4435_v12 = vpop.f32.mrf.mxu2  ;;  %v1750_v21 = vpop.f32.mrf.mxu0  ;;  %437 = vst [vmem:[#allocation2 + $0x189] sm:$0xff] %v404_v34  ;;  %v3177_v34 = vld [vmem:[%s4946_s3 + $0x380] sm:$0xff]  ;;  %2407 = vmatpush.msra.mxu2 %v3161_v8 }
 0x147   : > { %v1631_v19 = vpop.f32.mrf.mxu3  ;;  %2520 = vmatpush.msra.mxu3 %v3177_v34  ;;  %v1386_v17 = vsel %vm573_vm0, %v1384_v1, %v1385_v58  ;;  %v521_v8 = vld [vmem:[#allocation2 + $0x160] sm:$0x3] }
 0x148   : > { %v4437_v60 = vadd.f32 %v1744_v16, %v1631_v19  ;;  %v4993_v16 = vrot.slane %v4314_v22, 1  ;;  %v647_v1 = vrot.slane %v521_v8, 1 }
 0x149   : > { %1797 = vmatmul.f32.gmra.mxu0 %v1383_v31 }
 0x14a   : > { %v4450_v53 = vpop.f32.mrf.mxu1  ;;  %v643_v42 = vsel %vm573_vm0, %v4993_v16, %v642_v2  ;;  %v3145_v16 = vld [vmem:[%s4946_s3 + $0x280] sm:$0xff] }
 0x14b   : > { %1167 = vmatmul.f32.gmra.mxu2 %v4340_v39  ;;  %1828 = vmatpush.msra.mxu1 %v3145_v16 }
 0x14c   : > { %1681 = vmatmul.f32.gmra.mxu3 %v1257_v46  ;;  %v4994_v46 = vrot.slane %v4314_v22, 2  ;;  %v3193_v22 = vld [vmem:[%s4946_s3 + $0x400] sm:$0xff] }
 0x14d   : > { %1057 = vmatmul.f32.gmra.mxu1 %v643_v42  ;;  %2633 = vmatpush.msra.mxu0 %v3193_v22  ;;  %v760_v22 = vrot.slane %v521_v8, 2 }
 0x14e   : > { %v4462_v19 = vpop.f32.mrf.mxu2  ;;  %v756_v0 = vsel %vm686_vm1, %v4994_v46, %v755_v15  ;;  %v1753_v31 = vpop.f32.mrf.mxu0 }
 0x14f   : > { %v1634_v39 = vpop.f32.mrf.mxu3 }
 0x150   : > { %v4464_v2 = vadd.f32 %v1747_v11, %v1634_v39  ;;  %v1387_v11 = vrot.slane %v1262_v20, 1  ;;  %v4997_v20 = vrot.slane %v4365_v9, 1 }
 0x151   : > { %1800 = vmatmul.f32.gmra.mxu0 %v1386_v17  ;;  %v1264_v17 = vld [vmem:[#allocation2 + $0x188] sm:$0xff] }
 0x152   : > { %v4473_v42 = vpop.f32.mrf.mxu1 }
 0x153   : > { %4995 = vst [vmem:[#allocation24_spill] sm:$0xff] %v4473_v42  ;;  %1170 = vmatmul.f32.gmra.mxu2 %v756_v0  ;;  %v1388_v0 = vsel %vm573_vm0, %v1385_v58, %v1387_v11  ;;  %v1390_v42 = vrot.slane %v1264_v17, 1  ;;  %v4998_v11 = vrot.slane %v4365_v9, 2 }
 0x154   : > { %1684 = vmatmul.f32.gmra.mxu3 %v4390_v4  ;;  %v648_v4 = vsel %vm573_vm0, %v4997_v20, %v647_v1 }
 0x155   : > { %1060 = vmatmul.f32.gmra.mxu1 %v4383_v52  ;;  %v1263_v52 = vld [vmem:[#allocation2 + $0x180] sm:$0xff] }
 0x156   : > { %v4480_v15 = vpop.f32.mrf.mxu2  ;;  %v1756_v46 = vpop.f32.mrf.mxu0  ;;  %v1389_v62 = vrot.slane %v1263_v52, 1 }
 0x157   : > { %v1637_v34 = vpop.f32.mrf.mxu3 }
 0x158   : > { %v4482_v39 = vadd.f32 %v1750_v21, %v1637_v34  ;;  %v1391_v1 = vsel %vm573_vm0, %v1389_v62, %v1390_v42 }
 0x159   : > { %1803 = vmatmul.f32.gmra.mxu0 %v1388_v0 }
 0x15a   : > { %v4485_v16 = vpop.f32.mrf.mxu1 }
 0x15b   : > { %4996 = vst [vmem:[#allocation25_spill] sm:$0xff] %v4485_v16  ;;  %1173 = vmatmul.f32.gmra.mxu2 %v4388_v51  ;;  %v761_v16 = vsel %vm686_vm1, %v4998_v11, %v760_v22  ;;  %v1265_v51 = vld [vmem:[#allocation2 + $0x190] sm:$0x3]  ;;  %v5002_v11 = vrot.slane %v4426_v40, 1 }
 0x15c   : > { %1687 = vmatmul.f32.gmra.mxu3 %v1260_v13  ;;  %v524_v13 = vld [vmem:[#allocation2 + $0x178] sm:$0x3]  ;;  %v1392_v8 = vrot.slane %v1265_v51, 1 }
 0x15d   : > { %1063 = vmatmul.f32.gmra.mxu1 %v648_v4 }
 0x15e   : > { %v4491_v21 = vpop.f32.mrf.mxu2  ;;  %v1759_v5 = vpop.f32.mrf.mxu0 }
 0x15f   : > { %v1640_v34 = vpop.f32.mrf.mxu3 }
 0x160   : > { %v4493_v58 = vadd.f32 %v1753_v31, %v1640_v34  ;;  %v652_v31 = vrot.slane %v524_v13, 1  ;;  %v1393_v34 = vsel %vm573_vm0, %v1390_v42, %v1392_v8 }
 0x161   : > { %1806 = vmatmul.f32.gmra.mxu0 %v1391_v1  ;;  %v765_v1 = vrot.slane %v524_v13, 2 }
 0x162   : > { %v4499_v0 = vpop.f32.mrf.mxu1 }
 0x163   : > { %4999 = vst [vmem:[#allocation26_spill] sm:$0xff] %v4499_v0  ;;  %1176 = vmatmul.f32.gmra.mxu2 %v761_v16  ;;  %v653_v16 = vsel %vm573_vm0, %v5002_v11, %v652_v31 }
 0x164   : > { %1690 = vmatmul.f32.gmra.mxu3 %v1261_v49  ;;  %v2023_v49 = vld [vmem:[#allocation2 + $0x30] sm:$0xff] }
 0x165   : > { %1066 = vmatmul.f32.gmra.mxu1 %v4443_v35  ;;  %v2024_v35 = vld [vmem:[#allocation2 + $0x38] sm:$0xff]  ;;  %v2231_v51 = vrot.slane %v2023_v49, 2 }
 0x166   : > { %v4502_v20 = vpop.f32.mrf.mxu2  ;;  %v1762_v22 = vpop.f32.mrf.mxu0  ;;  %v2232_v0 = vrot.slane %v2024_v35, 2 }
 0x167   : > { %v1643_v4 = vpop.f32.mrf.mxu3 }
 0x168   : > { %v4504_v9 = vadd.f32 %v1756_v46, %v1643_v4  ;;  %v3282_v4 = vld [vmem:[#allocation2 + $0x20] sm:$0xff] }
 0x169   : > { %1809 = vmatmul.f32.gmra.mxu0 %v1393_v34  ;;  %v1427_v42 = vrot.slane %v3282_v4, 2  ;;  %v2233_v34 = vsel %vm686_vm1, %v2231_v51, %v2232_v0 }
 0x16a   : > { %5000 = vst [vmem:[#allocation27_spill] sm:$0xff] %v4504_v9  ;;  %v4507_v62 = vpop.f32.mrf.mxu1  ;;  %v5005_v9 = vrot.slane %v4426_v40, 2 }
 0x16b   : > { %5001 = vst [vmem:[#allocation28_spill] sm:$0xff] %v4507_v62  ;;  %1179 = vmatmul.f32.gmra.mxu2 %v4448_v32 }
 0x16c   : > { %1693 = vmatmul.f32.gmra.mxu3 %v1263_v52  ;;  %v766_v31 = vsel %vm686_vm1, %v5005_v9, %v765_v1  ;;  %v5007_v52 = vrot.slane %v3696_v30, 2  ;;  %v3283_v9 = vld [vmem:[#allocation2 + $0x28] sm:$0x3] }
 0x16d   : > { %1069 = vmatmul.f32.gmra.mxu1 %v653_v16  ;;  %v2025_v16 = vld [vmem:[#allocation2 + $0x40] sm:$0x3]  ;;  %v1429_v1 = vrot.slane %v3283_v9, 2 }
 0x16e   : > { %v4513_v46 = vpop.f32.mrf.mxu2  ;;  %v1765_v32 = vpop.f32.mrf.mxu0  ;;  %v1428_v13 = vsel %vm686_vm1, %v5007_v52, %v1427_v42  ;;  %v2234_v4 = vrot.slane %v2025_v16, 2  ;;  %v2122_v9 = vrot.slane %v2025_v16, 1  ;;  %v2028_v16 = vld [vmem:[#allocation2 + $0x58] sm:$0x3] }
 0x16f   : > { %5003 = vst [vmem:[#allocation29_spill] sm:$0xff] %v4513_v46  ;;  %v1646_v8 = vpop.f32.mrf.mxu3 }
 0x170   : > { %v4515_v62 = vadd.f32 %v1759_v5, %v1646_v8  ;;  %v2119_v5 = vrot.slane %v2023_v49, 1  ;;  %v2120_v8 = vrot.slane %v2024_v35, 1  ;;  %v2235_v30 = vsel %vm686_vm1, %v2232_v0, %v2234_v4 }
 0x171   : > { %2634 = vmatmul.f32.vlgmr.msra.gmra.mxu0 %v2233_v34  ;;  %v2026_v34 = vld [vmem:[#allocation2 + $0x48] sm:$0xff] }
 0x172   : > { %5004 = vst [vmem:[#allocation30_spill] sm:$0xff] %v4515_v62  ;;  %v4521_v11 = vpop.f32.mrf.mxu1  ;;  %v2121_v52 = vsel %vm573_vm0, %v2119_v5, %v2120_v8 }
 0x173   : > { %5006 = vst [vmem:[#allocation31_spill] sm:$0xff] %v4521_v11  ;;  %1182 = vmatmul.f32.gmra.mxu2 %v766_v31 }
 0x174   : > { %1696 = vmatmul.f32.gmra.mxu3 %v1264_v17  ;;  %v1430_v17 = vsel %vm686_vm1, %v1427_v42, %v1429_v1  ;;  %v5013_v1 = vrot.slane %v3782_v24, 2 }
 0x175   : > { %1829 = vmatmul.f32.vlgmr.msra.gmra.mxu1 %v1428_v13  ;;  %v2027_v13 = vld [vmem:[#allocation2 + $0x50] sm:$0xff] }
 0x176   : > { %v4526_v40 = vpop.f32.mrf.mxu2  ;;  %v1768_v11 = vpop.f32.mrf.mxu0  ;;  %v2237_v46 = vrot.slane %v2027_v13, 2 }
 0x177   : > { %5008 = vst [vmem:[#allocation32_spill] sm:$0xff] %v4526_v40  ;;  %v1649_v62 = vpop.f32.mrf.mxu3  ;;  %v2236_v40 = vrot.slane %v2026_v34, 2 }
 0x178   : > { %v4528_v51 = vadd.f32 %v1762_v22, %v1649_v62  ;;  %v3284_v62 = vld [vmem:[#allocation2 + $0x38] sm:$0xff] }
 0x179   : > { %2637 = vmatmul.f32.gmra.mxu0 %v2235_v30 }
 0x17a   : > { %5009 = vst [vmem:[#allocation33_spill] sm:$0xff] %v4528_v51  ;;  %v4532_v31 = vpop.f32.mrf.mxu1  ;;  %v1432_v51 = vrot.slane %v3284_v62, 2 }
 0x17b   : > { %5010 = vst [vmem:[#allocation34_spill] sm:$0xff] %v4532_v31  ;;  %2408 = vmatmul.f32.vlgmr.msra.gmra.mxu2 %v2023_v49  ;;  %v2238_v31 = vsel %vm686_vm1, %v2236_v40, %v2237_v46  ;;  %v2123_v49 = vsel %vm573_vm0, %v2120_v8, %v2122_v9 }
 0x17c   : > { %2521 = vmatmul.f32.vlgmr.msra.gmra.mxu3 %v2121_v52  ;;  %v1433_v30 = vsel %vm686_vm1, %v5013_v1, %v1432_v51  ;;  %v2239_v52 = vrot.slane %v2028_v16, 2 }
 0x17d   : > { %1832 = vmatmul.f32.gmra.mxu1 %v1430_v17  ;;  %v2124_v17 = vrot.slane %v2026_v34, 1 }
 0x17e   : > { %v4535_v22 = vpop.f32.mrf.mxu2  ;;  %v1771_v5 = vpop.f32.mrf.mxu0  ;;  %v2240_v24 = vsel %vm686_vm1, %v2237_v46, %v2239_v52 }
 0x17f   : > { %v1652_v0 = vpop.f32.mrf.mxu3 }
 0x180   : > { %v4537_v4 = vadd.f32 %v1765_v32, %v1652_v0  ;;  %v2125_v32 = vrot.slane %v2027_v13, 1  ;;  %v3285_v0 = vld [vmem:[#allocation2 + $0x40] sm:$0x3] }
 0x181   : > { %2640 = vmatmul.f32.gmra.mxu0 %v2238_v31  ;;  %v1434_v40 = vrot.slane %v3285_v0, 2  ;;  %v2127_v0 = vrot.slane %v2028_v16, 1  ;;  %v2031_v16 = vld [vmem:[#allocation2 + $0x70] sm:$0x3] }
 0x182   : > { %5011 = vst [vmem:[#allocation35_spill] sm:$0xff] %v4537_v4  ;;  %v4541_v42 = vpop.f32.mrf.mxu1  ;;  %v2126_v1 = vsel %vm573_vm0, %v2124_v17, %v2125_v32 }
 0x183   : > { %5012 = vst [vmem:[#allocation36_spill] sm:$0xff] %v4541_v42  ;;  %2411 = vmatmul.f32.gmra.mxu2 %v2024_v35  ;;  %v1435_v31 = vsel %vm686_vm1, %v1432_v51, %v1434_v40  ;;  %v2128_v51 = vsel %vm573_vm0, %v2125_v32, %v2127_v0  ;;  %v5020_v40 = vrot.slane %v3843_v50, 2 }
 0x184   : > { %2524 = vmatmul.f32.gmra.mxu3 %v2123_v49  ;;  %v2029_v49 = vld [vmem:[#allocation2 + $0x60] sm:$0xff] }
 0x185   : > { %1835 = vmatmul.f32.gmra.mxu1 %v1433_v30  ;;  %v2030_v30 = vld [vmem:[#allocation2 + $0x68] sm:$0xff]  ;;  %v2241_v42 = vrot.slane %v2029_v49, 2 }
 0x186   : > { %v4546_v62 = vpop.f32.mrf.mxu2  ;;  %v1774_v9 = vpop.f32.mrf.mxu0 }
 0x187   : > { %5014 = vst [vmem:[#allocation37_spill] sm:$0xff] %v4546_v62  ;;  %v1655_v4 = vpop.f32.mrf.mxu3  ;;  %v2242_v62 = vrot.slane %v2030_v30, 2 }
 0x188   : > { %v4548_v8 = vadd.f32 %v1768_v11, %v1655_v4  ;;  %v3286_v4 = vld [vmem:[#allocation2 + $0x50] sm:$0xff] }
 0x189   : > { %2643 = vmatmul.f32.gmra.mxu0 %v2240_v24 }
 0x18a   : > { %5015 = vst [vmem:[#allocation38_spill] sm:$0xff] %v4548_v8  ;;  %v4552_v35 = vpop.f32.mrf.mxu1  ;;  %v1437_v8 = vrot.slane %v3286_v4, 2 }
 0x18b   : > { %5016 = vst [vmem:[#allocation39_spill] sm:$0xff] %v4552_v35  ;;  %2414 = vmatmul.f32.gmra.mxu2 %v2026_v34  ;;  %v2243_v35 = vsel %vm686_vm1, %v2241_v42, %v2242_v62 }
 0x18c   : > { %2527 = vmatmul.f32.gmra.mxu3 %v2126_v1  ;;  %v1438_v24 = vsel %vm686_vm1, %v5020_v40, %v1437_v8  ;;  %v2244_v1 = vrot.slane %v2031_v16, 2 }
 0x18d   : > { %1838 = vmatmul.f32.gmra.mxu1 %v1435_v31  ;;  %v2129_v31 = vrot.slane %v2029_v49, 1 }
 0x18e   : > { %v4555_v11 = vpop.f32.mrf.mxu2  ;;  %v1777_v17 = vpop.f32.mrf.mxu0  ;;  %v2245_v50 = vsel %vm686_vm1, %v2242_v62, %v2244_v1  ;;  %v3289_v62 = vld [vmem:[#allocation2 + $0x68] sm:$0xff] }
 0x18f   : > { %5017 = vst [vmem:[#allocation40_spill] sm:$0xff] %v4555_v11  ;;  %v1658_v46 = vpop.f32.mrf.mxu3  ;;  %v1442_v1 = vrot.slane %v3289_v62, 2 }
 0x190   : > { %v4557_v52 = vadd.f32 %v1771_v5, %v1658_v46  ;;  %v2130_v5 = vrot.slane %v2030_v30, 1  ;;  %v3287_v46 = vld [vmem:[#allocation2 + $0x58] sm:$0x3] }
 0x191   : > { %2646 = vmatmul.f32.gmra.mxu0 %v2243_v35  ;;  %v1439_v42 = vrot.slane %v3287_v46, 2  ;;  %v2132_v46 = vrot.slane %v2031_v16, 1  ;;  %v2034_v16 = vld [vmem:[#allocation2 + $0x88] sm:$0x3] }
 0x192   : > { %5018 = vst [vmem:[#allocation41_spill] sm:$0xff] %v4557_v52  ;;  %v4561_v34 = vpop.f32.mrf.mxu1  ;;  %v2131_v40 = vsel %vm573_vm0, %v2129_v31, %v2130_v5 }
 0x193   : > { %5019 = vst [vmem:[#allocation42_spill] sm:$0xff] %v4561_v34  ;;  %2417 = vmatmul.f32.gmra.mxu2 %v2027_v13  ;;  %v1440_v35 = vsel %vm686_vm1, %v1437_v8, %v1439_v42 }
 0x194   : > { %2530 = vmatmul.f32.gmra.mxu3 %v2128_v51  ;;  %v2032_v51 = vld [vmem:[#allocation2 + $0x78] sm:$0xff] }
 0x195   : > { %1841 = vmatmul.f32.gmra.mxu1 %v1438_v24  ;;  %v2033_v24 = vld [vmem:[#allocation2 + $0x80] sm:$0xff]  ;;  %v2246_v34 = vrot.slane %v2032_v51, 2 }
 0x196   : > { %v4566_v4 = vpop.f32.mrf.mxu2  ;;  %v1780_v0 = vpop.f32.mrf.mxu0 }
 0x197   : > { %5021 = vst [vmem:[#allocation43_spill] sm:$0xff] %v4566_v4  ;;  %v1661_v52 = vpop.f32.mrf.mxu3  ;;  %v2247_v4 = vrot.slane %v2033_v24, 2 }
 0x198   : > { %v4568_v32 = vadd.f32 %v1774_v9, %v1661_v52  ;;  %v3288_v9 = vld [vmem:[#allocation2 + $0x60] sm:$0xff] }
 0x199   : > { %2649 = vmatmul.f32.gmra.mxu0 %v2245_v50  ;;  %v1441_v52 = vrot.slane %v3288_v9, 2  ;;  %v2248_v8 = vsel %vm686_vm1, %v2246_v34, %v2247_v4  ;;  %v2135_v9 = vrot.slane %v2033_v24, 1 }
 0x19a   : > { %5022 = vst [vmem:[#allocation44_spill] sm:$0xff] %v4568_v32  ;;  %v4572_v13 = vpop.f32.mrf.mxu1 }
 0x19b   : > { %5023 = vst [vmem:[#allocation45_spill] sm:$0xff] %v4572_v13  ;;  %2420 = vmatmul.f32.gmra.mxu2 %v2029_v49  ;;  %v2133_v49 = vsel %vm573_vm0, %v2130_v5, %v2132_v46  ;;  %v1443_v50 = vsel %vm686_vm1, %v1441_v52, %v1442_v1 }
 0x19c   : > { %2533 = vmatmul.f32.gmra.mxu3 %v2131_v40  ;;  %v2249_v40 = vrot.slane %v2034_v16, 2 }
 0x19d   : > { %1844 = vmatmul.f32.gmra.mxu1 %v1440_v35  ;;  %v2134_v35 = vrot.slane %v2032_v51, 1 }
 0x19e   : > { %v4575_v32 = vpop.f32.mrf.mxu2  ;;  %v1783_v13 = vpop.f32.mrf.mxu0  ;;  %v2250_v46 = vsel %vm686_vm1, %v2247_v4, %v2249_v40 }
 0x19f   : > { %v1664_v31 = vpop.f32.mrf.mxu3  ;;  %v2136_v52 = vsel %vm573_vm0, %v2134_v35, %v2135_v9 }
 0x1a0   : > { %v4577_v11 = vadd.f32 %v1777_v17, %v1664_v31  ;;  %v3290_v17 = vld [vmem:[#allocation2 + $0x70] sm:$0x3] }
 0x1a1   : > { %2652 = vmatmul.f32.gmra.mxu0 %v2248_v8  ;;  %v1444_v31 = vrot.slane %v3290_v17, 2  ;;  %v2137_v17 = vrot.slane %v2034_v16, 1  ;;  %v2037_v16 = vld [vmem:[#allocation2 + $0xa0] sm:$0x3] }
 0x1a2   : > { %5024 = vst [vmem:[#allocation46_spill] sm:$0xff] %v4577_v11  ;;  %v4581_v42 = vpop.f32.mrf.mxu1 }
 0x1a3   : > { %5025 = vst [vmem:[#allocation47_spill] sm:$0xff] %v4581_v42  ;;  %2423 = vmatmul.f32.gmra.mxu2 %v2030_v30  ;;  %v1445_v8 = vsel %vm686_vm1, %v1442_v1, %v1444_v31  ;;  %v5031_v31 = vrot.slane %v3693_v26, 2 }
 0x1a4   : > { %2536 = vmatmul.f32.gmra.mxu3 %v2133_v49  ;;  %v2035_v49 = vld [vmem:[#allocation2 + $0x90] sm:$0xff] }
 0x1a5   : > { %1847 = vmatmul.f32.gmra.mxu1 %v1443_v50  ;;  %v2036_v50 = vld [vmem:[#allocation2 + $0x98] sm:$0xff]  ;;  %v2251_v42 = vrot.slane %v2035_v49, 2 }
 0x1a6   : > { %v4584_v62 = vpop.f32.mrf.mxu2  ;;  %v1786_v5 = vpop.f32.mrf.mxu0 }
 0x1a7   : > { %5026 = vst [vmem:[#allocation48_spill] sm:$0xff] %v4584_v62  ;;  %v1667_v11 = vpop.f32.mrf.mxu3  ;;  %v2252_v62 = vrot.slane %v2036_v50, 2 }
 0x1a8   : > { %v4586_v34 = vadd.f32 %v1780_v0, %v1667_v11  ;;  %v3291_v0 = vld [vmem:[#allocation2 + $0x80] sm:$0xff] }
 0x1a9   : > { %2655 = vmatmul.f32.gmra.mxu0 %v2250_v46 }
 0x1aa   : > { %5027 = vst [vmem:[#allocation49_spill] sm:$0xff] %v4586_v34  ;;  %v4590_v30 = vpop.f32.mrf.mxu1  ;;  %v1447_v34 = vrot.slane %v3291_v0, 2 }
 0x1ab   : > { %5028 = vst [vmem:[#allocation50_spill] sm:$0xff] %v4590_v30  ;;  %2426 = vmatmul.f32.gmra.mxu2 %v2032_v51  ;;  %v2253_v30 = vsel %vm686_vm1, %v2251_v42, %v2252_v62  ;;  %v2138_v51 = vsel %vm573_vm0, %v2135_v9, %v2137_v17 }
 0x1ac   : > { %2539 = vmatmul.f32.gmra.mxu3 %v2136_v52  ;;  %v1448_v46 = vsel %vm686_vm1, %v5031_v31, %v1447_v34  ;;  %v2254_v52 = vrot.slane %v2037_v16, 2 }
 0x1ad   : > { %1850 = vmatmul.f32.gmra.mxu1 %v1445_v8  ;;  %v2139_v8 = vrot.slane %v2035_v49, 1 }
 0x1ae   : > { %v4593_v11 = vpop.f32.mrf.mxu2  ;;  %v1789_v35 = vpop.f32.mrf.mxu0  ;;  %v2255_v26 = vsel %vm686_vm1, %v2252_v62, %v2254_v52 }
 0x1af   : > { %v1670_v4 = vpop.f32.mrf.mxu3 }
 0x1b0   : > { %v4595_v40 = vadd.f32 %v1783_v13, %v1670_v4  ;;  %v2140_v13 = vrot.slane %v2036_v50, 1  ;;  %v3292_v4 = vld [vmem:[#allocation2 + $0x88] sm:$0x3] }
 0x1b1   : > { %2658 = vmatmul.f32.gmra.mxu0 %v2253_v30  ;;  %v1449_v42 = vrot.slane %v3292_v4, 2  ;;  %v2142_v4 = vrot.slane %v2037_v16, 1  ;;  %v2040_v16 = vld [vmem:[#allocation2 + $0xb8] sm:$0x3] }
 0x1b2   : > { %5029 = vst [vmem:[#allocation51_spill] sm:$0xff] %v4595_v40  ;;  %v4599_v1 = vpop.f32.mrf.mxu1  ;;  %v2141_v31 = vsel %vm573_vm0, %v2139_v8, %v2140_v13 }
 0x1b3   : > { %5030 = vst [vmem:[#allocation52_spill] sm:$0xff] %v4599_v1  ;;  %2429 = vmatmul.f32.gmra.mxu2 %v2033_v24  ;;  %v1450_v30 = vsel %vm686_vm1, %v1447_v34, %v1449_v42  ;;  %v2143_v34 = vsel %vm573_vm0, %v2140_v13, %v2142_v4  ;;  %v5037_v42 = vrot.slane %v3785_v29, 2 }
 0x1b4   : > { %2542 = vmatmul.f32.gmra.mxu3 %v2138_v51  ;;  %v2038_v51 = vld [vmem:[#allocation2 + $0xa8] sm:$0xff] }
 0x1b5   : > { %1853 = vmatmul.f32.gmra.mxu1 %v1448_v46  ;;  %v2039_v46 = vld [vmem:[#allocation2 + $0xb0] sm:$0xff]  ;;  %v2256_v1 = vrot.slane %v2038_v51, 2 }
 0x1b6   : > { %v4604_v0 = vpop.f32.mrf.mxu2  ;;  %v1792_v17 = vpop.f32.mrf.mxu0 }
 0x1b7   : > { %5032 = vst [vmem:[#allocation53_spill] sm:$0xff] %v4604_v0  ;;  %v1673_v40 = vpop.f32.mrf.mxu3  ;;  %v2257_v0 = vrot.slane %v2039_v46, 2 }
 0x1b8   : > { %v4606_v9 = vadd.f32 %v1786_v5, %v1673_v40  ;;  %v3293_v40 = vld [vmem:[#allocation2 + $0x98] sm:$0xff] }
 0x1b9   : > { %2661 = vmatmul.f32.gmra.mxu0 %v2255_v26 }
 0x1ba   : > { %5033 = vst [vmem:[#allocation54_spill] sm:$0xff] %v4606_v9  ;;  %v4610_v24 = vpop.f32.mrf.mxu1  ;;  %v1452_v9 = vrot.slane %v3293_v40, 2 }
 0x1bb   : > { %5034 = vst [vmem:[#allocation55_spill] sm:$0xff] %v4610_v24  ;;  %2432 = vmatmul.f32.gmra.mxu2 %v2035_v49  ;;  %v2258_v24 = vsel %vm686_vm1, %v2256_v1, %v2257_v0 }
 0x1bc   : > { %2545 = vmatmul.f32.gmra.mxu3 %v2141_v31  ;;  %v1453_v26 = vsel %vm686_vm1, %v5037_v42, %v1452_v9  ;;  %v2259_v31 = vrot.slane %v2040_v16, 2 }
 0x1bd   : > { %1856 = vmatmul.f32.gmra.mxu1 %v1450_v30  ;;  %v2144_v30 = vrot.slane %v2038_v51, 1 }
 0x1be   : > { %v4613_v5 = vpop.f32.mrf.mxu2  ;;  %v1795_v8 = vpop.f32.mrf.mxu0  ;;  %v2260_v29 = vsel %vm686_vm1, %v2257_v0, %v2259_v31 }
 0x1bf   : > { %v1676_v62 = vpop.f32.mrf.mxu3 }
 0x1c0   : > { %v4615_v52 = vadd.f32 %v1789_v35, %v1676_v62  ;;  %v2145_v35 = vrot.slane %v2039_v46, 1  ;;  %v3294_v62 = vld [vmem:[#allocation2 + $0xa0] sm:$0x3] }
 0x1c1   : > { %2664 = vmatmul.f32.gmra.mxu0 %v2258_v24  ;;  %v1454_v1 = vrot.slane %v3294_v62, 2  ;;  %v2147_v62 = vrot.slane %v2040_v16, 1  ;;  %v2043_v16 = vld [vmem:[#allocation2 + $0xd0] sm:$0x3] }
 0x1c2   : > { %5035 = vst [vmem:[#allocation56_spill] sm:$0xff] %v4615_v52  ;;  %v4619_v49 = vpop.f32.mrf.mxu1  ;;  %v2146_v42 = vsel %vm573_vm0, %v2144_v30, %v2145_v35 }
 0x1c3   : > { %5036 = vst [vmem:[#allocation57_spill] sm:$0xff] %v4619_v49  ;;  %2435 = vmatmul.f32.gmra.mxu2 %v2036_v50  ;;  %v1455_v24 = vsel %vm686_vm1, %v1452_v9, %v1454_v1  ;;  %v2148_v9 = vsel %vm573_vm0, %v2145_v35, %v2147_v62  ;;  %v5044_v1 = vrot.slane %v3845_v54, 2 }
 0x1c4   : > { %2548 = vmatmul.f32.gmra.mxu3 %v2143_v34  ;;  %v2041_v34 = vld [vmem:[#allocation2 + $0xc0] sm:$0xff] }
 0x1c5   : > { %1859 = vmatmul.f32.gmra.mxu1 %v1453_v26  ;;  %v2042_v26 = vld [vmem:[#allocation2 + $0xc8] sm:$0xff]  ;;  %v2261_v49 = vrot.slane %v2041_v34, 2 }
 0x1c6   : > { %v4624_v40 = vpop.f32.mrf.mxu2  ;;  %v1798_v4 = vpop.f32.mrf.mxu0 }
 0x1c7   : > { %5038 = vst [vmem:[#allocation58_spill] sm:$0xff] %v4624_v40  ;;  %v1679_v52 = vpop.f32.mrf.mxu3  ;;  %v2262_v40 = vrot.slane %v2042_v26, 2 }
 0x1c8   : > { %v4626_v13 = vadd.f32 %v1792_v17, %v1679_v52  ;;  %v3295_v52 = vld [vmem:[#allocation2 + $0xb0] sm:$0xff] }
 0x1c9   : > { %2667 = vmatmul.f32.gmra.mxu0 %v2260_v29 }
 0x1ca   : > { %5039 = vst [vmem:[#allocation59_spill] sm:$0xff] %v4626_v13  ;;  %v4630_v50 = vpop.f32.mrf.mxu1  ;;  %v1457_v13 = vrot.slane %v3295_v52, 2 }
 0x1cb   : > { %5040 = vst [vmem:[#allocation60_spill] sm:$0xff] %v4630_v50  ;;  %2438 = vmatmul.f32.gmra.mxu2 %v2038_v51  ;;  %v2263_v50 = vsel %vm686_vm1, %v2261_v49, %v2262_v40 }
 0x1cc   : > { %2551 = vmatmul.f32.gmra.mxu3 %v2146_v42  ;;  %v1458_v29 = vsel %vm686_vm1, %v5044_v1, %v1457_v13  ;;  %v2264_v42 = vrot.slane %v2043_v16, 2 }
 0x1cd   : > { %1862 = vmatmul.f32.gmra.mxu1 %v1455_v24  ;;  %v2149_v24 = vrot.slane %v2041_v34, 1 }
 0x1ce   : > { %v4633_v17 = vpop.f32.mrf.mxu2  ;;  %v1801_v30 = vpop.f32.mrf.mxu0  ;;  %v2265_v54 = vsel %vm686_vm1, %v2262_v40, %v2264_v42  ;;  %v3298_v40 = vld [vmem:[#allocation2 + $0xc8] sm:$0xff] }
 0x1cf   : > { %5041 = vst [vmem:[#allocation61_spill] sm:$0xff] %v4633_v17  ;;  %v1682_v0 = vpop.f32.mrf.mxu3  ;;  %v1462_v42 = vrot.slane %v3298_v40, 2 }
 0x1d0   : > { %v4635_v31 = vadd.f32 %v1795_v8, %v1682_v0  ;;  %v2150_v8 = vrot.slane %v2042_v26, 1  ;;  %v3296_v0 = vld [vmem:[#allocation2 + $0xb8] sm:$0x3] }
 0x1d1   : > { %2670 = vmatmul.f32.gmra.mxu0 %v2263_v50  ;;  %v1459_v49 = vrot.slane %v3296_v0, 2  ;;  %v2152_v0 = vrot.slane %v2043_v16, 1  ;;  %v2046_v16 = vld [vmem:[#allocation2 + $0xe8] sm:$0x3] }
 0x1d2   : > { %5042 = vst [vmem:[#allocation62_spill] sm:$0xff] %v4635_v31  ;;  %v4639_v51 = vpop.f32.mrf.mxu1  ;;  %v2151_v1 = vsel %vm573_vm0, %v2149_v24, %v2150_v8 }
 0x1d3   : > { %5043 = vst [vmem:[#allocation63_spill] sm:$0xff] %v4639_v51  ;;  %2441 = vmatmul.f32.gmra.mxu2 %v2039_v46  ;;  %v1460_v50 = vsel %vm686_vm1, %v1457_v13, %v1459_v49 }
 0x1d4   : > { %2554 = vmatmul.f32.gmra.mxu3 %v2148_v9  ;;  %v2044_v9 = vld [vmem:[#allocation2 + $0xd8] sm:$0xff] }
 0x1d5   : > { %1865 = vmatmul.f32.gmra.mxu1 %v1458_v29  ;;  %v2045_v29 = vld [vmem:[#allocation2 + $0xe0] sm:$0xff]  ;;  %v2266_v51 = vrot.slane %v2044_v9, 2 }
 0x1d6   : > { %v4644_v52 = vpop.f32.mrf.mxu2  ;;  %v1804_v62 = vpop.f32.mrf.mxu0 }
 0x1d7   : > { %5045 = vst [vmem:[#allocation64_spill] sm:$0xff] %v4644_v52  ;;  %v1685_v31 = vpop.f32.mrf.mxu3  ;;  %v2267_v52 = vrot.slane %v2045_v29, 2 }
 0x1d8   : > { %v4646_v35 = vadd.f32 %v1798_v4, %v1685_v31  ;;  %v3297_v4 = vld [vmem:[#allocation2 + $0xc0] sm:$0xff] }
 0x1d9   : > { %2673 = vmatmul.f32.gmra.mxu0 %v2265_v54  ;;  %v1461_v31 = vrot.slane %v3297_v4, 2  ;;  %v2268_v13 = vsel %vm686_vm1, %v2266_v51, %v2267_v52  ;;  %v2155_v4 = vrot.slane %v2045_v29, 1 }
 0x1da   : > { %5046 = vst [vmem:[#allocation65_spill] sm:$0xff] %v4646_v35  ;;  %v4650_v46 = vpop.f32.mrf.mxu1 }
 0x1db   : > { %5047 = vst [vmem:[#allocation66_spill] sm:$0xff] %v4650_v46  ;;  %2444 = vmatmul.f32.gmra.mxu2 %v2041_v34  ;;  %v2153_v34 = vsel %vm573_vm0, %v2150_v8, %v2152_v0  ;;  %v1463_v54 = vsel %vm686_vm1, %v1461_v31, %v1462_v42 }
 0x1dc   : > { %2557 = vmatmul.f32.gmra.mxu3 %v2151_v1  ;;  %v2269_v1 = vrot.slane %v2046_v16, 2 }
 0x1dd   : > { %1868 = vmatmul.f32.gmra.mxu1 %v1460_v50  ;;  %v2154_v50 = vrot.slane %v2044_v9, 1 }
 0x1de   : > { %v4653_v35 = vpop.f32.mrf.mxu2  ;;  %v1807_v46 = vpop.f32.mrf.mxu0  ;;  %v2270_v0 = vsel %vm686_vm1, %v2267_v52, %v2269_v1  ;;  %v3301_v1 = vld [vmem:[#allocation2 + $0xe0] sm:$0xff] }
 0x1df   : > { %5048 = vst [vmem:[#allocation67_spill] sm:$0xff] %v4653_v35  ;;  %v1688_v24 = vpop.f32.mrf.mxu3  ;;  %v2156_v31 = vsel %vm573_vm0, %v2154_v50, %v2155_v4  ;;  %v1467_v50 = vrot.slane %v3301_v1, 2 }
 0x1e0   : > { %v4655_v17 = vadd.f32 %v1801_v30, %v1688_v24  ;;  %v3299_v30 = vld [vmem:[#allocation2 + $0xd0] sm:$0x3] }
 0x1e1   : > { %2676 = vmatmul.f32.gmra.mxu0 %v2268_v13  ;;  %v1464_v24 = vrot.slane %v3299_v30, 2 }
 0x1e2   : > { %5049 = vst [vmem:[#allocation68_spill] sm:$0xff] %v4655_v17  ;;  %v4659_v49 = vpop.f32.mrf.mxu1 }
 0x1e3   : > { %5050 = vst [vmem:[#allocation69_spill] sm:$0xff] %v4659_v49  ;;  %2447 = vmatmul.f32.gmra.mxu2 %v2042_v26  ;;  %v1465_v13 = vsel %vm686_vm1, %v1462_v42, %v1464_v24 }
 0x1e4   : > { %2560 = vmatmul.f32.gmra.mxu3 %v2153_v34  ;;  %v2047_v34 = vld [vmem:[#allocation2 + $0xf0] sm:$0xff] }
 0x1e5   : > { %1871 = vmatmul.f32.gmra.mxu1 %v1463_v54  ;;  %v4671_v54 = vld [vmem:[#allocation2 + $0xf8] sm:$0xff]  ;;  %v2271_v49 = vrot.slane %v2047_v34, 2 }
 0x1e6   : > { %v4662_v40 = vpop.f32.mrf.mxu2  ;;  %v1810_v8 = vpop.f32.mrf.mxu0  ;;  %v2272_v30 = vrot.slane %v4671_v54, 2 }
 0x1e7   : > { %5051 = vst [vmem:[#allocation70_spill] sm:$0xff] %v4662_v40  ;;  %v1691_v17 = vpop.f32.mrf.mxu3 }
 0x1e8   : > { %v4664_v51 = vadd.f32 %v1804_v62, %v1691_v17  ;;  %v2157_v17 = vrot.slane %v2046_v16, 1  ;;  %v3300_v62 = vld [vmem:[#allocation2 + $0xd8] sm:$0xff]  ;;  %v2273_v42 = vsel %vm686_vm1, %v2271_v49, %v2272_v30  ;;  %v3302_v49 = vld [vmem:[#allocation2 + $0xe8] sm:$0x3] }
 0x1e9   : > { %2679 = vmatmul.f32.gmra.mxu0 %v2270_v0 }
 0x1ea   : > { %5052 = vst [vmem:[#allocation71_spill] sm:$0xff] %v4664_v51  ;;  %v4668_v26 = vpop.f32.mrf.mxu1  ;;  %v1466_v51 = vrot.slane %v3300_v62, 2  ;;  %v2158_v24 = vsel %vm573_vm0, %v2155_v4, %v2157_v17  ;;  %v1469_v4 = vrot.slane %v3302_v49, 2 }
 0x1eb   : > { %5053 = vst [vmem:[#allocation72_spill] sm:$0xff] %v4668_v26  ;;  %2450 = vmatmul.f32.gmra.mxu2 %v2044_v9 }
 0x1ec   : > { %2563 = vmatmul.f32.gmra.mxu3 %v2156_v31  ;;  %v1468_v31 = vsel %vm686_vm1, %v1466_v51, %v1467_v50 }
 0x1ed   : > { %1874 = vmatmul.f32.gmra.mxu1 %v1465_v13  ;;  %v2049_v13 = vld [vmem:[#allocation2 + $0x100] sm:$0x3] }
 0x1ee   : > { %v4674_v52 = vpop.f32.mrf.mxu2  ;;  %v2635_v9 = vpop.f32.mrf.mxu0  ;;  %v2274_v62 = vrot.slane %v2049_v13, 2 }
 0x1ef   : > { %5054 = vst [vmem:[#allocation73_spill] sm:$0xff] %v4674_v52  ;;  %v1694_v26 = vpop.f32.mrf.mxu3 }
 0x1f0   : > { %v4676_v40 = vadd.f32 %v1807_v46, %v1694_v26  ;;  %v2159_v46 = vrot.slane %v2047_v34, 1  ;;  %v2160_v26 = vrot.slane %v4671_v54, 1 }
 0x1f1   : > { %2682 = vmatmul.f32.gmra.mxu0 %v2273_v42 }
 0x1f2   : > { %5055 = vst [vmem:[#allocation74_spill] sm:$0xff] %v4676_v40  ;;  %v1830_v0 = vpop.f32.mrf.mxu1  ;;  %v2161_v51 = vsel %vm573_vm0, %v2159_v46, %v2160_v26 }
 0x1f3   : > { %2453 = vmatmul.f32.gmra.mxu2 %v2045_v29  ;;  %v1831_v16 = vadd.f32 %v1830_v0, %v4207_v48  ;;  %v2275_v48 = vsel %vm686_vm1, %v2272_v30, %v2274_v62  ;;  %v2050_v0 = vld [vmem:[#allocation2 + $0x108] sm:$0xff]  ;;  %v2162_v30 = vrot.slane %v2049_v13, 1  ;;  %v3303_v62 = vld [vmem:[#allocation2 + $0xf0] sm:$0xff]  ;;  %v2052_v13 = vld [vmem:[#allocation2 + $0x118] sm:$0x3] }
 0x1f4   : > { %2566 = vmatmul.f32.gmra.mxu3 %v2158_v24  ;;  %v1470_v24 = vsel %vm686_vm1, %v1467_v50, %v1469_v4  ;;  %v1471_v46 = vrot.slane %v3303_v62, 2  ;;  %v3304_v50 = vld [vmem:[#allocation2 + $0xf8] sm:$0xff]  ;;  %v3305_v62 = vld [vmem:[#allocation2 + $0x100] sm:$0x3] }
 0x1f5   : > { %v1958_v1 = vadd.f32 %v1831_v16, %v4205_v33  ;;  %1877 = vmatmul.f32.gmra.mxu1 %v1468_v31  ;;  %v4692_v31 = vld [vmem:[#allocation2 + $0x110] sm:$0xff]  ;;  %v2276_v16 = vrot.slane %v2050_v0, 2 }
 0x1f6   : > { %v4684_v40 = vpop.f32.mrf.mxu2  ;;  %v2638_v29 = vpop.f32.mrf.mxu0 }
 0x1f7   : > { %5056 = vst [vmem:[#allocation75_spill] sm:$0xff] %v4684_v40  ;;  %v1697_v17 = vpop.f32.mrf.mxu3 }
 0x1f8   : > { %v4686_v52 = vadd.f32 %v1810_v8, %v1697_v17  ;;  %v2277_v8 = vrot.slane %v4692_v31, 2 }
 0x1f9   : > { %2685 = vmatmul.f32.gmra.mxu0 %v2275_v48  ;;  %v2163_v48 = vsel %vm573_vm0, %v2160_v26, %v2162_v30  ;;  %v2279_v26 = vrot.slane %v2052_v13, 2 }
 0x1fa   : > { %5057 = vst [vmem:[#allocation76_spill] sm:$0xff] %v4686_v52  ;;  %v1833_v42 = vpop.f32.mrf.mxu1  ;;  %v2278_v52 = vsel %vm686_vm1, %v2276_v16, %v2277_v8  ;;  %v2165_v16 = vrot.slane %v4692_v31, 1 }
 0x1fb   : > { %2456 = vmatmul.f32.gmra.mxu2 %v2047_v34  ;;  %v1834_v33 = vadd.f32 %v1833_v42, %v4225_v59  ;;  %v1472_v34 = vrot.slane %v3304_v50, 2 }
 0x1fc   : > { %2569 = vmatmul.f32.gmra.mxu3 %v2161_v51 }
 0x1fd   : > { %v1959_v49 = vadd.f32 %v1834_v33, %v4223_v10  ;;  %1880 = vmatmul.f32.gmra.mxu1 %v1470_v24  ;;  %v1473_v35 = vsel %vm686_vm1, %v1471_v46, %v1472_v34  ;;  %v2164_v33 = vrot.slane %v2050_v0, 1  ;;  %v1474_v46 = vrot.slane %v3305_v62, 2 }
 0x1fe   : > { %v2409_v17 = vpop.f32.mrf.mxu2  ;;  %v2641_v42 = vpop.f32.mrf.mxu0 }
 0x1ff   : > { %v2522_v4 = vpop.f32.mrf.mxu3 }
 0x200   : > { %v2523_v59 = vadd.f32 %v2522_v4, %v2409_v17  ;;  %v2053_v4 = vld [vmem:[#allocation2 + $0x120] sm:$0xff] }
 0x201   : > { %2688 = vmatmul.f32.gmra.mxu0 %v2278_v52 }
 0x202   : > { %v2636_v51 = vadd.f32 %v2635_v9, %v2523_v59  ;;  %v1836_v40 = vpop.f32.mrf.mxu1  ;;  %v4715_v59 = vld [vmem:[#allocation2 + $0x128] sm:$0xff] }
 0x203   : > { %2459 = vmatmul.f32.gmra.mxu2 %v4671_v54  ;;  %v1837_v10 = vadd.f32 %v1836_v40, %v4247_v36  ;;  %v2280_v36 = vsel %vm686_vm1, %v2277_v8, %v2279_v26  ;;  %v2166_v40 = vsel %vm573_vm0, %v2164_v33, %v2165_v16 }
 0x204   : > { %v2763_v24 = vadd.f32 %v2636_v51, %v1958_v1  ;;  %2572 = vmatmul.f32.gmra.mxu3 %v2163_v48  ;;  %v2281_v51 = vrot.slane %v2053_v4, 2 }
 0x205   : > { %v1960_v9 = vadd.f32 %v1837_v10, %v4245_v55  ;;  %1883 = vmatmul.f32.gmra.mxu1 %v1473_v35  ;;  %v1475_v55 = vsel %vm686_vm1, %v1472_v34, %v1474_v46  ;;  %v2282_v10 = vrot.slane %v4715_v59, 2 }
 0x206   : > { %2859 = vst [vmem:[%s4704_s20] sm:$0xff] %v2763_v24  ;;  %v2412_v30 = vpop.f32.mrf.mxu2  ;;  %v2644_v54 = vpop.f32.mrf.mxu0  ;;  %v2929_v26 = vmul.f32 %v2763_v24, %v2763_v24 }
 0x207   : > { %v2525_v17 = vpop.f32.mrf.mxu3 }
 0x208   : > { %v2526_v50 = vadd.f32 %v2525_v17, %v2412_v30  ;;  %v3306_v30 = vld [vmem:[#allocation2 + $0x110] sm:$0xff] }
 0x209   : > { %2691 = vmatmul.f32.gmra.mxu0 %v2280_v36 }
 0x20a   : > { %v2639_v52 = vadd.f32 %v2638_v29, %v2526_v50  ;;  %v1839_v1 = vpop.f32.mrf.mxu1  ;;  %v2167_v29 = vrot.slane %v2052_v13, 1  ;;  %v5058_v13 = vrot.slane %v3853_v56, 2 }
 0x20b   : > { %2462 = vmatmul.f32.gmra.mxu2 %v2050_v0  ;;  %v1840_v35 = vadd.f32 %v1839_v1, %v4276_v27  ;;  %v1477_v27 = vrot.slane %v3306_v30, 2  ;;  %v2055_v1 = vld [vmem:[#allocation2 + $0x130] sm:$0x3] }
 0x20c   : > { %v2764_v48 = vadd.f32 %v2639_v52, %v1959_v49  ;;  %2575 = vmatmul.f32.gmra.mxu3 %v2166_v40  ;;  %v2283_v49 = vsel %vm686_vm1, %v2281_v51, %v2282_v10  ;;  %v2168_v36 = vsel %vm573_vm0, %v2165_v16, %v2167_v29  ;;  %v2169_v51 = vrot.slane %v2053_v4, 1 }
 0x20d   : > { %v1961_v8 = vadd.f32 %v1840_v35, %v4273_v37  ;;  %1886 = vmatmul.f32.gmra.mxu1 %v1475_v55  ;;  %v1478_v52 = vsel %vm686_vm1, %v5058_v13, %v1477_v27  ;;  %v2284_v35 = vrot.slane %v2055_v1, 2 }
 0x20e   : > { %2860 = vst [vmem:[%s4704_s20 + $0x8] sm:$0xff] %v2764_v48  ;;  %v2891_v33 = vadd.f32 %v2764_v48, %v2763_v24  ;;  %v2930_v34 = vmul.f32 %v2764_v48, %v2764_v48  ;;  %v2415_v0 = vpop.f32.mrf.mxu2  ;;  %v2647_v50 = vpop.f32.mrf.mxu0 }
 0x20f   : > { %v2528_v62 = vpop.f32.mrf.mxu3 }
 0x210   : > { %v2961_v46 = vadd.f32 %v2930_v34, %v2929_v26  ;;  %v2529_v17 = vadd.f32 %v2528_v62, %v2415_v0  ;;  %v3307_v26 = vld [vmem:[#allocation2 + $0x118] sm:$0x3] }
 0x211   : > { %2694 = vmatmul.f32.gmra.mxu0 %v2283_v49  ;;  %v1479_v34 = vrot.slane %v3307_v26, 2 }
 0x212   : > { %v2642_v40 = vadd.f32 %v2641_v42, %v2529_v17  ;;  %v1842_v37 = vpop.f32.mrf.mxu1  ;;  %v2170_v42 = vrot.slane %v4715_v59, 1 }
 0x213   : > { %2465 = vmatmul.f32.gmra.mxu2 %v4692_v31  ;;  %v1843_v24 = vadd.f32 %v1842_v37, %v4305_v18  ;;  %v1480_v49 = vsel %vm686_vm1, %v1477_v27, %v1479_v34 }
 0x214   : > { %v2765_v55 = vadd.f32 %v2642_v40, %v1960_v9  ;;  %2578 = vmatmul.f32.gmra.mxu3 %v2168_v36  ;;  %v2285_v9 = vsel %vm686_vm1, %v2282_v10, %v2284_v35  ;;  %v2171_v62 = vsel %vm573_vm0, %v2169_v51, %v2170_v42  ;;  %v2056_v36 = vld [vmem:[#allocation2 + $0x138] sm:$0xff]  ;;  %v4734_v40 = vld [vmem:[#allocation2 + $0x140] sm:$0xff] }
 0x215   : > { %v1962_v48 = vadd.f32 %v1843_v24, %v4303_v23  ;;  %1889 = vmatmul.f32.gmra.mxu1 %v1478_v52  ;;  %v2287_v13 = vrot.slane %v4734_v40, 2  ;;  %v3308_v52 = vld [vmem:[#allocation2 + $0x120] sm:$0xff] }
 0x216   : > { %2861 = vst [vmem:[%s4704_s20 + $0x10] sm:$0xff] %v2765_v55  ;;  %v2892_v16 = vadd.f32 %v2891_v33, %v2765_v55  ;;  %v2931_v56 = vmul.f32 %v2765_v55, %v2765_v55  ;;  %v2418_v29 = vpop.f32.mrf.mxu2  ;;  %v2650_v30 = vpop.f32.mrf.mxu0  ;;  %v1481_v24 = vrot.slane %v3308_v52, 2 }
 0x217   : > { %v2531_v31 = vpop.f32.mrf.mxu3 }
 0x218   : > { %v2962_v0 = vadd.f32 %v2961_v46, %v2931_v56  ;;  %v2532_v18 = vadd.f32 %v2531_v31, %v2418_v29  ;;  %v2286_v46 = vrot.slane %v2056_v36, 2 }
 0x219   : > { %2697 = vmatmul.f32.gmra.mxu0 %v2285_v9 }
 0x21a   : > { %v2645_v17 = vadd.f32 %v2644_v54, %v2532_v18  ;;  %v1845_v23 = vpop.f32.mrf.mxu1  ;;  %v2172_v54 = vrot.slane %v2055_v1, 1  ;;  %v2288_v26 = vsel %vm686_vm1, %v2286_v46, %v2287_v13  ;;  %v2058_v18 = vld [vmem:[#allocation2 + $0x148] sm:$0x3] }
 0x21b   : > { %2468 = vmatmul.f32.gmra.mxu2 %v2053_v4  ;;  %v1846_v33 = vadd.f32 %v1845_v23, %v4329_v7  ;;  %v3309_v7 = vld [vmem:[#allocation2 + $0x128] sm:$0xff]  ;;  %v2175_v23 = vrot.slane %v4734_v40, 1 }
 0x21c   : > { %v2766_v37 = vadd.f32 %v2645_v17, %v1961_v8  ;;  %2581 = vmatmul.f32.gmra.mxu3 %v2171_v62  ;;  %v1482_v35 = vrot.slane %v3309_v7, 2  ;;  %v2173_v34 = vsel %vm573_vm0, %v2170_v42, %v2172_v54  ;;  %v2174_v17 = vrot.slane %v2056_v36, 1  ;;  %v4751_v7 = vld [vmem:[#allocation2 + $0x158] sm:$0xff] }
 0x21d   : > { %v1963_v10 = vadd.f32 %v1846_v33, %v4324_v14  ;;  %1892 = vmatmul.f32.gmra.mxu1 %v1480_v49  ;;  %v3310_v33 = vld [vmem:[#allocation2 + $0x130] sm:$0x3] }
 0x21e   : > { %2862 = vst [vmem:[%s4704_s20 + $0x18] sm:$0xff] %v2766_v37  ;;  %v2893_v27 = vadd.f32 %v2892_v16, %v2766_v37  ;;  %v2932_v4 = vmul.f32 %v2766_v37, %v2766_v37  ;;  %v2421_v55 = vpop.f32.mrf.mxu2  ;;  %v2653_v8 = vpop.f32.mrf.mxu0  ;;  %v1483_v1 = vsel %vm686_vm1, %v1481_v24, %v1482_v35  ;;  %v1484_v37 = vrot.slane %v3310_v33, 2 }
 0x21f   : > { %v2534_v51 = vpop.f32.mrf.mxu3  ;;  %v2176_v52 = vsel %vm573_vm0, %v2174_v17, %v2175_v23 }
 0x220   : > { %v2963_v56 = vadd.f32 %v2962_v0, %v2932_v4  ;;  %v2535_v29 = vadd.f32 %v2534_v51, %v2421_v55  ;;  %v2289_v0 = vrot.slane %v2058_v18, 2  ;;  %v1485_v4 = vsel %vm686_vm1, %v1482_v35, %v1484_v37  ;;  %v2059_v55 = vld [vmem:[#allocation2 + $0x150] sm:$0xff]  ;;  %v2061_v37 = vld [vmem:[#allocation2 + $0x160] sm:$0x3] }
 0x221   : > { %2700 = vmatmul.f32.gmra.mxu0 %v2288_v26  ;;  %v3311_v26 = vld [vmem:[#allocation2 + $0x138] sm:$0xff] }
 0x222   : > { %v2648_v14 = vadd.f32 %v2647_v50, %v2535_v29  ;;  %v1848_v31 = vpop.f32.mrf.mxu1  ;;  %v2292_v29 = vrot.slane %v4751_v7, 2 }
 0x223   : > { %2471 = vmatmul.f32.gmra.mxu2 %v4715_v59  ;;  %v1849_v16 = vadd.f32 %v1848_v31, %v4356_v43 }
 0x224   : > { %v2767_v9 = vadd.f32 %v2648_v14, %v1962_v48  ;;  %2584 = vmatmul.f32.gmra.mxu3 %v2173_v34  ;;  %v2290_v48 = vsel %vm686_vm1, %v2287_v13, %v2289_v0  ;;  %v1486_v34 = vrot.slane %v3311_v26, 2 }
 0x225   : > { %v1964_v62 = vadd.f32 %v1849_v16, %v4354_v63  ;;  %1895 = vmatmul.f32.gmra.mxu1 %v1483_v1 }
 0x226   : > { %2863 = vst [vmem:[%s4704_s20 + $0x20] sm:$0xff] %v2767_v9  ;;  %v2894_v50 = vadd.f32 %v2893_v27, %v2767_v9  ;;  %v2933_v42 = vmul.f32 %v2767_v9, %v2767_v9  ;;  %v2424_v49 = vpop.f32.mrf.mxu2  ;;  %v2656_v54 = vpop.f32.mrf.mxu0 }
 0x227   : > { %v2537_v59 = vpop.f32.mrf.mxu3 }
 0x228   : > { %v2964_v46 = vadd.f32 %v2963_v56, %v2933_v42  ;;  %v2538_v43 = vadd.f32 %v2537_v59, %v2424_v49  ;;  %v2291_v56 = vrot.slane %v2059_v55, 2 }
 0x229   : > { %2703 = vmatmul.f32.gmra.mxu0 %v2290_v48 }
 0x22a   : > { %v2651_v24 = vadd.f32 %v2650_v30, %v2538_v43  ;;  %v1851_v63 = vpop.f32.mrf.mxu1  ;;  %v2177_v30 = vrot.slane %v2058_v18, 1  ;;  %v2293_v0 = vsel %vm686_vm1, %v2291_v56, %v2292_v29 }
 0x22b   : > { %2474 = vmatmul.f32.gmra.mxu2 %v2056_v36  ;;  %v1852_v27 = vadd.f32 %v1851_v63, %v4377_v61  ;;  %v3312_v61 = vld [vmem:[#allocation2 + $0x140] sm:$0xff] }
 0x22c   : > { %v2768_v51 = vadd.f32 %v2651_v24, %v1963_v10  ;;  %2587 = vmatmul.f32.gmra.mxu3 %v2176_v52  ;;  %v1487_v31 = vrot.slane %v3312_v61, 2  ;;  %v2178_v18 = vsel %vm573_vm0, %v2175_v23, %v2177_v30  ;;  %v3313_v52 = vld [vmem:[#allocation2 + $0x148] sm:$0x3]  ;;  %v3314_v61 = vld [vmem:[#allocation2 + $0x150] sm:$0xff] }
 0x22d   : > { %v1965_v13 = vadd.f32 %v1852_v27, %v4375_v38  ;;  %1898 = vmatmul.f32.gmra.mxu1 %v1485_v4  ;;  %v1002_v38 = vadd.f32 %v4363_v3, %v3979_v45  ;;  %v2179_v45 = vrot.slane %v2059_v55, 1  ;;  %v2180_v3 = vrot.slane %v4751_v7, 1 }
 0x22e   : > { %2864 = vst [vmem:[%s4704_s20 + $0x28] sm:$0xff] %v2768_v51  ;;  %v2895_v35 = vadd.f32 %v2894_v50, %v2768_v51  ;;  %v2934_v36 = vmul.f32 %v2768_v51, %v2768_v51  ;;  %v2427_v14 = vpop.f32.mrf.mxu2  ;;  %v4756_v10 = vpop.f32.mrf.mxu0  ;;  %v1488_v50 = vsel %vm686_vm1, %v1486_v34, %v1487_v31  ;;  %v1005_v4 = vadd.f32 %v4392_v57, %v3996_v28 }
 0x22f   : > { %v2540_v1 = vpop.f32.mrf.mxu3  ;;  %v1115_v49 = vadd.f32 %v4406_v47, %v1002_v38  ;;  %v1489_v47 = vrot.slane %v3313_v52, 2  ;;  %v2181_v27 = vsel %vm573_vm0, %v2179_v45, %v2180_v3  ;;  %v3316_v52 = vld [vmem:[#allocation2 + $0x160] sm:$0x3] }
 0x230   : > { %v2965_v16 = vadd.f32 %v2964_v46, %v2934_v36  ;;  %v2541_v9 = vadd.f32 %v2540_v1, %v2427_v14  ;;  %v2294_v46 = vrot.slane %v2061_v37, 2  ;;  %v1118_v26 = vadd.f32 %v4435_v12, %v1005_v4  ;;  %v4777_v36 = vld [vmem:[#allocation2 + $0x170] sm:$0xff] }
 0x231   : > { %2706 = vmatmul.f32.gmra.mxu0 %v2293_v0  ;;  %v1490_v30 = vsel %vm686_vm1, %v1487_v31, %v1489_v47  ;;  %v2297_v28 = vrot.slane %v4777_v36, 2  ;;  %v1491_v31 = vrot.slane %v3314_v61, 2  ;;  %v3318_v61 = vld [vmem:[#allocation2 + $0x170] sm:$0xff] }
 0x232   : > { %v2654_v17 = vadd.f32 %v2653_v8, %v2541_v9  ;;  %v1854_v42 = vpop.f32.mrf.mxu1 }
 0x233   : > { %2477 = vmatmul.f32.gmra.mxu2 %v4734_v40  ;;  %v1855_v33 = vadd.f32 %v1854_v42, %v4411_v25 }
 0x234   : > { %v2769_v59 = vadd.f32 %v2654_v17, %v1964_v62  ;;  %2590 = vmatmul.f32.gmra.mxu3 %v2178_v18  ;;  %v2295_v62 = vsel %vm686_vm1, %v2292_v29, %v2294_v46  ;;  %v1008_v17 = vadd.f32 %v4424_v44, %v4023_v6  ;;  %v2064_v46 = vld [vmem:[#allocation2 + $0x178] sm:$0x3] }
 0x235   : > { %v1966_v43 = vadd.f32 %v1855_v33, %v1115_v49  ;;  %1901 = vmatmul.f32.gmra.mxu1 %v1488_v50 }
 0x236   : > { %2865 = vst [vmem:[%s4704_s20 + $0x30] sm:$0xff] %v2769_v59  ;;  %v2896_v8 = vadd.f32 %v2895_v35, %v2769_v59  ;;  %v2935_v23 = vmul.f32 %v2769_v59, %v2769_v59  ;;  %v2430_v48 = vpop.f32.mrf.mxu2  ;;  %v4768_v25 = vpop.f32.mrf.mxu0  ;;  %v2062_v35 = vld [vmem:[#allocation2 + $0x168] sm:$0xff] }
 0x237   : > { %v2543_v24 = vpop.f32.mrf.mxu3  ;;  %v2296_v14 = vrot.slane %v2062_v35, 2  ;;  %v2184_v44 = vrot.slane %v2062_v35, 1 }
 0x238   : > { %v2966_v40 = vadd.f32 %v2965_v16, %v2935_v23  ;;  %v2544_v63 = vadd.f32 %v2543_v24, %v2430_v48  ;;  %v3315_v16 = vld [vmem:[#allocation2 + $0x158] sm:$0xff] }
 0x239   : > { %2709 = vmatmul.f32.gmra.mxu0 %v2295_v62 }
 0x23a   : > { %v2657_v51 = vadd.f32 %v2656_v54, %v2544_v63  ;;  %v1857_v56 = vpop.f32.mrf.mxu1  ;;  %v2182_v54 = vrot.slane %v2061_v37, 1  ;;  %v1121_v37 = vadd.f32 %v4462_v19, %v1008_v17  ;;  %v1494_v19 = vrot.slane %v3316_v52, 2  ;;  %v5062_v52 = vld [vmem:[#allocation25_spill] sm:$0xff] }
 0x23b   : > { %2480 = vmatmul.f32.gmra.mxu2 %v2059_v55  ;;  %v1858_v34 = vadd.f32 %v1857_v56, %v4437_v60  ;;  %v1492_v60 = vrot.slane %v3315_v16, 2  ;;  %v5059_v16 = vld [vmem:[#allocation10_spill] sm:$0xff] }
 0x23c   : > { %v2770_v29 = vadd.f32 %v2657_v51, %v1965_v13  ;;  %2593 = vmatmul.f32.gmra.mxu3 %v2181_v27  ;;  %v2298_v13 = vsel %vm686_vm1, %v2296_v14, %v2297_v28  ;;  %v2183_v42 = vsel %vm573_vm0, %v2180_v3, %v2182_v54  ;;  %v2185_v3 = vrot.slane %v4777_v36, 1  ;;  %v3317_v14 = vld [vmem:[#allocation2 + $0x168] sm:$0xff] }
 0x23d   : > { %v1967_v57 = vadd.f32 %v1858_v34, %v1118_v26  ;;  %1904 = vmatmul.f32.gmra.mxu1 %v1490_v30  ;;  %v1493_v33 = vsel %vm686_vm1, %v1491_v31, %v1492_v60  ;;  %v1495_v27 = vsel %vm686_vm1, %v1492_v60, %v1494_v19  ;;  %v2065_v30 = vld [vmem:[#allocation2 + $0x180] sm:$0xff]  ;;  %v4804_v26 = vld [vmem:[#allocation2 + $0x188] sm:$0xff]  ;;  %v5060_v60 = vld [vmem:[#allocation24_spill] sm:$0xff] }
 0x23e   : > { %2866 = vst [vmem:[%s4704_s20 + $0x38] sm:$0xff] %v2770_v29  ;;  %v2897_v1 = vadd.f32 %v2896_v8, %v2770_v29  ;;  %v2936_v12 = vmul.f32 %v2770_v29, %v2770_v29  ;;  %v2433_v55 = vpop.f32.mrf.mxu2  ;;  %v4781_v18 = vpop.f32.mrf.mxu0  ;;  %v2299_v8 = vrot.slane %v2064_v46, 2  ;;  %v2186_v63 = vsel %vm573_vm0, %v2184_v44, %v2185_v3 }
 0x23f   : > { %v2546_v9 = vpop.f32.mrf.mxu3 }
 0x240   : > { %v2967_v0 = vadd.f32 %v2966_v40, %v2936_v12  ;;  %v2547_v38 = vadd.f32 %v2546_v9, %v2433_v55  ;;  %v1011_v40 = vadd.f32 %v4450_v53, %v4042_v41  ;;  %v2301_v41 = vrot.slane %v2065_v30, 2 }
 0x241   : > { %2712 = vmatmul.f32.gmra.mxu0 %v2298_v13  ;;  %v2302_v53 = vrot.slane %v4804_v26, 2  ;;  %v1014_v9 = vadd.f32 %v5060_v60, %v5059_v16  ;;  %v5066_v16 = vld [vmem:[#allocation29_spill] sm:$0xff] }
 0x242   : > { %v2660_v50 = vadd.f32 %v4756_v10, %v2547_v38  ;;  %v1860_v49 = vpop.f32.mrf.mxu1  ;;  %v1124_v51 = vadd.f32 %v4480_v15, %v1011_v40 }
 0x243   : > { %2483 = vmatmul.f32.gmra.mxu2 %v4751_v7  ;;  %v1861_v59 = vadd.f32 %v1860_v49, %v4464_v2  ;;  %v2067_v49 = vld [vmem:[#allocation2 + $0x190] sm:$0x3] }
 0x244   : > { %v2771_v45 = vadd.f32 %v2660_v50, %v1966_v43  ;;  %2596 = vmatmul.f32.gmra.mxu3 %v2183_v42  ;;  %v2300_v43 = vsel %vm686_vm1, %v2297_v28, %v2299_v8  ;;  %v1496_v28 = vrot.slane %v3317_v14, 2  ;;  %v1127_v42 = vadd.f32 %v4491_v21, %v1014_v9  ;;  %v5067_v9 = vld [vmem:[#allocation30_spill] sm:$0xff] }
 0x245   : > { %v1968_v6 = vadd.f32 %v1861_v59, %v1121_v37  ;;  %1907 = vmatmul.f32.gmra.mxu1 %v1493_v33  ;;  %v2304_v37 = vrot.slane %v2067_v49, 2 }
 0x246   : > { %2867 = vst [vmem:[%s4704_s20 + $0x40] sm:$0xff] %v2771_v45  ;;  %v2898_v10 = vadd.f32 %v2897_v1, %v2771_v45  ;;  %v2937_v23 = vmul.f32 %v2771_v45, %v2771_v45  ;;  %v2436_v48 = vpop.f32.mrf.mxu2  ;;  %v4794_v2 = vpop.f32.mrf.mxu0  ;;  %v2190_v45 = vrot.slane %v4804_v26, 1 }
 0x247   : > { %v2549_v47 = vpop.f32.mrf.mxu3 }
 0x248   : > { %v2968_v7 = vadd.f32 %v2967_v0, %v2937_v23  ;;  %v2550_v24 = vadd.f32 %v2549_v47, %v2436_v48  ;;  %v2305_v48 = vsel %vm686_vm1, %v2302_v53, %v2304_v37  ;;  %v3323_v37 = vld [vmem:[#allocation2 + $0x190] sm:$0x3] }
 0x249   : > { %2715 = vmatmul.f32.gmra.mxu0 %v2300_v43 }
 0x24a   : > { %v2663_v62 = vadd.f32 %v4768_v25, %v2550_v24  ;;  %v1863_v4 = vpop.f32.mrf.mxu1  ;;  %v2187_v25 = vrot.slane %v2064_v46, 1  ;;  %v2189_v46 = vrot.slane %v2065_v30, 1 }
 0x24b   : > { %2486 = vmatmul.f32.gmra.mxu2 %v2062_v35  ;;  %v1864_v56 = vadd.f32 %v1863_v4, %v4482_v39  ;;  %v1497_v39 = vrot.slane %v3318_v61, 2  ;;  %v5065_v61 = vld [vmem:[#allocation26_spill] sm:$0xff] }
 0x24c   : > { %v2772_v34 = vadd.f32 %v2663_v62, %v1967_v57  ;;  %2599 = vmatmul.f32.gmra.mxu3 %v2186_v63  ;;  %v2303_v57 = vsel %vm686_vm1, %v2301_v41, %v2302_v53  ;;  %v2188_v0 = vsel %vm573_vm0, %v2185_v3, %v2187_v25  ;;  %v3319_v3 = vld [vmem:[#allocation2 + $0x178] sm:$0x3]  ;;  %v2191_v47 = vsel %vm573_vm0, %v2189_v46, %v2190_v45  ;;  %v5063_v63 = vld [vmem:[#allocation27_spill] sm:$0xff] }
 0x24d   : > { %v1969_v29 = vadd.f32 %v1864_v56, %v1124_v51  ;;  %1910 = vmatmul.f32.gmra.mxu1 %v1495_v27  ;;  %v1498_v17 = vsel %vm686_vm1, %v1496_v28, %v1497_v39  ;;  %v1499_v21 = vrot.slane %v3319_v3, 2  ;;  %v4827_v27 = vld [vmem:[#allocation2] sm:$0xff]  ;;  %v1504_v46 = vrot.slane %v3323_v37, 2  ;;  %v5069_v3 = vld [vmem:[#allocation28_spill] sm:$0xff] }
 0x24e   : > { %2868 = vst [vmem:[%s4704_s20 + $0x48] sm:$0xff] %v2772_v34  ;;  %v2899_v54 = vadd.f32 %v2898_v10, %v2772_v34  ;;  %v2938_v15 = vmul.f32 %v2772_v34, %v2772_v34  ;;  %v2439_v35 = vpop.f32.mrf.mxu2  ;;  %v2671_v55 = vpop.f32.mrf.mxu0  ;;  %v2306_v51 = vrot.slane %v4827_v27, 2  ;;  %v2192_v34 = vrot.slane %v2067_v49, 1 }
 0x24f   : > { %v2552_v31 = vpop.f32.mrf.mxu3  ;;  %v1500_v43 = vsel %vm686_vm1, %v1497_v39, %v1499_v21 }
 0x250   : > { %v2969_v1 = vadd.f32 %v2968_v7, %v2938_v15  ;;  %v2553_v12 = vadd.f32 %v2552_v31, %v2439_v35  ;;  %v5064_v35 = vld [vmem:[#allocation16_spill] sm:$0xff]  ;;  %v2193_v31 = vsel %vm573_vm0, %v2190_v45, %v2192_v34 }
 0x251   : > { %2718 = vmatmul.f32.gmra.mxu0 %v2303_v57  ;;  %v1020_v39 = vadd.f32 %v5065_v61, %v5064_v35  ;;  %v5072_v34 = vld [vmem:[#allocation4_spill] sm:$0xff] }
 0x252   : > { %v2666_v38 = vadd.f32 %v4781_v18, %v2553_v12  ;;  %v1866_v13 = vpop.f32.mrf.mxu1 }
 0x253   : > { %2489 = vmatmul.f32.gmra.mxu2 %v4777_v36  ;;  %v1867_v50 = vadd.f32 %v1866_v13, %v4493_v58  ;;  %v1133_v60 = vadd.f32 %v5066_v16, %v1020_v39 }
 0x254   : > { %v2773_v33 = vadd.f32 %v2666_v38, %v1968_v6  ;;  %2602 = vmatmul.f32.gmra.mxu3 %v2188_v0  ;;  %v5061_v6 = vld [vmem:[#allocation13_spill] sm:$0xff]  ;;  %v2070_v38 = vld [vmem:[#allocation2 + $0x1a8] sm:$0x3] }
 0x255   : > { %v1970_v59 = vadd.f32 %v1867_v50, %v1127_v42  ;;  %1913 = vmatmul.f32.gmra.mxu1 %v1498_v17  ;;  %v1017_v19 = vadd.f32 %v5062_v52, %v5061_v6  ;;  %v2309_v17 = vrot.slane %v2070_v38, 2  ;;  %v2194_v50 = vrot.slane %v4827_v27, 1  ;;  %v5071_v52 = vld [vmem:[#allocation33_spill] sm:$0xff] }
 0x256   : > { %2869 = vst [vmem:[%s4704_s20 + $0x50] sm:$0xff] %v2773_v33  ;;  %v2900_v18 = vadd.f32 %v2899_v54, %v2773_v33  ;;  %v2939_v8 = vmul.f32 %v2773_v33, %v2773_v33  ;;  %v2442_v44 = vpop.f32.mrf.mxu2  ;;  %v2674_v58 = vpop.f32.mrf.mxu0 }
 0x257   : > { %v2555_v10 = vpop.f32.mrf.mxu3  ;;  %v1130_v40 = vadd.f32 %v4502_v20, %v1017_v19  ;;  %v3322_v20 = vld [vmem:[#allocation2 + $0x188] sm:$0xff] }
 0x258   : > { %v2970_v36 = vadd.f32 %v2969_v1, %v2939_v8  ;;  %v2556_v23 = vadd.f32 %v2555_v10, %v2442_v44  ;;  %v2310_v44 = vsel %vm686_vm1, %v2306_v51, %v2309_v17 }
 0x259   : > { %2721 = vmatmul.f32.gmra.mxu0 %v2305_v48  ;;  %v5070_v48 = vld [vmem:[#allocation32_spill] sm:$0xff] }
 0x25a   : > { %v2669_v7 = vadd.f32 %v4794_v2, %v2556_v23  ;;  %v1869_v24 = vpop.f32.mrf.mxu1  ;;  %v3321_v2 = vld [vmem:[#allocation2 + $0x180] sm:$0xff] }
 0x25b   : > { %2492 = vmatmul.f32.gmra.mxu2 %v2065_v30  ;;  %v1870_v62 = vadd.f32 %v1869_v24, %v5063_v63  ;;  %v1501_v41 = vrot.slane %v3321_v2, 2  ;;  %v1502_v30 = vrot.slane %v3322_v20, 2  ;;  %v2197_v24 = vrot.slane %v2070_v38, 1  ;;  %v5073_v2 = vld [vmem:[#allocation31_spill] sm:$0xff] }
 0x25c   : > { %v2774_v4 = vadd.f32 %v2669_v7, %v1969_v29  ;;  %2605 = vmatmul.f32.gmra.mxu3 %v2191_v47  ;;  %v5074_v20 = vld [vmem:[#allocation35_spill] sm:$0xff] }
 0x25d   : > { %v1971_v56 = vadd.f32 %v1870_v62, %v1130_v40  ;;  %1916 = vmatmul.f32.gmra.mxu1 %v1500_v43  ;;  %v1503_v57 = vsel %vm686_vm1, %v1501_v41, %v1502_v30  ;;  %v1505_v23 = vsel %vm686_vm1, %v1502_v30, %v1504_v46  ;;  %v1026_v41 = vadd.f32 %v5073_v2, %v5072_v34  ;;  %v5086_v34 = vld [vmem:[#allocation44_spill] sm:$0xff] }
 0x25e   : > { %2870 = vst [vmem:[%s4704_s20 + $0x58] sm:$0xff] %v2774_v4  ;;  %v2901_v53 = vadd.f32 %v2900_v18, %v2774_v4  ;;  %v2940_v25 = vmul.f32 %v2774_v4, %v2774_v4  ;;  %v2445_v14 = vpop.f32.mrf.mxu2  ;;  %v2677_v29 = vpop.f32.mrf.mxu0 }
 0x25f   : > { %v2558_v28 = vpop.f32.mrf.mxu3 }
 0x260   : > { %v2971_v54 = vadd.f32 %v2970_v36, %v2940_v25  ;;  %v2559_v15 = vadd.f32 %v2558_v28, %v2445_v14  ;;  %v1139_v14 = vadd.f32 %v4535_v22, %v1026_v41 }
 0x261   : > { %2724 = vmatmul.f32.gmra.mxu0 %v2306_v51 }
 0x262   : > { %v2672_v1 = vadd.f32 %v2671_v55, %v2559_v15  ;;  %v1872_v12 = vpop.f32.mrf.mxu1 }
 0x263   : > { %2495 = vmatmul.f32.gmra.mxu2 %v4804_v26  ;;  %v1873_v0 = vadd.f32 %v1872_v12, %v5067_v9 }
 0x264   : > { %v2775_v13 = vadd.f32 %v2672_v1, %v1970_v59  ;;  %2608 = vmatmul.f32.gmra.mxu3 %v2193_v31  ;;  %v5068_v59 = vld [vmem:[#allocation19_spill] sm:$0xff] }
 0x265   : > { %v1972_v42 = vadd.f32 %v1873_v0, %v1133_v60  ;;  %1919 = vmatmul.f32.gmra.mxu1 %v1503_v57  ;;  %v1023_v21 = vadd.f32 %v5069_v3, %v5068_v59  ;;  %v5076_v57 = vld [vmem:[#allocation34_spill] sm:$0xff]  ;;  %v5081_v59 = vld [vmem:[#allocation40_spill] sm:$0xff] }
 0x266   : > { %2871 = vst [vmem:[%s4704_s20 + $0x60] sm:$0xff] %v2775_v13  ;;  %v2902_v55 = vadd.f32 %v2901_v53, %v2775_v13  ;;  %v2941_v49 = vmul.f32 %v2775_v13, %v2775_v13  ;;  %v2448_v33 = vpop.f32.mrf.mxu2  ;;  %v2680_v8 = vpop.f32.mrf.mxu0  ;;  %v2198_v53 = vsel %vm573_vm0, %v2194_v50, %v2197_v24  ;;  %v5078_v0 = vld [vmem:[#allocation38_spill] sm:$0xff] }
 0x267   : > { %v2561_v45 = vpop.f32.mrf.mxu3  ;;  %v1136_v6 = vadd.f32 %v5070_v48, %v1023_v21  ;;  %v5082_v21 = vld [vmem:[#allocation41_spill] sm:$0xff] }
 0x268   : > { %v2972_v18 = vadd.f32 %v2971_v54, %v2941_v49  ;;  %v2562_v26 = vadd.f32 %v2561_v45, %v2448_v33  ;;  %v5079_v45 = vld [vmem:[#allocation8_spill] sm:$0xff] }
 0x269   : > { %2727 = vmatmul.f32.gmra.mxu0 %v2310_v44 }
 0x26a   : > { %v2675_v10 = vadd.f32 %v2674_v58, %v2562_v26  ;;  %v1875_v36 = vpop.f32.mrf.mxu1 }
 0x26b   : > { %2498 = vmatmul.f32.gmra.mxu2 %v4827_v27  ;;  %v1876_v19 = vadd.f32 %v1875_v36, %v5071_v52 }
 0x26c   : > { %v2776_v47 = vadd.f32 %v2675_v10, %v1971_v56  ;;  %2611 = vmatmul.f32.gmra.mxu3 %v2194_v50 }
 0x26d   : > { %v1973_v7 = vadd.f32 %v1876_v19, %v1136_v6  ;;  %1922 = vmatmul.f32.gmra.mxu1 %v1505_v23 }
 0x26e   : > { %2872 = vst [vmem:[%s4704_s20 + $0x68] sm:$0xff] %v2776_v47  ;;  %v2903_v43 = vadd.f32 %v2902_v55, %v2776_v47  ;;  %v2942_v40 = vmul.f32 %v2776_v47, %v2776_v47  ;;  %v2451_v58 = vpop.f32.mrf.mxu2  ;;  %v2683_v51 = vpop.f32.mrf.mxu0 }
 0x26f   : > { %v2564_v63 = vpop.f32.mrf.mxu3 }
 0x270   : > { %v2973_v62 = vadd.f32 %v2972_v18, %v2942_v40  ;;  %v2565_v4 = vadd.f32 %v2564_v63, %v2451_v58  ;;  %v5080_v18 = vld [vmem:[#allocation36_spill] sm:$0xff]  ;;  %v5084_v40 = vld [vmem:[#allocation39_spill] sm:$0xff] }
 0x271   : > { %v1032_v26 = vadd.f32 %v5080_v18, %v5079_v45 }
 0x272   : > { %v2678_v25 = vadd.f32 %v2677_v29, %v2565_v4  ;;  %v1878_v56 = vpop.f32.mrf.mxu1  ;;  %v5075_v29 = vld [vmem:[#allocation6_spill] sm:$0xff]  ;;  %v5085_v4 = vld [vmem:[#allocation43_spill] sm:$0xff] }
 0x273   : > { %2501 = vmatmul.f32.gmra.mxu2 %v4827_v27  ;;  %v1879_v30 = vadd.f32 %v1878_v56, %v5074_v20  ;;  %v1029_v16 = vadd.f32 %v5076_v57, %v5075_v29  ;;  %v5077_v27 = vld [vmem:[#allocation37_spill] sm:$0xff]  ;;  %v1145_v3 = vadd.f32 %v5081_v59, %v1032_v26 }
 0x274   : > { %v2777_v28 = vadd.f32 %v2678_v25, %v1972_v42  ;;  %2614 = vmatmul.f32.gmra.mxu3 %v2198_v53 }
 0x275   : > { %v1974_v54 = vadd.f32 %v1879_v30, %v1139_v14  ;;  %v1142_v9 = vadd.f32 %v5077_v27, %v1029_v16 }
 0x276   : > { %2873 = vst [vmem:[%s4704_s20 + $0x70] sm:$0xff] %v2777_v28  ;;  %v2904_v15 = vadd.f32 %v2903_v43, %v2777_v28  ;;  %v2943_v35 = vmul.f32 %v2777_v28, %v2777_v28  ;;  %v2454_v61 = vpop.f32.mrf.mxu2  ;;  %v2686_v12 = vpop.f32.mrf.mxu0  ;;  %v5083_v43 = vld [vmem:[#allocation11_spill] sm:$0xff] }
 0x277   : > { %v2567_v39 = vpop.f32.mrf.mxu3  ;;  %v1035_v58 = vadd.f32 %v5084_v40, %v5083_v43 }
 0x278   : > { %v2974_v31 = vadd.f32 %v2973_v62, %v2943_v35  ;;  %v2568_v1 = vadd.f32 %v2567_v39, %v2454_v61  ;;  %v5088_v35 = vld [vmem:[#allocation42_spill] sm:$0xff] }
 0x27a   : > { %v2681_v22 = vadd.f32 %v2680_v8, %v2568_v1  ;;  %v1881_v60 = vpop.f32.mrf.mxu1 }
 0x27b   : > { %v1882_v38 = vadd.f32 %v1881_v60, %v5078_v0 }
 0x27c   : > { %v2778_v13 = vadd.f32 %v2681_v22, %v1973_v7 }
 0x27d   : > { %v1975_v17 = vadd.f32 %v1882_v38, %v1142_v9 }
 0x27e   : > { %2874 = vst [vmem:[%s4704_s20 + $0x78] sm:$0xff] %v2778_v13  ;;  %v2905_v42 = vadd.f32 %v2904_v15, %v2778_v13  ;;  %v2944_v50 = vmul.f32 %v2778_v13, %v2778_v13  ;;  %v2457_v55 = vpop.f32.mrf.mxu2  ;;  %v2689_v46 = vpop.f32.mrf.mxu0  ;;  %v5087_v15 = vld [vmem:[#allocation14_spill] sm:$0xff] }
 0x27f   : > { %v2570_v49 = vpop.f32.mrf.mxu3  ;;  %v1038_v61 = vadd.f32 %v5088_v35, %v5087_v15 }
 0x280   : > { %v2975_v33 = vadd.f32 %v2974_v31, %v2944_v50  ;;  %v2571_v37 = vadd.f32 %v2570_v49, %v2457_v55 }
 0x281   : > { %v1151_v1 = vadd.f32 %v4575_v32, %v1038_v61 }
 0x282   : > { %v2684_v8 = vadd.f32 %v2683_v51, %v2571_v37  ;;  %v1884_v44 = vpop.f32.mrf.mxu1  ;;  %v1148_v51 = vadd.f32 %v5085_v4, %v1035_v58  ;;  %v5093_v37 = vld [vmem:[#allocation49_spill] sm:$0xff] }
 0x283   : > { %v1885_v10 = vadd.f32 %v1884_v44, %v5082_v21 }
 0x284   : > { %v2779_v36 = vadd.f32 %v2684_v8, %v1974_v54 }
 0x285   : > { %v1976_v23 = vadd.f32 %v1885_v10, %v1145_v3 }
 0x286   : > { %2875 = vst [vmem:[%s4704_s20 + $0x80] sm:$0xff] %v2779_v36  ;;  %v2906_v48 = vadd.f32 %v2905_v42, %v2779_v36  ;;  %v2945_v6 = vmul.f32 %v2779_v36, %v2779_v36  ;;  %v2460_v52 = vpop.f32.mrf.mxu2  ;;  %v2692_v24 = vpop.f32.mrf.mxu0  ;;  %v5091_v42 = vld [vmem:[#allocation45_spill] sm:$0xff]  ;;  %v5094_v36 = vld [vmem:[#allocation20_spill] sm:$0xff] }
 0x287   : > { %v2573_v19 = vpop.f32.mrf.mxu3 }
 0x288   : > { %v2976_v47 = vadd.f32 %v2975_v33, %v2945_v6  ;;  %v2574_v7 = vadd.f32 %v2573_v19, %v2460_v52  ;;  %v5092_v33 = vld [vmem:[#allocation48_spill] sm:$0xff] }
 0x28a   : > { %v2687_v63 = vadd.f32 %v2686_v12, %v2574_v7  ;;  %v1887_v62 = vpop.f32.mrf.mxu1  ;;  %v5089_v12 = vld [vmem:[#allocation46_spill] sm:$0xff] }
 0x28b   : > { %v1888_v2 = vadd.f32 %v1887_v62, %v5086_v34 }
 0x28c   : > { %v2780_v41 = vadd.f32 %v2687_v63, %v1975_v17  ;;  %v5090_v17 = vld [vmem:[#allocation17_spill] sm:$0xff] }
 0x28d   : > { %v1977_v53 = vadd.f32 %v1888_v2, %v1148_v51  ;;  %v1041_v50 = vadd.f32 %v5091_v42, %v5090_v17  ;;  %v5097_v2 = vld [vmem:[#allocation22_spill] sm:$0xff] }
 0x28e   : > { %2876 = vst [vmem:[%s4704_s20 + $0x88] sm:$0xff] %v2780_v41  ;;  %v2907_v25 = vadd.f32 %v2906_v48, %v2780_v41  ;;  %v2946_v56 = vmul.f32 %v2780_v41, %v2780_v41  ;;  %v2463_v14 = vpop.f32.mrf.mxu2  ;;  %v2695_v54 = vpop.f32.mrf.mxu0  ;;  %v5098_v41 = vld [vmem:[#allocation50_spill] sm:$0xff] }
 0x28f   : > { %v2576_v20 = vpop.f32.mrf.mxu3  ;;  %v1154_v32 = vadd.f32 %v5092_v33, %v1041_v50 }
 0x290   : > { %v2977_v30 = vadd.f32 %v2976_v47, %v2946_v56  ;;  %v2577_v28 = vadd.f32 %v2576_v20, %v2463_v14  ;;  %v5096_v47 = vld [vmem:[#allocation51_spill] sm:$0xff]  ;;  %v5099_v14 = vld [vmem:[#allocation53_spill] sm:$0xff]  ;;  %v5100_v20 = vld [vmem:[#allocation54_spill] sm:$0xff] }
 0x292   : > { %v2690_v39 = vadd.f32 %v2689_v46, %v2577_v28  ;;  %v1890_v31 = vpop.f32.mrf.mxu1 }
 0x293   : > { %v1891_v29 = vadd.f32 %v1890_v31, %v5089_v12  ;;  %v5101_v12 = vld [vmem:[#allocation5_spill] sm:$0xff] }
 0x294   : > { %v2781_v57 = vadd.f32 %v2690_v39, %v1976_v23  ;;  %v5095_v23 = vld [vmem:[#allocation47_spill] sm:$0xff] }
 0x295   : > { %v1978_v16 = vadd.f32 %v1891_v29, %v1151_v1  ;;  %v1044_v48 = vadd.f32 %v5095_v23, %v5094_v36  ;;  %v5102_v29 = vld [vmem:[#allocation52_spill] sm:$0xff] }
 0x296   : > { %2877 = vst [vmem:[%s4704_s20 + $0x90] sm:$0xff] %v2781_v57  ;;  %v2908_v22 = vadd.f32 %v2907_v25, %v2781_v57  ;;  %v2947_v60 = vmul.f32 %v2781_v57, %v2781_v57  ;;  %v2466_v27 = vpop.f32.mrf.mxu2  ;;  %v2698_v13 = vpop.f32.mrf.mxu0  ;;  %v1050_v57 = vadd.f32 %v5102_v29, %v5101_v12 }
 0x297   : > { %v2579_v9 = vpop.f32.mrf.mxu3  ;;  %v1157_v19 = vadd.f32 %v4593_v11, %v1044_v48 }
 0x298   : > { %v2978_v0 = vadd.f32 %v2977_v30, %v2947_v60  ;;  %v2580_v38 = vadd.f32 %v2579_v9, %v2466_v27  ;;  %v1163_v27 = vadd.f32 %v4613_v5, %v1050_v57  ;;  %v5103_v9 = vld [vmem:[#allocation56_spill] sm:$0xff]  ;;  %v5107_v5 = vld [vmem:[#allocation59_spill] sm:$0xff] }
 0x29a   : > { %v2693_v55 = vadd.f32 %v2692_v24, %v2580_v38  ;;  %v1893_v49 = vpop.f32.mrf.mxu1 }
 0x29b   : > { %v1894_v46 = vadd.f32 %v1893_v49, %v5093_v37  ;;  %v5105_v37 = vld [vmem:[#allocation55_spill] sm:$0xff] }
 0x29c   : > { %v2782_v45 = vadd.f32 %v2693_v55, %v1977_v53  ;;  %v1047_v53 = vadd.f32 %v5098_v41, %v5097_v2 }
 0x29d   : > { %v1979_v18 = vadd.f32 %v1894_v46, %v1154_v32  ;;  %v5104_v32 = vld [vmem:[#allocation7_spill] sm:$0xff] }
 0x29e   : > { %2878 = vst [vmem:[%s4704_s20 + $0x98] sm:$0xff] %v2782_v45  ;;  %v2909_v26 = vadd.f32 %v2908_v22, %v2782_v45  ;;  %v2948_v8 = vmul.f32 %v2782_v45, %v2782_v45  ;;  %v2469_v44 = vpop.f32.mrf.mxu2  ;;  %v2701_v10 = vpop.f32.mrf.mxu0  ;;  %v1160_v11 = vadd.f32 %v5099_v14, %v1047_v53  ;;  %v1053_v46 = vadd.f32 %v5105_v37, %v5104_v32 }
 0x29f   : > { %v2582_v59 = vpop.f32.mrf.mxu3 }
 0x2a0   : > { %v2979_v3 = vadd.f32 %v2978_v0, %v2948_v8  ;;  %v2583_v21 = vadd.f32 %v2582_v59, %v2469_v44 }
 0x2a2   : > { %v2696_v6 = vadd.f32 %v2695_v54, %v2583_v21  ;;  %v1896_v52 = vpop.f32.mrf.mxu1 }
 0x2a3   : > { %v1897_v7 = vadd.f32 %v1896_v52, %v5096_v47  ;;  %v5109_v47 = vld [vmem:[#allocation57_spill] sm:$0xff] }
 0x2a4   : > { %v2783_v24 = vadd.f32 %v2696_v6, %v1978_v16 }
 0x2a5   : > { %v1980_v43 = vadd.f32 %v1897_v7, %v1157_v19  ;;  %v5108_v19 = vld [vmem:[#allocation9_spill] sm:$0xff] }
 0x2a6   : > { %2879 = vst [vmem:[%s4704_s20 + $0xa0] sm:$0xff] %v2783_v24  ;;  %v2910_v40 = vadd.f32 %v2909_v26, %v2783_v24  ;;  %v2949_v58 = vmul.f32 %v2783_v24, %v2783_v24  ;;  %v2472_v63 = vpop.f32.mrf.mxu2  ;;  %v2704_v34 = vpop.f32.mrf.mxu0  ;;  %v5106_v26 = vld [vmem:[#allocation58_spill] sm:$0xff]  ;;  %v1056_v7 = vadd.f32 %v5109_v47, %v5108_v19 }
 0x2a7   : > { %v2585_v62 = vpop.f32.mrf.mxu3  ;;  %v1166_v8 = vadd.f32 %v5106_v26, %v1053_v46 }
 0x2a8   : > { %v2980_v4 = vadd.f32 %v2979_v3, %v2949_v58  ;;  %v2586_v51 = vadd.f32 %v2585_v62, %v2472_v63  ;;  %v5111_v63 = vld [vmem:[#allocation62_spill] sm:$0xff] }
 0x2aa   : > { %v2699_v25 = vadd.f32 %v2698_v13, %v2586_v51  ;;  %v1899_v56 = vpop.f32.mrf.mxu1 }
 0x2ab   : > { %v1900_v30 = vadd.f32 %v1899_v56, %v5100_v20  ;;  %v5113_v20 = vld [vmem:[#allocation60_spill] sm:$0xff] }
 0x2ac   : > { %v2784_v28 = vadd.f32 %v2699_v25, %v1979_v18 }
 0x2ad   : > { %v1981_v54 = vadd.f32 %v1900_v30, %v1160_v11  ;;  %v5112_v11 = vld [vmem:[#allocation12_spill] sm:$0xff] }
 0x2ae   : > { %2880 = vst [vmem:[%s4704_s20 + $0xa8] sm:$0xff] %v2784_v28  ;;  %v2911_v15 = vadd.f32 %v2910_v40, %v2784_v28  ;;  %v2950_v35 = vmul.f32 %v2784_v28, %v2784_v28  ;;  %v2475_v61 = vpop.f32.mrf.mxu2  ;;  %v2707_v16 = vpop.f32.mrf.mxu0  ;;  %v5110_v40 = vld [vmem:[#allocation61_spill] sm:$0xff]  ;;  %v1059_v30 = vadd.f32 %v5113_v20, %v5112_v11 }
 0x2af   : > { %v2588_v39 = vpop.f32.mrf.mxu3  ;;  %v1169_v58 = vadd.f32 %v5110_v40, %v1056_v7 }
 0x2b0   : > { %v2981_v31 = vadd.f32 %v2980_v4, %v2950_v35  ;;  %v2589_v1 = vadd.f32 %v2588_v39, %v2475_v61  ;;  %v5115_v61 = vld [vmem:[#allocation65_spill] sm:$0xff] }
 0x2b2   : > { %v2702_v22 = vadd.f32 %v2701_v10, %v2589_v1  ;;  %v1902_v60 = vpop.f32.mrf.mxu1 }
 0x2b3   : > { %v1903_v0 = vadd.f32 %v1902_v60, %v5103_v9  ;;  %v5116_v9 = vld [vmem:[#allocation15_spill] sm:$0xff] }
 0x2b4   : > { %v2785_v38 = vadd.f32 %v2702_v22, %v1980_v43 }
 0x2b5   : > { %v1982_v13 = vadd.f32 %v1903_v0, %v1163_v27  ;;  %v5117_v0 = vld [vmem:[#allocation63_spill] sm:$0xff] }
 0x2b6   : > { %2881 = vst [vmem:[%s4704_s20 + $0xb0] sm:$0xff] %v2785_v38  ;;  %v2912_v17 = vadd.f32 %v2911_v15, %v2785_v38  ;;  %v2951_v42 = vmul.f32 %v2785_v38, %v2785_v38  ;;  %v2478_v50 = vpop.f32.mrf.mxu2  ;;  %v2710_v59 = vpop.f32.mrf.mxu0  ;;  %v5114_v15 = vld [vmem:[#allocation64_spill] sm:$0xff]  ;;  %v1062_v38 = vadd.f32 %v5117_v0, %v5116_v9 }
 0x2b7   : > { %v2591_v55 = vpop.f32.mrf.mxu3  ;;  %v1172_v35 = vadd.f32 %v5114_v15, %v1059_v30 }
 0x2b8   : > { %v2982_v49 = vadd.f32 %v2981_v31, %v2951_v42  ;;  %v2592_v33 = vadd.f32 %v2591_v55, %v2478_v50  ;;  %v5118_v42 = vld [vmem:[#allocation67_spill] sm:$0xff]  ;;  %v5119_v55 = vld [vmem:[#allocation68_spill] sm:$0xff] }
 0x2b9   : > { %v1175_v50 = vadd.f32 %v5118_v42, %v1062_v38 }
 0x2ba   : > { %v2705_v45 = vadd.f32 %v2704_v34, %v2592_v33  ;;  %v1905_v18 = vpop.f32.mrf.mxu1 }
 0x2bb   : > { %v1906_v44 = vadd.f32 %v1905_v18, %v5107_v5  ;;  %v5120_v5 = vld [vmem:[#allocation18_spill] sm:$0xff] }
 0x2bc   : > { %v2786_v3 = vadd.f32 %v2705_v45, %v1981_v54 }
 0x2bd   : > { %v1983_v21 = vadd.f32 %v1906_v44, %v1166_v8  ;;  %v5121_v44 = vld [vmem:[#allocation66_spill] sm:$0xff] }
 0x2be   : > { %2882 = vst [vmem:[%s4704_s20 + $0xb8] sm:$0xff] %v2786_v3  ;;  %v2913_v10 = vadd.f32 %v2912_v17, %v2786_v3  ;;  %v2952_v36 = vmul.f32 %v2786_v3, %v2786_v3  ;;  %v2481_v23 = vpop.f32.mrf.mxu2  ;;  %v2713_v34 = vpop.f32.mrf.mxu0 }
 0x2bf   : > { %v2594_v48 = vpop.f32.mrf.mxu3 }
 0x2c0   : > { %v2983_v6 = vadd.f32 %v2982_v49, %v2952_v36  ;;  %v2595_v52 = vadd.f32 %v2594_v48, %v2481_v23  ;;  %v5122_v36 = vld [vmem:[#allocation70_spill] sm:$0xff]  ;;  %v5123_v48 = vld [vmem:[#allocation71_spill] sm:$0xff] }
 0x2c2   : > { %v2708_v24 = vadd.f32 %v2707_v16, %v2595_v52  ;;  %v1908_v43 = vpop.f32.mrf.mxu1 }
 0x2c3   : > { %v1909_v62 = vadd.f32 %v1908_v43, %v5111_v63  ;;  %v5124_v63 = vld [vmem:[#allocation21_spill] sm:$0xff] }
 0x2c4   : > { %v2787_v4 = vadd.f32 %v2708_v24, %v1982_v13 }
 0x2c5   : > { %v1984_v51 = vadd.f32 %v1909_v62, %v1169_v58  ;;  %v5125_v62 = vld [vmem:[#allocation69_spill] sm:$0xff] }
 0x2c6   : > { %2883 = vst [vmem:[%s4704_s20 + $0xc0] sm:$0xff] %v2787_v4  ;;  %v2914_v2 = vadd.f32 %v2913_v10, %v2787_v4  ;;  %v2953_v41 = vmul.f32 %v2787_v4, %v2787_v4  ;;  %v2484_v53 = vpop.f32.mrf.mxu2  ;;  %v2716_v22 = vpop.f32.mrf.mxu0  ;;  %v1068_v4 = vadd.f32 %v5125_v62, %v5124_v63 }
 0x2c7   : > { %v2597_v25 = vpop.f32.mrf.mxu3 }
 0x2c8   : > { %v2984_v56 = vadd.f32 %v2983_v6, %v2953_v41  ;;  %v2598_v14 = vadd.f32 %v2597_v25, %v2484_v53  ;;  %v5127_v53 = vld [vmem:[#allocation74_spill] sm:$0xff] }
 0x2ca   : > { %v2711_v28 = vadd.f32 %v2710_v59, %v2598_v14  ;;  %v1911_v54 = vpop.f32.mrf.mxu1  ;;  %v1065_v59 = vadd.f32 %v5121_v44, %v5120_v5 }
 0x2cb   : > { %v1912_v39 = vadd.f32 %v1911_v54, %v5115_v61  ;;  %v5128_v61 = vld [vmem:[#allocation23_spill] sm:$0xff] }
 0x2cc   : > { %v2788_v31 = vadd.f32 %v2711_v28, %v1983_v21  ;;  %v1178_v23 = vadd.f32 %v5122_v36, %v1065_v59 }
 0x2cd   : > { %v1985_v1 = vadd.f32 %v1912_v39, %v1172_v35  ;;  %v5129_v39 = vld [vmem:[#allocation72_spill] sm:$0xff] }
 0x2ce   : > { %2884 = vst [vmem:[%s4704_s20 + $0xc8] sm:$0xff] %v2788_v31  ;;  %v2915_v12 = vadd.f32 %v2914_v2, %v2788_v31  ;;  %v2954_v29 = vmul.f32 %v2788_v31, %v2788_v31  ;;  %v2487_v57 = vpop.f32.mrf.mxu2  ;;  %v2719_v3 = vpop.f32.mrf.mxu0  ;;  %v5126_v2 = vld [vmem:[#allocation73_spill] sm:$0xff]  ;;  %v1071_v31 = vadd.f32 %v5129_v39, %v5128_v61 }
 0x2cf   : > { %v2600_v16 = vpop.f32.mrf.mxu3  ;;  %v1181_v41 = vadd.f32 %v5126_v2, %v1068_v4 }
 0x2d0   : > { %v2985_v60 = vadd.f32 %v2984_v56, %v2954_v29  ;;  %v2601_v27 = vadd.f32 %v2600_v16, %v2487_v57  ;;  %v5130_v29 = vld [vmem:[#allocation75_spill] sm:$0xff]  ;;  %v5131_v16 = vld [vmem:[#allocation76_spill] sm:$0xff] }
 0x2d1   : > { %v1184_v57 = vadd.f32 %v5130_v29, %v1071_v31 }
 0x2d2   : > { %v2714_v13 = vadd.f32 %v2713_v34, %v2601_v27  ;;  %v1914_v17 = vpop.f32.mrf.mxu1 }
 0x2d3   : > { %v1915_v49 = vadd.f32 %v1914_v17, %v5119_v55 }
 0x2d4   : > { %v2789_v33 = vadd.f32 %v2714_v13, %v1984_v51 }
 0x2d5   : > { %v1986_v32 = vadd.f32 %v1915_v49, %v1175_v50 }
 0x2d6   : > { %2885 = vst [vmem:[%s4704_s20 + $0xd0] sm:$0xff] %v2789_v33  ;;  %v2916_v37 = vadd.f32 %v2915_v12, %v2789_v33  ;;  %v2955_v46 = vmul.f32 %v2789_v33, %v2789_v33  ;;  %v2490_v45 = vpop.f32.mrf.mxu2  ;;  %v2722_v56 = vpop.f32.mrf.mxu0 }
 0x2d7   : > { %v2603_v18 = vpop.f32.mrf.mxu3 }
 0x2d8   : > { %v2986_v26 = vadd.f32 %v2985_v60, %v2955_v46  ;;  %v2604_v8 = vadd.f32 %v2603_v18, %v2490_v45 }
 0x2da   : > { %v2717_v21 = vadd.f32 %v2716_v22, %v2604_v8  ;;  %v1917_v10 = vpop.f32.mrf.mxu1 }
 0x2db   : > { %v1918_v6 = vadd.f32 %v1917_v10, %v5123_v48 }
 0x2dc   : > { %v2790_v52 = vadd.f32 %v2717_v21, %v1985_v1 }
 0x2dd   : > { %v1987_v19 = vadd.f32 %v1918_v6, %v1178_v23 }
 0x2de   : > { %2886 = vst [vmem:[%s4704_s20 + $0xd8] sm:$0xff] %v2790_v52  ;;  %v2917_v47 = vadd.f32 %v2916_v37, %v2790_v52  ;;  %v2956_v7 = vmul.f32 %v2790_v52, %v2790_v52  ;;  %v2493_v24 = vpop.f32.mrf.mxu2  ;;  %v2725_v9 = vpop.f32.mrf.mxu0 }
 0x2df   : > { %v2606_v43 = vpop.f32.mrf.mxu3 }
 0x2e0   : > { %v2987_v40 = vadd.f32 %v2986_v26, %v2956_v7  ;;  %v2607_v58 = vadd.f32 %v2606_v43, %v2493_v24 }
 0x2e2   : > { %v2720_v51 = vadd.f32 %v2719_v3, %v2607_v58  ;;  %v1920_v34 = vpop.f32.mrf.mxu1 }
 0x2e3   : > { %v1921_v25 = vadd.f32 %v1920_v34, %v5127_v53 }
 0x2e4   : > { %v2791_v14 = vadd.f32 %v2720_v51, %v1986_v32 }
 0x2e5   : > { %v1988_v11 = vadd.f32 %v1921_v25, %v1181_v41 }
 0x2e6   : > { %2887 = vst [vmem:[%s4704_s20 + $0xe0] sm:$0xff] %v2791_v14  ;;  %v2918_v20 = vadd.f32 %v2917_v47, %v2791_v14  ;;  %v2957_v30 = vmul.f32 %v2791_v14, %v2791_v14  ;;  %v2496_v28 = vpop.f32.mrf.mxu2  ;;  %v2728_v45 = vpop.f32.mrf.mxu0 }
 0x2e7   : > { %v2609_v54 = vpop.f32.mrf.mxu3 }
 0x2e8   : > { %v2988_v15 = vadd.f32 %v2987_v40, %v2957_v30  ;;  %v2610_v35 = vadd.f32 %v2609_v54, %v2496_v28 }
 0x2ea   : > { %v2723_v1 = vadd.f32 %v2722_v56, %v2610_v35  ;;  %v1923_v12 = vpop.f32.mrf.mxu1 }
 0x2eb   : > { %v1924_v22 = vadd.f32 %v1923_v12, %v5131_v16 }
 0x2ec   : > { %v2792_v60 = vadd.f32 %v2723_v1, %v1987_v19 }
 0x2ed   : > { %v1989_v27 = vadd.f32 %v1924_v22, %v1184_v57 }
 0x2ee   : > { %2888 = vst [vmem:[%s4704_s20 + $0xe8] sm:$0xff] %v2792_v60  ;;  %v2919_v0 = vadd.f32 %v2918_v20, %v2792_v60  ;;  %v2958_v38 = vmul.f32 %v2792_v60, %v2792_v60  ;;  %v2499_v13 = vpop.f32.mrf.mxu2 }
 0x2ef   : > { %v2612_v17 = vpop.f32.mrf.mxu3 }
 0x2f0   : > { %v2989_v42 = vadd.f32 %v2988_v15, %v2958_v38  ;;  %v2613_v50 = vadd.f32 %v2612_v17, %v2499_v13 }
 0x2f2   : > { %v2726_v55 = vadd.f32 %v2725_v9, %v2613_v50 }
 0x2f4   : > { %v2793_v49 = vadd.f32 %v2726_v55, %v1988_v11 }
 0x2f6   : > { %2889 = vst [vmem:[%s4704_s20 + $0xf0] sm:$0xff] %v2793_v49  ;;  %v2920_v33 = vadd.f32 %v2919_v0, %v2793_v49  ;;  %v2959_v32 = vmul.f32 %v2793_v49, %v2793_v49  ;;  %v2502_v37 = vpop.f32.mrf.mxu2 }
 0x2f7   : > { %v2615_v46 = vpop.f32.mrf.mxu3 }
 0x2f8   : > { %v2990_v18 = vadd.f32 %v2989_v42, %v2959_v32  ;;  %v2616_v26 = vadd.f32 %v2615_v46, %v2502_v37 }
 0x2fa   : > { %v2729_v8 = vadd.f32 %v2728_v45, %v2616_v26 }
 0x2fc   : > { %v2794_v5 = vadd.f32 %v2729_v8, %v1989_v27 }
 0x2fe   : > { %2890 = vst [vmem:[%s4704_s20 + $0xf8] sm:$0xff] %v2794_v5  ;;  %v2921_v44 = vadd.f32 %v2920_v33, %v2794_v5  ;;  %v2960_v59 = vmul.f32 %v2794_v5, %v2794_v5 }
 0x300   : > { %v2922_v3 = vrot.slane %v2921_v44, 4  ;;  %v2991_v21 = vadd.f32 %v2990_v18, %v2960_v59 }
 0x302   : > { %v2923_v10 = vadd.f32 %v2922_v3, %v2921_v44  ;;  %v2992_v36 = vrot.slane %v2991_v21, 4 }
 0x304   : > { %v2924_v23 = vrot.slane %v2923_v10, 2  ;;  %v2993_v48 = vadd.f32 %v2992_v36, %v2991_v21 }
 0x306   : > { %v2925_v6 = vadd.f32 %v2924_v23, %v2923_v10  ;;  %v2994_v52 = vrot.slane %v2993_v48, 2 }
 0x308   : > { %v2926_v19 = vrot.slane %v2925_v6, 1  ;;  %v2995_v47 = vadd.f32 %v2994_v52, %v2993_v48 }
 0x30a   : > { %v2927_v7 = vadd.f32 %v2926_v19, %v2925_v6  ;;  %v2996_v24 = vrot.slane %v2995_v47, 1 }
 0x30c   : > { %2928 = vst [vmem:[%s265_s24] sm:$0x1] %v2927_v7  ;;  %v2997_v43 = vadd.f32 %v2996_v24, %v2995_v47 }
 0x30e   : > { %2998 = vst [vmem:[%s268_s27] sm:$0x1] %v2997_v43 }
 0x30f PF: > { %s17_s21 = sadd.s32 1, %s3330_s21  }
 0x310   : > { %p14_p4 = scmp.ge.s32.totalorder %s17_s21, 4  }
 0x312   :  { %16 = sbr.rel (!%p14_p4) target bundleno = 1 (0x1), region = 95 }

</bundles_post_ra>
